<compile_context>
chip_gen: v7x
topology: tpu7x:2x2x1
jax: 0.10.0
libtpu: 0.0.40
codegen_flags: <defaults>
</compile_context>

<pallas_src>
import functools

import jax
import jax.numpy as jnp
from jax.experimental import pallas as pl
from jax.experimental.pallas import tpu as pltpu


# ----------------------------------------------------------------------------
# Fused kernel: backbone proxy (conv -> ReLU -> GAP -> Linear -> ReLU) for all
# images + relation MLP head, single invocation, everything in VMEM.
# ----------------------------------------------------------------------------
def fused_relation_kernel(patches_ref, wcat_ref, gmat_ref, sel_ref,
                          w1both_ref, w23_ref, biases_ref, out_ref,
                          *, kc, c, inv_hw):
    h1_w = w1both_ref.shape[1] // 2      # 256 (Linear1 output width)
    h2_w = w23_ref.shape[1]              # 128 (Linear2 / padded Linear3 width)

    # Packed-operand slices (all static; sublane starts 8-aligned, lane start 0).
    wconv = wcat_ref[pl.ds(0, kc), pl.ds(0, c)]          # [32, 32]   bf16
    wproj = wcat_ref[pl.ds(kc, c), :]                    # [32, 512]  bf16
    w2 = w23_ref[pl.ds(0, h1_w), :]                      # [256, 128] bf16
    w3 = w23_ref[pl.ds(h1_w, h2_w), :]                   # [128, 128] bf16
    b_all = biases_ref[...]                              # [8, 512]   f32
    bconv = b_all[0:1, :c]
    bproj = b_all[1:2, :]
    b1 = b_all[2:3, :h1_w]
    b2 = b_all[3:4, :h2_w]
    b3 = b_all[4:5, :h2_w]

    # ---- backbone proxy: conv(3x3) -> ReLU -> GAP -> Linear -> ReLU ----
    conv = jnp.dot(patches_ref[...], wconv,
                   preferred_element_type=jnp.float32) + bconv
    conv = jnp.maximum(conv, 0.0)                        # [N*HW, 32] f32

    # Global average pool as a precomputed 0/1 block-row matmul (bf16 MXU),
    # scaled by 1/HW in f32.
    gap = jnp.dot(gmat_ref[...], conv.astype(jnp.bfloat16),
                  preferred_element_type=jnp.float32) * inv_hw   # [N_pad, 32]

    feat = jnp.dot(gap.astype(jnp.bfloat16), wproj,
                   preferred_element_type=jnp.float32) + bproj
    feat = jnp.maximum(feat, 0.0)                        # [N_pad, 512] f32

    # ---- relation head ----
    # Layer 1, both halves fused: cat(s, q) @ W1 == s @ W1[:512] + q @ W1[512:]
    h_all = jnp.dot(feat.astype(jnp.bfloat16), w1both_ref[...],
                    preferred_element_type=jnp.float32)  # [N_pad, 512]
    # h_cat = vstack(hs, hq); pair expansion is one bf16 0/1 selection matmul
    # (row order b * n_support + s, matching torch repeat/cat/view).
    h_cat = jnp.concatenate([h_all[:, :h1_w], h_all[:, h1_w:]],
                            axis=0).astype(jnp.bfloat16)  # [2*N_pad, 256]
    h1 = jnp.dot(sel_ref[...], h_cat,
                 preferred_element_type=jnp.float32) + b1
    h1 = jnp.maximum(h1, 0.0)                            # [BS_pad, 256]
    # nn.Dropout(0.5) -> identity in eval mode.

    h2 = jnp.dot(h1.astype(jnp.bfloat16), w2,
                 preferred_element_type=jnp.float32) + b2
    h2 = jnp.maximum(h2, 0.0)                            # [BS_pad, 128]

    # Final Linear(128, 1) padded to 128 output lanes -> lane-dense store.
    out_ref[...] = jnp.dot(h2.astype(jnp.bfloat16), w3,
                           preferred_element_type=jnp.float32) + b3


# ----------------------------------------------------------------------------
# Host-side glue.
# ----------------------------------------------------------------------------
def _im2col_patches(x_nchw, kc_pad):
    """[N, Cin, H, W] -> [N*H*W, kc_pad] im2col patches (3x3, pad=1)."""
    N, Cin, H, W = x_nchw.shape
    x = jnp.transpose(x_nchw, (0, 2, 3, 1))                    # NHWC
    xp = jnp.pad(x, ((0, 0), (1, 1), (1, 1), (0, 0)))
    cols = []
    for ky in range(3):
        for kx in range(3):
            cols.append(xp[:, ky:ky + H, kx:kx + W, :])        # [N, H, W, Cin]
    patches = jnp.stack(cols, axis=3)                          # [N, H, W, 9, Cin]
    patches = patches.reshape(N, H * W, 9 * Cin)
    patches = jnp.pad(patches, ((0, 0), (0, 0), (0, kc_pad - 9 * Cin)))
    return patches.reshape(N * H * W, kc_pad)


def _round_up(x, m):
    return (x + m - 1) // m * m


@jax.jit
def relation_network_forward(support, query, params):
    n_support = support.shape[0]
    batch_size = query.shape[0]
    H, W = support.shape[2], support.shape[3]
    hw = H * W
    kc = params["wconv"].shape[0]                              # 9 * Cin = 27
    kc_pad = 32                                                # aligned MXU feed
    C = params["wconv"].shape[1]                               # 32
    F = params["wproj"].shape[1]                               # 512
    h1_w = params["w1"].shape[1]                               # 256
    h2_w = params["w2"].shape[1]                               # 128

    n_img = n_support + batch_size
    n_pad = _round_up(n_img, 8)                                # sublane-aligned
    bs = batch_size * n_support
    bs_pad = _round_up(bs, 8)                                  # sublane-aligned

    # Shared backbone input for support + query (same backbone in torch).
    x_all = jnp.concatenate([support, query], axis=0)
    patches = _im2col_patches(x_all, kc_pad).astype(jnp.bfloat16)   # [N*HW, 32]

    # Precomputed 0/1 GAP matrix (exact in bf16); scaled by 1/HW in-kernel.
    img_of_row = jnp.arange(n_img * hw) // hw
    gmat = (img_of_row[None, :] ==
            jnp.arange(n_pad)[:, None]).astype(jnp.bfloat16)   # [N_pad, N*HW]

    # Packed conv + projection weights: rows [0:32] conv (lane-padded to 512),
    # rows [32:64] projection.
    wconv_p = jnp.pad(params["wconv"], ((0, kc_pad - kc), (0, F - C)))
    wcat = jnp.concatenate([wconv_p, params["wproj"]],
                           axis=0).astype(jnp.bfloat16)        # [64, 512]

    # Relation layer 1, support & query halves side by side: [512, 512].
    w1both = jnp.concatenate([params["w1"][:F], params["w1"][F:]],
                             axis=1).astype(jnp.bfloat16)

    # Packed Linear(256,128) + Linear(128,1)-padded-to-128 weights: [384, 128].
    w3p = jnp.pad(params["w3"], ((0, 0), (0, h2_w - params["w3"].shape[1])))
    w23 = jnp.concatenate([params["w2"], w3p],
                          axis=0).astype(jnp.bfloat16)

    # Pair-expansion selection matrix (row = b * n_support + s): column s picks
    # the support half (hs row s), column n_pad + n_support + b picks the query
    # half (hq row n_support + b). Exact 0/1 values in bf16.
    r = jnp.arange(bs_pad)
    cidx = jnp.arange(2 * n_pad)
    s_col = r % n_support
    q_col = n_pad + n_support + r // n_support
    sel = ((cidx[None, :] == s_col[:, None]) |
           (cidx[None, :] == q_col[:, None]))
    sel = (sel & (r < bs)[:, None]).astype(jnp.bfloat16)       # [BS_pad, 2*N_pad]

    # All five bias rows packed into one f32 operand (rows 0..4, lane-padded).
    biases = jnp.zeros((8, F), jnp.float32)
    biases = biases.at[0, :C].set(params["bconv"][0])
    biases = biases.at[1, :F].set(params["bproj"][0])
    biases = biases.at[2, :h1_w].set(params["b1"][0])
    biases = biases.at[3, :h2_w].set(params["b2"][0])
    biases = biases.at[4, 0].set(params["b3"][0, 0])

    vmem = pl.BlockSpec(memory_space=pltpu.MemorySpace.VMEM)
    out = pl.pallas_call(
        functools.partial(fused_relation_kernel,
                          kc=kc_pad, c=C, inv_hw=1.0 / hw),
        out_shape=jax.ShapeDtypeStruct((bs_pad, h2_w), jnp.float32),
        in_specs=[vmem] * 7,
        out_specs=vmem,
    )(patches, wcat, gmat, sel, w1both, w23, biases)

    # Column 0 of the lane-dense, row-padded output holds the Linear(128, 1)
    # score; rows beyond bs are padding.
    return out[:bs, 0].reshape(batch_size, n_support)


def init_params(key):
    ks = jax.random.split(key, 10)
    Cin, C, F = 3, 32, 512

    def lin(k, fan_in, shape):
        return jax.random.normal(k, shape, jnp.float32) / jnp.sqrt(fan_in)

    # Backbone proxy weights. Conv weight pre-flattened in im2col order
    # (ky, kx, cin) x cout, equivalent to torch [Cout, Cin, 3, 3] transposed.
    wconv = lin(ks[0], 9 * Cin, (9 * Cin, C))
    bconv = jnp.zeros((1, C), jnp.float32)
    wproj = lin(ks[1], C, (C, F))
    bproj = jnp.zeros((1, F), jnp.float32)

    # Relation head: Linear(1024,256) -> Linear(256,128) -> Linear(128,1).
    w1 = lin(ks[2], 1024, (1024, 256))
    b1 = lin(ks[3], 1024, (1, 256))
    w2 = lin(ks[4], 256, (256, 128))
    b2 = lin(ks[5], 256, (1, 128))
    w3 = lin(ks[6], 128, (128, 1))
    b3 = lin(ks[7], 128, (1, 1))

    return dict(wconv=wconv, bconv=bconv, wproj=wproj, bproj=bproj,
                w1=w1, b1=b1, w2=w2, b2=b2, w3=w3, b3=b3)


if __name__ == "__main__":
    key = jax.random.PRNGKey(0)
    k_s, k_q, k_p = jax.random.split(key, 3)

    n_support, batch_size = 5, 4
    H = W = 16
    support = jax.random.normal(k_s, (n_support, 3, H, W), jnp.float32)
    query = jax.random.normal(k_q, (batch_size, 3, H, W), jnp.float32)
    params = init_params(k_p)

    scores = relation_network_forward(support, query, params)
    scores = jax.block_until_ready(scores)

    assert scores.shape == (batch_size, n_support)
    assert bool(jnp.all(jnp.isfinite(scores)))
    print("KERNEL_OK")
</pallas_src>

<mosaic_0001>
module attributes {stable_mosaic.version = 11 : i64} {
  func.func @fused_relation_kernel(%arg0: memref<2304x32xbf16, #tpu.memory_space<vmem>>, %arg1: memref<64x512xbf16, #tpu.memory_space<vmem>>, %arg2: memref<16x2304xbf16, #tpu.memory_space<vmem>>, %arg3: memref<24x32xbf16, #tpu.memory_space<vmem>>, %arg4: memref<512x512xbf16, #tpu.memory_space<vmem>>, %arg5: memref<384x128xbf16, #tpu.memory_space<vmem>>, %arg6: memref<8x512xf32, #tpu.memory_space<vmem>>, %arg7: memref<24x128xf32, #tpu.memory_space<vmem>>) attributes {dimension_semantics = [], scalar_prefetch = 0 : i64, scratch_operands = 0 : i64, tpu.core_type = #tpu.core_type<tc>} {
    %c0 = arith.constant 0 : index
    %c0_0 = arith.constant 0 : index
    %0 = vector.load %arg1[%c0, %c0_0] : memref<64x512xbf16, #tpu.memory_space<vmem>>, vector<32x32xbf16>
    %c32 = arith.constant 32 : index
    %c0_1 = arith.constant 0 : index
    %1 = vector.load %arg1[%c32, %c0_1] : memref<64x512xbf16, #tpu.memory_space<vmem>>, vector<32x512xbf16>
    %c0_2 = arith.constant 0 : index
    %c0_3 = arith.constant 0 : index
    %2 = vector.load %arg5[%c0_2, %c0_3] : memref<384x128xbf16, #tpu.memory_space<vmem>>, vector<256x128xbf16>
    %c256 = arith.constant 256 : index
    %c0_4 = arith.constant 0 : index
    %3 = vector.load %arg5[%c256, %c0_4] : memref<384x128xbf16, #tpu.memory_space<vmem>>, vector<128x128xbf16>
    %c0_5 = arith.constant 0 : index
    %c0_6 = arith.constant 0 : index
    %4 = vector.load %arg6[%c0_5, %c0_6] : memref<8x512xf32, #tpu.memory_space<vmem>>, vector<8x512xf32>
    %5 = vector.extract_strided_slice %4 {offsets = [0, 0], sizes = [1, 32], strides = [1, 1]} : vector<8x512xf32> to vector<1x32xf32>
    %6 = vector.extract_strided_slice %4 {offsets = [1, 0], sizes = [1, 512], strides = [1, 1]} : vector<8x512xf32> to vector<1x512xf32>
    %7 = vector.extract_strided_slice %4 {offsets = [2, 0], sizes = [1, 256], strides = [1, 1]} : vector<8x512xf32> to vector<1x256xf32>
    %8 = vector.extract_strided_slice %4 {offsets = [3, 0], sizes = [1, 128], strides = [1, 1]} : vector<8x512xf32> to vector<1x128xf32>
    %9 = vector.extract_strided_slice %4 {offsets = [4, 0], sizes = [1, 128], strides = [1, 1]} : vector<8x512xf32> to vector<1x128xf32>
    %c0_7 = arith.constant 0 : index
    %c0_8 = arith.constant 0 : index
    %10 = vector.load %arg0[%c0_7, %c0_8] : memref<2304x32xbf16, #tpu.memory_space<vmem>>, vector<2304x32xbf16>
    %cst = arith.constant dense<0.000000e+00> : vector<2304x32xf32>
    %11 = tpu.matmul %10, %0, %cst {dimension_numbers = #tpu.dot_dimension_numbers<[1], [0], [0], [1], [0, 0, 1, 1], [], []>} : vector<2304x32xbf16>, vector<32x32xbf16>, vector<2304x32xf32> -> vector<2304x32xf32>
    %12 = vector.broadcast %5 : vector<1x32xf32> to vector<2304x32xf32>
    %13 = arith.addf %11, %12 : vector<2304x32xf32>
    %cst_9 = arith.constant 0.000000e+00 : f32
    %14 = vector.broadcast %cst_9 : f32 to vector<2304x32xf32>
    %15 = arith.maximumf %13, %14 : vector<2304x32xf32>
    %c0_10 = arith.constant 0 : index
    %c0_11 = arith.constant 0 : index
    %16 = vector.load %arg2[%c0_10, %c0_11] : memref<16x2304xbf16, #tpu.memory_space<vmem>>, vector<16x2304xbf16>
    %17 = arith.truncf %15 : vector<2304x32xf32> to vector<2304x32xbf16>
    %cst_12 = arith.constant dense<0.000000e+00> : vector<16x32xf32>
    %18 = tpu.matmul %16, %17, %cst_12 {dimension_numbers = #tpu.dot_dimension_numbers<[1], [0], [0], [1], [0, 0, 1, 1], [], []>} : vector<16x2304xbf16>, vector<2304x32xbf16>, vector<16x32xf32> -> vector<16x32xf32>
    %cst_13 = arith.constant 3.906250e-03 : f32
    %19 = vector.broadcast %cst_13 : f32 to vector<16x32xf32>
    %20 = arith.mulf %18, %19 : vector<16x32xf32>
    %21 = arith.truncf %20 : vector<16x32xf32> to vector<16x32xbf16>
    %cst_14 = arith.constant dense<0.000000e+00> : vector<16x512xf32>
    %22 = tpu.matmul %21, %1, %cst_14 {dimension_numbers = #tpu.dot_dimension_numbers<[1], [0], [0], [1], [0, 0, 1, 1], [], []>} : vector<16x32xbf16>, vector<32x512xbf16>, vector<16x512xf32> -> vector<16x512xf32>
    %23 = vector.broadcast %6 : vector<1x512xf32> to vector<16x512xf32>
    %24 = arith.addf %22, %23 : vector<16x512xf32>
    %cst_15 = arith.constant 0.000000e+00 : f32
    %25 = vector.broadcast %cst_15 : f32 to vector<16x512xf32>
    %26 = arith.maximumf %24, %25 : vector<16x512xf32>
    %27 = arith.truncf %26 : vector<16x512xf32> to vector<16x512xbf16>
    %c0_16 = arith.constant 0 : index
    %c0_17 = arith.constant 0 : index
    %28 = vector.load %arg4[%c0_16, %c0_17] : memref<512x512xbf16, #tpu.memory_space<vmem>>, vector<512x512xbf16>
    %cst_18 = arith.constant dense<0.000000e+00> : vector<16x512xf32>
    %29 = tpu.matmul %27, %28, %cst_18 {dimension_numbers = #tpu.dot_dimension_numbers<[1], [0], [0], [1], [0, 0, 1, 1], [], []>} : vector<16x512xbf16>, vector<512x512xbf16>, vector<16x512xf32> -> vector<16x512xf32>
    %30 = vector.extract_strided_slice %29 {offsets = [0, 0], sizes = [16, 256], strides = [1, 1]} : vector<16x512xf32> to vector<16x256xf32>
    %31 = vector.extract_strided_slice %29 {offsets = [0, 256], sizes = [16, 256], strides = [1, 1]} : vector<16x512xf32> to vector<16x256xf32>
    %32 = tpu.concatenate %30, %31 in 0 : vector<16x256xf32>, vector<16x256xf32> -> vector<32x256xf32>
    %33 = arith.truncf %32 : vector<32x256xf32> to vector<32x256xbf16>
    %c0_19 = arith.constant 0 : index
    %c0_20 = arith.constant 0 : index
    %34 = vector.load %arg3[%c0_19, %c0_20] : memref<24x32xbf16, #tpu.memory_space<vmem>>, vector<24x32xbf16>
    %cst_21 = arith.constant dense<0.000000e+00> : vector<24x256xf32>
    %35 = tpu.matmul %34, %33, %cst_21 {dimension_numbers = #tpu.dot_dimension_numbers<[1], [0], [0], [1], [0, 0, 1, 1], [], []>} : vector<24x32xbf16>, vector<32x256xbf16>, vector<24x256xf32> -> vector<24x256xf32>
    %36 = vector.broadcast %7 : vector<1x256xf32> to vector<24x256xf32>
    %37 = arith.addf %35, %36 : vector<24x256xf32>
    %cst_22 = arith.constant 0.000000e+00 : f32
    %38 = vector.broadcast %cst_22 : f32 to vector<24x256xf32>
    %39 = arith.maximumf %37, %38 : vector<24x256xf32>
    %40 = arith.truncf %39 : vector<24x256xf32> to vector<24x256xbf16>
    %cst_23 = arith.constant dense<0.000000e+00> : vector<24x128xf32>
    %41 = tpu.matmul %40, %2, %cst_23 {dimension_numbers = #tpu.dot_dimension_numbers<[1], [0], [0], [1], [0, 0, 1, 1], [], []>} : vector<24x256xbf16>, vector<256x128xbf16>, vector<24x128xf32> -> vector<24x128xf32>
    %42 = vector.broadcast %8 : vector<1x128xf32> to vector<24x128xf32>
    %43 = arith.addf %41, %42 : vector<24x128xf32>
    %cst_24 = arith.constant 0.000000e+00 : f32
    %44 = vector.broadcast %cst_24 : f32 to vector<24x128xf32>
    %45 = arith.maximumf %43, %44 : vector<24x128xf32>
    %46 = arith.truncf %45 : vector<24x128xf32> to vector<24x128xbf16>
    %cst_25 = arith.constant dense<0.000000e+00> : vector<24x128xf32>
    %47 = tpu.matmul %46, %3, %cst_25 {dimension_numbers = #tpu.dot_dimension_numbers<[1], [0], [0], [1], [0, 0, 1, 1], [], []>} : vector<24x128xbf16>, vector<128x128xbf16>, vector<24x128xf32> -> vector<24x128xf32>
    %48 = vector.broadcast %9 : vector<1x128xf32> to vector<24x128xf32>
    %49 = arith.addf %47, %48 : vector<24x128xf32>
    %c0_26 = arith.constant 0 : index
    %c0_27 = arith.constant 0 : index
    %50 = vector.load %arg7[%c0_26, %c0_27] : memref<24x128xf32, #tpu.memory_space<vmem>>, vector<24x128xf32>
    tpu.vector_store %arg7[%c0_26, %c0_27], %49 {strides = array<i32>} : memref<24x128xf32, #tpu.memory_space<vmem>>, vector<24x128xf32>,
    return
  }
}

</mosaic_0001>

<bundles_post_ra>
// kernel: squeeze.11
= control target key start
LH: loop header
LB: loop body
LE: loop exit
PB: predicated region body
PF: predicated region fallthrough
CT: control target
= control target key end

     0   :  { %s101_s0 = inlined_call_operand.vmem [shape: f32[20], index: 0, kind: input, shape index: {}]   ;;  %s102_s1 = inlined_call_operand.hbm [shape: f32[4,5], index: 1, kind: output, shape index: {}]  }
   0x1   :  { %v5_v0 = vld [vmem:[%s101_s0] sm:$0x1] }
   0x2   :  { %6 = vst [vmem:[#allocation3] sm:$0x1] %v5_v0 }
   0x3   :  { %2 = vsyncpa [#allocation1], 0  ;;  %s72_s0 = smov 123   ;;  %s73_s8 = smov 113   ;;  %vm8_vm0 = vcmask 39936  }
   0x4   :  { %s74_s9 = smov 118   ;;  %s75_s10 = smov [#allocation0]  }
   0x5   :  { %s38_s11 = sshll.u32 %s75_s10, 4  ;;  %s39_s11 = int_to_ptr.vmem [resolvable:$true] %s38_s11 }
   0x6   :  { %s48_s12 = scalar_lea.vmem %s39_s11, 64  ;;  %p53_p1 = scmp.lt.s32.totalorder %s39_s11, %s39_s11 }
   0x7   :  { %p49_p0 = scmp.ne.s32.totalorder %s39_s11, %s48_s12  ;;  %p54_p2 = scmp.lt.s32.totalorder %s48_s12, %s48_s12 }
   0x9   :  { %v10_v1 = vld [vmem:[#allocation3] sm:$0x1]   ;;  %p55_p3 = por %p54_p2, %p53_p1 }
   0xa   :  { %v22_v2 = vld [vmem:[#allocation3] sm:$0x1]   ;;  %11 = vrot.lane.b32.xlu0 %v10_v1, %s72_s0 }
   0xb   :  { %23 = vrot.lane.b32.xlu1 %v22_v2, %s73_s8  ;;  %v7_v3 = vld [vmem:[#allocation3] sm:$0x1]   ;;  %p56_p4 = pnand %p55_p3, %p49_p0 }
   0xc   :  { %v16_v4 = vld [vmem:[#allocation3] sm:$0x1]   ;;  %9 = vst.msk [vmem:[#allocation2] sm:$0x1] %vm8_vm0, %v7_v3  }
   0xe   :  { %17 = vrot.lane.b32.xlu0 %v16_v4, %s74_s9 }
  0x7c   :  { %v12_v5 = vpop.permute.xlu0 %11  }
  0x7d   :  { %v24_v6 = vpop.permute.xlu1 %23   ;;  %15 = vst.msk [vmem:[#allocation2 + $0x1] sm:$0x1] %vm8_vm0, %v12_v5  }
  0x7e   :  { %27 = vst.msk [vmem:[#allocation2 + $0x3] sm:$0x1] %vm8_vm0, %v24_v6  }
  0x80   :  { %v18_v7 = vpop.permute.xlu0 %17  }
  0x81   :  { %21 = vst.msk [vmem:[#allocation2 + $0x2] sm:$0x1] %vm8_vm0, %v18_v7  }
  0x88   :  { %v31_v8 = vld [vmem:[#allocation2] sm:$0xf] }
  0x89   :  { %33 = vst [vmem:[#allocation0] sm:$0xf] %v31_v8 }
  0x8a   :  { %59 = shalt.err (!%p56_p4)
}
  0x8b   :  { %s60_s15 = scalar_lea.hbm %s102_s1, 64 }
  0x8c   :  { %p61_p5 = scmp.ne.s32.totalorder %s102_s1, %s60_s15  ;;  %p64_p6 = scmp.lt.u32.totalorder %s60_s15, %s102_s1 }
  0x8e   :  { %p66_p7 = pnand %p64_p6, %p61_p5 }
  0x90   :  { %69 = shalt.err (!%p66_p7)
}
  0x91   :  { %41 = dma.vmem_to_hbm [thread:$0]  %s39_s11, 64, %s102_s1, [#allocation1]  }
  0x92   :  { %70 = dma.done.wait [#allocation1], 64  }
  0x93   :  { %71 = vsyncadd [#allocation1], 4294967232 }
  0x94   :  { %43 = vsyncpa [#allocation1], 1 }

// kernel: relation_network_forward.1
= control target key start
LH: loop header
LB: loop body
LE: loop exit
PB: predicated region body
PF: predicated region fallthrough
CT: control target
= control target key end

     0   :  { %vm1115_vm0 = vcmask 261120   ;;  %v379_v55 = vlaneseq  ;;  %s8425_s1 = inlined_call_operand.vmem [shape: bf16[64,512], index: 1, kind: input, shape index: {}]   ;;  %s8426_s0 = inlined_call_operand.vmem [shape: bf16[2304,32], index: 0, kind: input, shape index: {}]   ;;  %s8427_s2 = inlined_call_operand.vmem [shape: bf16[16,2304], index: 2, kind: input, shape index: {}]   ;;  %s8428_s6 = inlined_call_operand.vmem [shape: f32[8,512], index: 6, kind: input, shape index: {}]   ;;  %s8429_s4 = inlined_call_operand.vmem [shape: bf16[512,512], index: 4, kind: input, shape index: {}]   ;;  %s8430_s5 = inlined_call_operand.vmem [shape: bf16[384,128], index: 5, kind: input, shape index: {}]   ;;  %s8431_s3 = inlined_call_operand.vmem [shape: bf16[24,32], index: 3, kind: input, shape index: {}]   ;;  %s8432_s7 = inlined_call_operand.vmem [shape: f32[24,128], index: 7, kind: output, shape index: {}]  }
   0x1   :  { %v6269_v0 = vld [vmem:[%s8425_s1] ss:$16 sps:$4 sm:$0xff]   ;;  %v6272_v3 = vld [vmem:[%s8426_s0 + $0x8] sm:$0xff]   ;;  %v6274_v5 = vld [vmem:[%s8426_s0 + $0x18] sm:$0xff]  }
   0x2   :  { %v6270_v1 = vld [vmem:[%s8425_s1 + $0x20] ss:$16 sps:$4 sm:$0xff]   ;;  %5948 = vmatprep.subr.bf16.mxu0 %v6269_v0  ;;  %v6276_v7 = vld [vmem:[%s8426_s0 + $0x28] sm:$0xff]   ;;  %v6278_v9 = vld [vmem:[%s8426_s0 + $0x38] sm:$0xff]   ;;  %v6934_v57 = vshrl.u32 %v379_v55, 7 }
   0x3   :  { %v6271_v2 = vld [vmem:[%s8426_s0] sm:$0xff]   ;;  %5949 = vmatpush3.bf16.msra.mxu0 %v6269_v0  ;;  %v6273_v4 = vld [vmem:[%s8426_s0 + $0x10] sm:$0xff]   ;;  %v6280_v11 = vld [vmem:[%s8426_s0 + $0x48] sm:$0xff]  }
   0x4   :  { %5950 = vmatprep.subr.bf16.mxu0 %v6270_v1  ;;  %5952 = vmatprep.mubr.msk.bf16.mxu0 %vm1115_vm0, %v6271_v2  ;;  %v6275_v6 = vld [vmem:[%s8426_s0 + $0x20] sm:$0xff]   ;;  %v6277_v8 = vld [vmem:[%s8426_s0 + $0x30] sm:$0xff]   ;;  %v6282_v13 = vld [vmem:[%s8426_s0 + $0x58] sm:$0xff]   ;;  %v381_v59 = vsub.s32 0, %v6934_v57 }
   0x5   :  { %v6279_v10 = vld [vmem:[%s8426_s0 + $0x40] sm:$0xff]   ;;  %v6281_v12 = vld [vmem:[%s8426_s0 + $0x50] sm:$0xff]   ;;  %v6284_v15 = vld [vmem:[%s8426_s0 + $0x68] sm:$0xff]  }
   0x6   :  { %v6283_v14 = vld [vmem:[%s8426_s0 + $0x60] sm:$0xff]   ;;  %v6285_v16 = vld [vmem:[%s8426_s0 + $0x70] sm:$0xff]   ;;  %v6286_v17 = vld [vmem:[%s8426_s0 + $0x78] sm:$0xff]  }
   0x7   :  { %5951 = vmatpush3.bf16.msra.mxu0 %v6270_v1  ;;  %v6287_v18 = vld [vmem:[%s8426_s0 + $0x80] sm:$0xff]   ;;  %v6288_v19 = vld [vmem:[%s8426_s0 + $0x88] sm:$0xff]   ;;  %v6289_v20 = vld [vmem:[%s8426_s0 + $0x90] sm:$0xff]  }
   0x8   :  { %v6290_v21 = vld [vmem:[%s8426_s0 + $0x98] sm:$0xff]   ;;  %v6291_v22 = vld [vmem:[%s8426_s0 + $0xa0] sm:$0xff]   ;;  %v6292_v23 = vld [vmem:[%s8426_s0 + $0xa8] sm:$0xff]  }
   0x9   :  { %v6293_v24 = vld [vmem:[%s8426_s0 + $0xb0] sm:$0xff]   ;;  %v6294_v25 = vld [vmem:[%s8426_s0 + $0xb8] sm:$0xff]   ;;  %v6295_v26 = vld [vmem:[%s8426_s0 + $0xc0] sm:$0xff]  }
   0xa   :  { %5953 = vmatmul.mubr.msk.bf16.vlgmr.msra.gmra.mrb[0].mxu0 %vm1115_vm0, %v6272_v3  ;;  %v6296_v27 = vld [vmem:[%s8426_s0 + $0xc8] sm:$0xff]   ;;  %v6297_v28 = vld [vmem:[%s8426_s0 + $0xd0] sm:$0xff]   ;;  %v6298_v29 = vld [vmem:[%s8426_s0 + $0xd8] sm:$0xff]  }
   0xb   :  { %5956 = vmatprep.mubr.msk.bf16.mxu0 %vm1115_vm0, %v6273_v4  ;;  %v6299_v30 = vld [vmem:[%s8426_s0 + $0xe0] sm:$0xff]   ;;  %v6300_v31 = vld [vmem:[%s8426_s0 + $0xe8] sm:$0xff]   ;;  %v6301_v32 = vld [vmem:[%s8426_s0 + $0xf0] sm:$0xff]  }
   0xc   :  { %v6302_v33 = vld [vmem:[%s8426_s0 + $0xf8] sm:$0xff]   ;;  %v6303_v34 = vld [vmem:[%s8426_s0 + $0x100] sm:$0xff]   ;;  %v6304_v35 = vld [vmem:[%s8426_s0 + $0x108] sm:$0xff]  }
   0xd   :  { %v6305_v36 = vld [vmem:[%s8426_s0 + $0x110] sm:$0xff]   ;;  %v6306_v37 = vld [vmem:[%s8426_s0 + $0x118] sm:$0xff]   ;;  %v6307_v38 = vld [vmem:[%s8426_s0 + $0x120] sm:$0xff]  }
   0xe   :  { %v6308_v39 = vld [vmem:[%s8426_s0 + $0x128] sm:$0xff]   ;;  %v6309_v40 = vld [vmem:[%s8426_s0 + $0x130] sm:$0xff]   ;;  %v6310_v41 = vld [vmem:[%s8426_s0 + $0x138] sm:$0xff]  }
   0xf   :  { %v6311_v42 = vld [vmem:[%s8426_s0 + $0x140] sm:$0xff]   ;;  %v6312_v43 = vld [vmem:[%s8426_s0 + $0x148] sm:$0xff]   ;;  %v6313_v44 = vld [vmem:[%s8426_s0 + $0x150] sm:$0xff]  }
  0x10   :  { %v6314_v45 = vld [vmem:[%s8426_s0 + $0x158] sm:$0xff]   ;;  %v6315_v46 = vld [vmem:[%s8426_s0 + $0x160] sm:$0xff]   ;;  %v6316_v47 = vld [vmem:[%s8426_s0 + $0x168] sm:$0xff]  }
  0x11   :  { %v6317_v48 = vld [vmem:[%s8426_s0 + $0x170] sm:$0xff]   ;;  %v6318_v49 = vld [vmem:[%s8426_s0 + $0x178] sm:$0xff]   ;;  %v6319_v50 = vld [vmem:[%s8426_s0 + $0x180] sm:$0xff]  }
  0x12   :  { %5957 = vmatmul.mubr.msk.bf16.gmra.mrb[4].mxu0 %vm1115_vm0, %v6274_v5  ;;  %v6353_v51 = vld [vmem:[%s8427_s2 + $0x4] ss:$72 sps:$4 sm:$0xff]   ;;  %v6321_v53 = vld [vmem:[%s8426_s0 + $0x190] sm:$0xff]   ;;  %v6322_v54 = vld [vmem:[%s8426_s0 + $0x198] sm:$0xff]  }
  0x13   :  { %5960 = vmatprep.mubr.msk.bf16.mxu0 %vm1115_vm0, %v6275_v6  ;;  %v6320_v52 = vld [vmem:[%s8426_s0 + $0x188] sm:$0xff]   ;;  %3305 = vmatprep.mubr.bf16.mxu1 %v6353_v51  ;;  %v6323_v56 = vld [vmem:[%s8426_s0 + $0x1a0] sm:$0xff]   ;;  %v6325_v61 = vld [vmem:[%s8426_s0 + $0x1b0] sm:$0xff]  }
  0x14   :  { %v6324_v58 = vld [vmem:[%s8426_s0 + $0x1a8] sm:$0xff]   ;;  %v87_v60 = vld [vmem:[%s8428_s6] sm:$0xff]  ;;  %v6326_v2 = vld [vmem:[%s8426_s0 + $0x1b8] sm:$0xff]  }
  0x15   :  { %v6948_v62 = vrot.slane %v87_v60, %v381_v59  ;;  %v6327_v5 = vld [vmem:[%s8426_s0 + $0x1c0] sm:$0xff]  }
  0x1a   :  { %5961 = vmatmul.mubr.msk.bf16.gmra.mrb[8].mxu0 %vm1115_vm0, %v6276_v7 }
  0x1b   :  { %5964 = vmatprep.mubr.msk.bf16.mxu0 %vm1115_vm0, %v6277_v8 }
  0x22   :  { %5965 = vmatmul.mubr.msk.bf16.gmra.mrb[12].mxu0 %vm1115_vm0, %v6278_v9 }
  0x23   :  { %5968 = vmatprep.mubr.msk.bf16.mxu0 %vm1115_vm0, %v6279_v10 }
  0x2a   :  { %5969 = vmatmul.mubr.msk.bf16.gmra.mrb[16].mxu0 %vm1115_vm0, %v6280_v11 }
  0x2b   :  { %5972 = vmatprep.mubr.msk.bf16.mxu0 %vm1115_vm0, %v6281_v12 }
  0x32   :  { %5973 = vmatmul.mubr.msk.bf16.gmra.mrb[20].mxu0 %vm1115_vm0, %v6282_v13 }
  0x33   :  { %5976 = vmatprep.mubr.msk.bf16.mxu0 %vm1115_vm0, %v6283_v14 }
  0x3a   :  { %5977 = vmatmul.mubr.msk.bf16.gmra.mrb[24].mxu0 %vm1115_vm0, %v6284_v15 }
  0x3b   :  { %5980 = vmatprep.mubr.msk.bf16.mxu0 %vm1115_vm0, %v6285_v16 }
  0x42   :  { %5981 = vmatmul.mubr.msk.bf16.gmra.mrb[28].mxu0 %vm1115_vm0, %v6286_v17 }
  0x43   :  { %5984 = vmatprep.mubr.msk.bf16.mxu0 %vm1115_vm0, %v6287_v18  ;;  %v6328_v18 = vld [vmem:[%s8426_s0 + $0x1c8] sm:$0xff]  }
  0x4a   :  { %5985 = vmatmul.mubr.msk.bf16.gmra.mrb[32].mxu0 %vm1115_vm0, %v6288_v19 }
  0x4b   :  { %5988 = vmatprep.mubr.msk.bf16.mxu0 %vm1115_vm0, %v6289_v20 }
  0x52   :  { %5989 = vmatmul.mubr.msk.bf16.gmra.mrb[36].mxu0 %vm1115_vm0, %v6290_v21  ;;  %v6329_v21 = vld [vmem:[%s8426_s0 + $0x1d0] sm:$0xff]  }
  0x53   :  { %5992 = vmatprep.mubr.msk.bf16.mxu0 %vm1115_vm0, %v6291_v22 }
  0x5a   :  { %5993 = vmatmul.mubr.msk.bf16.gmra.mrb[40].mxu0 %vm1115_vm0, %v6292_v23 }
  0x5b   :  { %5996 = vmatprep.mubr.msk.bf16.mxu0 %vm1115_vm0, %v6293_v24 }
  0x62   :  { %5997 = vmatmul.mubr.msk.bf16.gmra.mrb[44].mxu0 %vm1115_vm0, %v6294_v25 }
  0x63   :  { %6000 = vmatprep.mubr.msk.bf16.mxu0 %vm1115_vm0, %v6295_v26 }
  0x6a   :  { %6001 = vmatmul.mubr.msk.bf16.gmra.mrb[48].mxu0 %vm1115_vm0, %v6296_v27 }
  0x6b   :  { %6004 = vmatprep.mubr.msk.bf16.mxu0 %vm1115_vm0, %v6297_v28 }
  0x72   :  { %6005 = vmatmul.mubr.msk.bf16.gmra.mrb[52].mxu0 %vm1115_vm0, %v6298_v29 }
  0x73   :  { %6008 = vmatprep.mubr.msk.bf16.mxu0 %vm1115_vm0, %v6299_v30 }
  0x7a   :  { %6009 = vmatmul.mubr.msk.bf16.gmra.mrb[56].mxu0 %vm1115_vm0, %v6300_v31 }
  0x7b   :  { %6012 = vmatprep.mubr.msk.bf16.mxu0 %vm1115_vm0, %v6301_v32 }
  0x82   :  { %6013 = vmatmul.mubr.msk.bf16.gmra.mrb[60].mxu0 %vm1115_vm0, %v6302_v33 }
  0x83   :  { %6016 = vmatprep.mubr.msk.bf16.mxu0 %vm1115_vm0, %v6303_v34  ;;  %v6330_v34 = vld [vmem:[%s8426_s0 + $0x1d8] sm:$0xff]  }
  0x8a   :  { %6017 = vmatmul.mubr.msk.bf16.gmra.mrb[64].mxu0 %vm1115_vm0, %v6304_v35 }
  0x8b   :  { %6020 = vmatprep.mubr.msk.bf16.mxu0 %vm1115_vm0, %v6305_v36 }
  0x92   :  { %6021 = vmatmul.mubr.msk.bf16.gmra.mrb[68].mxu0 %vm1115_vm0, %v6306_v37  ;;  %v6331_v37 = vld [vmem:[%s8426_s0 + $0x1e0] sm:$0xff]  }
  0x93   :  { %6024 = vmatprep.mubr.msk.bf16.mxu0 %vm1115_vm0, %v6307_v38 }
  0x9a   :  { %6025 = vmatmul.mubr.msk.bf16.gmra.mrb[72].mxu0 %vm1115_vm0, %v6308_v39 }
  0x9b   :  { %6028 = vmatprep.mubr.msk.bf16.mxu0 %vm1115_vm0, %v6309_v40 }
  0xa2   :  { %6029 = vmatmul.mubr.msk.bf16.gmra.mrb[76].mxu0 %vm1115_vm0, %v6310_v41 }
  0xa3   :  { %6032 = vmatprep.mubr.msk.bf16.mxu0 %vm1115_vm0, %v6311_v42 }
  0xaa   :  { %6033 = vmatmul.mubr.msk.bf16.gmra.mrb[80].mxu0 %vm1115_vm0, %v6312_v43 }
  0xab   :  { %6036 = vmatprep.mubr.msk.bf16.mxu0 %vm1115_vm0, %v6313_v44 }
  0xb2   :  { %6037 = vmatmul.mubr.msk.bf16.gmra.mrb[84].mxu0 %vm1115_vm0, %v6314_v45 }
  0xb3   :  { %6040 = vmatprep.mubr.msk.bf16.mxu0 %vm1115_vm0, %v6315_v46 }
  0xba   :  { %6041 = vmatmul.mubr.msk.bf16.gmra.mrb[88].mxu0 %vm1115_vm0, %v6316_v47 }
  0xbb   :  { %6044 = vmatprep.mubr.msk.bf16.mxu0 %vm1115_vm0, %v6317_v48 }
  0xc2   :  { %6045 = vmatmul.mubr.msk.bf16.gmra.mrb[92].mxu0 %vm1115_vm0, %v6318_v49 }
  0xc3   :  { %6048 = vmatprep.mubr.msk.bf16.mxu0 %vm1115_vm0, %v6319_v50  ;;  %v6332_v50 = vld [vmem:[%s8426_s0 + $0x1e8] sm:$0xff]  }
  0xca   :  { %6049 = vmatmul.mubr.msk.bf16.gmra.mrb[96].mxu0 %vm1115_vm0, %v6320_v52 }
  0xcb   :  { %6052 = vmatprep.mubr.msk.bf16.mxu0 %vm1115_vm0, %v6321_v53  ;;  %v6333_v53 = vld [vmem:[%s8426_s0 + $0x1f0] sm:$0xff]  }
  0xd2   :  { %6053 = vmatmul.mubr.msk.bf16.gmra.mrb[100].mxu0 %vm1115_vm0, %v6322_v54 }
  0xd3   :  { %6056 = vmatprep.mubr.msk.bf16.mxu0 %vm1115_vm0, %v6323_v56 }
  0xda   :  { %6057 = vmatmul.mubr.msk.bf16.gmra.mrb[104].mxu0 %vm1115_vm0, %v6324_v58 }
  0xdb   :  { %6060 = vmatprep.mubr.msk.bf16.mxu0 %vm1115_vm0, %v6325_v61 }
  0xdd   :  { %v5954_v63 = vpop.f32.mrb[0].mxu0 }
  0xde   :  { %v1591_v0 = vadd.f32 %v5954_v63, %v6948_v62  ;;  %v1582_v1 = vpop.f32.mrb[1].mxu0 }
  0xdf   :  { %v1583_v3 = vadd.f32 %v1582_v1, %v6948_v62  ;;  %v5955_v4 = vpop.f32.mrb[2].mxu0 }
  0xe0   :  { %v1594_v6 = vadd.f32 %v5955_v4, %v6948_v62  ;;  %v1585_v7 = vpop.f32.mrb[3].mxu0  ;;  %v2735_v9 = vmax.f32 %v1591_v0, 0.0  ;;  %v6334_v4 = vld [vmem:[%s8426_s0 + $0x1f8] sm:$0xff]  }
  0xe1   :  { %v1586_v8 = vadd.f32 %v1585_v7, %v6948_v62  ;;  %v2733_v11 = vmax.f32 %v1583_v3, 0.0  ;;  %v6335_v7 = vld [vmem:[%s8426_s0 + $0x200] sm:$0xff]  }
  0xe2   :  { %v2736_v10 = vmax.f32 %v1594_v6, 0.0  ;;  %6061 = vmatmul.mubr.msk.bf16.gmra.mrb[108].mxu0 %vm1115_vm0, %v6326_v2 }
  0xe3   :  { %6064 = vmatprep.mubr.msk.bf16.mxu0 %vm1115_vm0, %v6327_v5  ;;  %v2734_v12 = vmax.f32 %v1586_v8, 0.0 }
  0xe4   :  { %v6963_v13 = vpack.c.bf16 %v2736_v10, %v2735_v9 }
  0xe5   :  { %v5958_v14 = vpop.f32.mrb[4].mxu0  ;;  %v6965_v15 = vpack.c.bf16 %v2734_v12, %v2733_v11 }
  0xe6   :  { %v1607_v16 = vadd.f32 %v5958_v14, %v6948_v62  ;;  %v1598_v17 = vpop.f32.mrb[5].mxu0 }
  0xe7   :  { %v1599_v19 = vadd.f32 %v1598_v17, %v6948_v62  ;;  %v5959_v20 = vpop.f32.mrb[6].mxu0 }
  0xe8   :  { %v1610_v22 = vadd.f32 %v5959_v20, %v6948_v62  ;;  %v1601_v23 = vpop.f32.mrb[7].mxu0  ;;  %v2739_v25 = vmax.f32 %v1607_v16, 0.0 }
  0xe9   :  { %v1602_v24 = vadd.f32 %v1601_v23, %v6948_v62  ;;  %v2737_v27 = vmax.f32 %v1599_v19, 0.0 }
  0xea   :  { %v2740_v26 = vmax.f32 %v1610_v22, 0.0  ;;  %6065 = vmatmul.mubr.msk.bf16.gmra.mrb[112].mxu0 %vm1115_vm0, %v6328_v18  ;;  %v6336_v22 = vld [vmem:[%s8426_s0 + $0x208] sm:$0xff]  }
  0xeb   :  { %v2738_v28 = vmax.f32 %v1602_v24, 0.0  ;;  %6068 = vmatprep.mubr.msk.bf16.mxu0 %vm1115_vm0, %v6329_v21 }
  0xec   :  { %v6979_v29 = vpack.c.bf16 %v2740_v26, %v2739_v25  ;;  %v6337_v25 = vld [vmem:[%s8426_s0 + $0x210] sm:$0xff]  }
  0xed   :  { %v5962_v30 = vpop.f32.mrb[8].mxu0  ;;  %v6981_v31 = vpack.c.bf16 %v2738_v28, %v2737_v27 }
  0xee   :  { %v1623_v32 = vadd.f32 %v5962_v30, %v6948_v62  ;;  %v1614_v33 = vpop.f32.mrb[9].mxu0 }
  0xef   :  { %v1615_v35 = vadd.f32 %v1614_v33, %v6948_v62  ;;  %v5963_v36 = vpop.f32.mrb[10].mxu0 }
  0xf0   :  { %v1626_v38 = vadd.f32 %v5963_v36, %v6948_v62  ;;  %v1617_v39 = vpop.f32.mrb[11].mxu0  ;;  %v2743_v41 = vmax.f32 %v1623_v32, 0.0 }
  0xf1   :  { %v1618_v40 = vadd.f32 %v1617_v39, %v6948_v62  ;;  %v2741_v43 = vmax.f32 %v1615_v35, 0.0 }
  0xf2   :  { %v2744_v42 = vmax.f32 %v1626_v38, 0.0  ;;  %6069 = vmatmul.mubr.msk.bf16.gmra.mrb[116].mxu0 %vm1115_vm0, %v6330_v34 }
  0xf3   :  { %v2742_v44 = vmax.f32 %v1618_v40, 0.0  ;;  %6072 = vmatprep.mubr.msk.bf16.mxu0 %vm1115_vm0, %v6331_v37 }
  0xf4   :  { %v6995_v45 = vpack.c.bf16 %v2744_v42, %v2743_v41  ;;  %v6339_v42 = vld [vmem:[%s8426_s0 + $0x220] sm:$0xff]  }
  0xf5   :  { %v5966_v46 = vpop.f32.mrb[12].mxu0  ;;  %v6997_v47 = vpack.c.bf16 %v2742_v44, %v2741_v43 }
  0xf6   :  { %v1639_v48 = vadd.f32 %v5966_v46, %v6948_v62  ;;  %v1630_v49 = vpop.f32.mrb[13].mxu0 }
  0xf7   :  { %v1631_v51 = vadd.f32 %v1630_v49, %v6948_v62  ;;  %v5967_v52 = vpop.f32.mrb[14].mxu0 }
  0xf8   :  { %v1642_v54 = vadd.f32 %v5967_v52, %v6948_v62  ;;  %v1633_v55 = vpop.f32.mrb[15].mxu0  ;;  %v2747_v58 = vmax.f32 %v1639_v48, 0.0 }
  0xf9   :  { %v1634_v56 = vadd.f32 %v1633_v55, %v6948_v62  ;;  %v2745_v60 = vmax.f32 %v1631_v51, 0.0 }
  0xfa   :  { %v2748_v59 = vmax.f32 %v1642_v54, 0.0  ;;  %6073 = vmatmul.mubr.msk.bf16.gmra.mrb[120].mxu0 %vm1115_vm0, %v6332_v50 }
  0xfb   :  { %v2746_v61 = vmax.f32 %v1634_v56, 0.0  ;;  %6076 = vmatprep.mubr.msk.bf16.mxu0 %vm1115_vm0, %v6333_v53 }
  0xfc   :  { %v7011_v63 = vpack.c.bf16 %v2748_v59, %v2747_v58  ;;  %v6341_v59 = vld [vmem:[%s8426_s0 + $0x230] sm:$0xff]  }
  0xfd   :  { %v5970_v0 = vpop.f32.mrb[16].mxu0  ;;  %v7013_v1 = vpack.c.bf16 %v2746_v61, %v2745_v60 }
  0xfe   :  { %v1655_v2 = vadd.f32 %v5970_v0, %v6948_v62  ;;  %v1646_v3 = vpop.f32.mrb[17].mxu0 }
  0xff   :  { %v5971_v5 = vpop.f32.mrb[18].mxu0  ;;  %v1647_v6 = vadd.f32 %v1646_v3, %v6948_v62 }
 0x100   :  { %v1658_v8 = vadd.f32 %v5971_v5, %v6948_v62  ;;  %v1649_v9 = vpop.f32.mrb[19].mxu0  ;;  %v2751_v11 = vmax.f32 %v1655_v2, 0.0 }
 0x101   :  { %v1650_v10 = vadd.f32 %v1649_v9, %v6948_v62  ;;  %v2749_v14 = vmax.f32 %v1647_v6, 0.0 }
 0x102   :  { %v2752_v12 = vmax.f32 %v1658_v8, 0.0  ;;  %6077 = vmatmul.mubr.msk.bf16.gmra.mrb[124].mxu0 %vm1115_vm0, %v6334_v4 }
 0x103   :  { %v2750_v16 = vmax.f32 %v1650_v10, 0.0  ;;  %6080 = vmatprep.mubr.msk.bf16.mxu0 %vm1115_vm0, %v6335_v7 }
 0x104   :  { %v3048_v17 = vpack.c.bf16 %v2752_v12, %v2751_v11  ;;  %v6343_v12 = vld [vmem:[%s8426_s0 + $0x240] sm:$0xff]  }
 0x105   :  { %v5974_v18 = vpop.f32.mrb[20].mxu0  ;;  %v3047_v19 = vpack.c.bf16 %v2750_v16, %v2749_v14 }
 0x106   :  { %v1671_v20 = vadd.f32 %v5974_v18, %v6948_v62  ;;  %v1662_v21 = vpop.f32.mrb[21].mxu0 }
 0x107   :  { %v1663_v23 = vadd.f32 %v1662_v21, %v6948_v62  ;;  %v5975_v24 = vpop.f32.mrb[22].mxu0  ;;  %5712 = vmatprep.subr.bf16.mxu1 %v3047_v19  ;;  %v6351_v21 = vld [vmem:[%s8427_s2] ss:$72 sps:$4 sm:$0xff]  }
 0x108   :  { %v1674_v26 = vadd.f32 %v5975_v24, %v6948_v62  ;;  %v1665_v27 = vpop.f32.mrb[23].mxu0  ;;  %5713 = vmatpush3.bf16.msra.mxu1 %v6965_v15  ;;  %v2755_v30 = vmax.f32 %v1671_v20, 0.0  ;;  %v6338_v15 = vld [vmem:[%s8426_s0 + $0x218] sm:$0xff]  }
 0x109   :  { %v1666_v28 = vadd.f32 %v1665_v27, %v6948_v62  ;;  %5714 = vmatprep.subr.bf16.mxu1 %v3048_v17  ;;  %v2753_v33 = vmax.f32 %v1663_v23, 0.0  ;;  %v6344_v27 = vld [vmem:[%s8426_s0 + $0x248] sm:$0xff]  }
 0x10a   :  { %v2756_v32 = vmax.f32 %v1674_v26, 0.0  ;;  %6081 = vmatmul.mubr.msk.bf16.gmra.mrb[128].mxu0 %vm1115_vm0, %v6336_v22 }
 0x10b   :  { %v2754_v34 = vmax.f32 %v1666_v28, 0.0  ;;  %6084 = vmatprep.mubr.msk.bf16.mxu0 %vm1115_vm0, %v6337_v25 }
 0x10c   :  { %5715 = vmatpush3.bf16.msra.mxu1 %v6963_v13  ;;  %v3050_v35 = vpack.c.bf16 %v2756_v32, %v2755_v30 }
 0x10d   :  { %v5978_v36 = vpop.f32.mrb[24].mxu0  ;;  %v3049_v37 = vpack.c.bf16 %v2754_v34, %v2753_v33 }
 0x10e   :  { %v1687_v38 = vadd.f32 %v5978_v36, %v6948_v62  ;;  %v1678_v39 = vpop.f32.mrb[25].mxu0 }
 0x10f   :  { %v1679_v40 = vadd.f32 %v1678_v39, %v6948_v62  ;;  %v5979_v41 = vpop.f32.mrb[26].mxu0  ;;  %5716 = vmatprep.subr.bf16.mxu1 %v3049_v37 }
 0x110   :  { %v1690_v13 = vadd.f32 %v5979_v41, %v6948_v62  ;;  %v1681_v43 = vpop.f32.mrb[27].mxu0  ;;  %5717 = vmatpush3.bf16.msra.mxu1 %v6981_v31  ;;  %v2759_v46 = vmax.f32 %v1687_v38, 0.0  ;;  %v6340_v31 = vld [vmem:[%s8426_s0 + $0x228] sm:$0xff]  }
 0x111   :  { %v1682_v44 = vadd.f32 %v1681_v43, %v6948_v62  ;;  %5718 = vmatprep.subr.bf16.mxu1 %v3050_v35  ;;  %v2757_v49 = vmax.f32 %v1679_v40, 0.0 }
 0x112   :  { %v2760_v48 = vmax.f32 %v1690_v13, 0.0  ;;  %6085 = vmatmul.mubr.msk.bf16.gmra.mrb[132].mxu0 %vm1115_vm0, %v6338_v15  ;;  %v6346_v13 = vld [vmem:[%s8426_s0 + $0x258] sm:$0xff]  }
 0x113   :  { %v2758_v50 = vmax.f32 %v1682_v44, 0.0  ;;  %6088 = vmatprep.mubr.msk.bf16.mxu0 %vm1115_vm0, %v6339_v42 }
 0x114   :  { %5719 = vmatpush3.bf16.msra.mxu1 %v6979_v29  ;;  %v3052_v51 = vpack.c.bf16 %v2760_v48, %v2759_v46  ;;  %v6347_v46 = vld [vmem:[%s8426_s0 + $0x260] sm:$0xff]  }
 0x115   :  { %v5982_v52 = vpop.f32.mrb[28].mxu0  ;;  %v3051_v53 = vpack.c.bf16 %v2758_v50, %v2757_v49 }
 0x116   :  { %v1703_v54 = vadd.f32 %v5982_v52, %v6948_v62  ;;  %v1694_v55 = vpop.f32.mrb[29].mxu0 }
 0x117   :  { %v1695_v56 = vadd.f32 %v1694_v55, %v6948_v62  ;;  %v5983_v58 = vpop.f32.mrb[30].mxu0  ;;  %5720 = vmatprep.subr.bf16.mxu1 %v3051_v53 }
 0x118   :  { %v1706_v29 = vadd.f32 %v5983_v58, %v6948_v62  ;;  %v1697_v60 = vpop.f32.mrb[31].mxu0  ;;  %5721 = vmatpush3.bf16.msra.mxu1 %v6997_v47  ;;  %v2763_v0 = vmax.f32 %v1703_v54, 0.0  ;;  %v6342_v47 = vld [vmem:[%s8426_s0 + $0x238] sm:$0xff]  }
 0x119   :  { %v1698_v61 = vadd.f32 %v1697_v60, %v6948_v62  ;;  %5722 = vmatprep.subr.bf16.mxu1 %v3052_v51  ;;  %v2761_v3 = vmax.f32 %v1695_v56, 0.0 }
 0x11a   :  { %v2764_v2 = vmax.f32 %v1706_v29, 0.0  ;;  %6089 = vmatmul.mubr.msk.bf16.gmra.mrb[136].mxu0 %vm1115_vm0, %v6340_v31  ;;  %v6348_v29 = vld [vmem:[%s8426_s0 + $0x268] sm:$0xff]  }
 0x11b   :  { %v2762_v4 = vmax.f32 %v1698_v61, 0.0  ;;  %6092 = vmatprep.mubr.msk.bf16.mxu0 %vm1115_vm0, %v6341_v59 }
 0x11c   :  { %5723 = vmatpush3.bf16.msra.mxu1 %v6995_v45  ;;  %v3054_v5 = vpack.c.bf16 %v2764_v2, %v2763_v0  ;;  %v6349_v0 = vld [vmem:[%s8426_s0 + $0x270] sm:$0xff]  }
 0x11d   :  { %v5986_v6 = vpop.f32.mrb[32].mxu0  ;;  %v3053_v7 = vpack.c.bf16 %v2762_v4, %v2761_v3 }
 0x11e   :  { %v1719_v8 = vadd.f32 %v5986_v6, %v6948_v62  ;;  %v1710_v9 = vpop.f32.mrb[33].mxu0 }
 0x11f   :  { %v1711_v10 = vadd.f32 %v1710_v9, %v6948_v62  ;;  %v5987_v11 = vpop.f32.mrb[34].mxu0  ;;  %5724 = vmatprep.subr.bf16.mxu1 %v3053_v7 }
 0x120   :  { %v1722_v45 = vadd.f32 %v5987_v11, %v6948_v62  ;;  %v1713_v14 = vpop.f32.mrb[35].mxu0  ;;  %5725 = vmatpush3.bf16.msra.mxu1 %v7013_v1  ;;  %v2767_v17 = vmax.f32 %v1719_v8, 0.0  ;;  %v6372_v1 = vld [vmem:[%s8427_s2 + $0xc] ss:$72 sps:$4 sm:$0xff]  }
 0x121   :  { %v1714_v16 = vadd.f32 %v1713_v14, %v6948_v62  ;;  %5726 = vmatprep.subr.bf16.mxu1 %v3054_v5  ;;  %v2765_v19 = vmax.f32 %v1711_v10, 0.0 }
 0x122   :  { %v2768_v18 = vmax.f32 %v1722_v45, 0.0  ;;  %6093 = vmatmul.mubr.msk.bf16.gmra.mrb[140].mxu0 %vm1115_vm0, %v6342_v47  ;;  %v6350_v45 = vld [vmem:[%s8426_s0 + $0x278] sm:$0xff]  }
 0x123   :  { %v2766_v20 = vmax.f32 %v1714_v16, 0.0  ;;  %6096 = vmatprep.mubr.msk.bf16.mxu0 %vm1115_vm0, %v6343_v12 }
 0x124   :  { %v7085_v22 = vpack.c.bf16 %v2768_v18, %v2767_v17  ;;  %5727 = vmatpush3.bf16.msra.mxu1 %v7011_v63  ;;  %v6345_v63 = vld [vmem:[%s8426_s0 + $0x250] sm:$0xff]   ;;  %v6354_v17 = vld [vmem:[%s8426_s0 + $0x280] sm:$0xff]  }
 0x125   :  { %v7091_v23 = vpack.c.bf16 %v2766_v20, %v2765_v19  ;;  %v5990_v24 = vpop.f32.mrb[36].mxu0 }
 0x126   :  { %v1735_v25 = vadd.f32 %v5990_v24, %v6948_v62  ;;  %v1726_v26 = vpop.f32.mrb[37].mxu0 }
 0x127   :  { %v1727_v28 = vadd.f32 %v1726_v26, %v6948_v62  ;;  %v5991_v30 = vpop.f32.mrb[38].mxu0  ;;  %3306 = vmatmul.mubr.bf16.vlgmr.msra.gmra.mrb[0].mxu1 %v6351_v21 }
 0x128   :  { %v1738_v32 = vadd.f32 %v5991_v30, %v6948_v62  ;;  %v1729_v33 = vpop.f32.mrb[39].mxu0  ;;  %3346 = vmatprep.mubr.bf16.mxu1 %v6372_v1  ;;  %v2771_v35 = vmax.f32 %v1735_v25, 0.0 }
 0x129   :  { %v1730_v34 = vadd.f32 %v1729_v33, %v6948_v62  ;;  %v2769_v37 = vmax.f32 %v1727_v28, 0.0 }
 0x12a   :  { %v2772_v36 = vmax.f32 %v1738_v32, 0.0  ;;  %6097 = vmatmul.mubr.msk.bf16.gmra.mrb[144].mxu0 %vm1115_vm0, %v6344_v27  ;;  %v6355_v32 = vld [vmem:[%s8426_s0 + $0x288] sm:$0xff]  }
 0x12b   :  { %v2770_v38 = vmax.f32 %v1730_v34, 0.0  ;;  %6100 = vmatprep.mubr.msk.bf16.mxu0 %vm1115_vm0, %v6345_v63 }
 0x12c   :  { %v7105_v39 = vpack.c.bf16 %v2772_v36, %v2771_v35  ;;  %v6356_v35 = vld [vmem:[%s8426_s0 + $0x290] sm:$0xff]  }
 0x12d   :  { %v7107_v15 = vpack.c.bf16 %v2770_v38, %v2769_v37  ;;  %v5994_v40 = vpop.f32.mrb[40].mxu0 }
 0x12e   :  { %v1751_v41 = vadd.f32 %v5994_v40, %v6948_v62  ;;  %v1742_v42 = vpop.f32.mrb[41].mxu0 }
 0x12f   :  { %v1743_v43 = vadd.f32 %v1742_v42, %v6948_v62  ;;  %v5995_v44 = vpop.f32.mrb[42].mxu0 }
 0x130   :  { %v1754_v48 = vadd.f32 %v5995_v44, %v6948_v62  ;;  %v1745_v49 = vpop.f32.mrb[43].mxu0  ;;  %v2775_v51 = vmax.f32 %v1751_v41, 0.0 }
 0x131   :  { %v1746_v50 = vadd.f32 %v1745_v49, %v6948_v62  ;;  %v2773_v53 = vmax.f32 %v1743_v43, 0.0 }
 0x132   :  { %v2776_v52 = vmax.f32 %v1754_v48, 0.0  ;;  %6101 = vmatmul.mubr.msk.bf16.gmra.mrb[148].mxu0 %vm1115_vm0, %v6346_v13 }
 0x133   :  { %v2774_v54 = vmax.f32 %v1746_v50, 0.0  ;;  %6104 = vmatprep.mubr.msk.bf16.mxu0 %vm1115_vm0, %v6347_v46 }
 0x134   :  { %v7121_v55 = vpack.c.bf16 %v2776_v52, %v2775_v51  ;;  %v6358_v52 = vld [vmem:[%s8426_s0 + $0x2a0] sm:$0xff]  }
 0x135   :  { %v7123_v31 = vpack.c.bf16 %v2774_v54, %v2773_v53  ;;  %v5998_v56 = vpop.f32.mrb[44].mxu0 }
 0x136   :  { %v1767_v58 = vadd.f32 %v5998_v56, %v6948_v62  ;;  %v1758_v59 = vpop.f32.mrb[45].mxu0 }
 0x137   :  { %v1759_v60 = vadd.f32 %v1758_v59, %v6948_v62  ;;  %v5999_v61 = vpop.f32.mrb[46].mxu0 }
 0x138   :  { %v1770_v2 = vadd.f32 %v5999_v61, %v6948_v62  ;;  %v1761_v3 = vpop.f32.mrb[47].mxu0  ;;  %v2779_v5 = vmax.f32 %v1767_v58, 0.0 }
 0x139   :  { %v1762_v4 = vadd.f32 %v1761_v3, %v6948_v62  ;;  %v2777_v7 = vmax.f32 %v1759_v60, 0.0 }
 0x13a   :  { %v2780_v6 = vmax.f32 %v1770_v2, 0.0  ;;  %6105 = vmatmul.mubr.msk.bf16.gmra.mrb[152].mxu0 %vm1115_vm0, %v6348_v29 }
 0x13b   :  { %v2778_v8 = vmax.f32 %v1762_v4, 0.0  ;;  %6108 = vmatprep.mubr.msk.bf16.mxu0 %vm1115_vm0, %v6349_v0 }
 0x13c   :  { %v7137_v9 = vpack.c.bf16 %v2780_v6, %v2779_v5  ;;  %v6360_v6 = vld [vmem:[%s8426_s0 + $0x2b0] sm:$0xff]  }
 0x13d   :  { %v7139_v47 = vpack.c.bf16 %v2778_v8, %v2777_v7  ;;  %v6002_v10 = vpop.f32.mrb[48].mxu0 }
 0x13e   :  { %v1783_v11 = vadd.f32 %v6002_v10, %v6948_v62  ;;  %v1774_v12 = vpop.f32.mrb[49].mxu0 }
 0x13f   :  { %v1775_v14 = vadd.f32 %v1774_v12, %v6948_v62  ;;  %v6003_v16 = vpop.f32.mrb[50].mxu0 }
 0x140   :  { %v1786_v18 = vadd.f32 %v6003_v16, %v6948_v62  ;;  %v1777_v19 = vpop.f32.mrb[51].mxu0  ;;  %v2783_v21 = vmax.f32 %v1783_v11, 0.0 }
 0x141   :  { %v1778_v20 = vadd.f32 %v1777_v19, %v6948_v62  ;;  %v2781_v24 = vmax.f32 %v1775_v14, 0.0 }
 0x142   :  { %v2784_v1 = vmax.f32 %v1786_v18, 0.0  ;;  %6109 = vmatmul.mubr.msk.bf16.gmra.mrb[156].mxu0 %vm1115_vm0, %v6350_v45 }
 0x143   :  { %v2782_v25 = vmax.f32 %v1778_v20, 0.0  ;;  %6112 = vmatprep.mubr.msk.bf16.mxu0 %vm1115_vm0, %v6354_v17 }
 0x144   :  { %v3064_v26 = vpack.c.bf16 %v2784_v1, %v2783_v21  ;;  %v6362_v1 = vld [vmem:[%s8426_s0 + $0x2c0] sm:$0xff]  }
 0x145   :  { %v3063_v27 = vpack.c.bf16 %v2782_v25, %v2781_v24  ;;  %v6006_v28 = vpop.f32.mrb[52].mxu0 }
 0x146   :  { %v1799_v30 = vadd.f32 %v6006_v28, %v6948_v62  ;;  %v1790_v63 = vpop.f32.mrb[53].mxu0 }
 0x147   :  { %v1791_v33 = vadd.f32 %v1790_v63, %v6948_v62  ;;  %v6007_v34 = vpop.f32.mrb[54].mxu0  ;;  %5734 = vmatprep.subr.bf16.mxu1 %v3063_v27  ;;  %v6370_v63 = vld [vmem:[%s8427_s2 + $0x8] ss:$72 sps:$4 sm:$0xff]  }
 0x148   :  { %v1802_v36 = vadd.f32 %v6007_v34, %v6948_v62  ;;  %v1793_v37 = vpop.f32.mrb[55].mxu0  ;;  %5735 = vmatpush3.bf16.msra.mxu1 %v7091_v23  ;;  %v2787_v40 = vmax.f32 %v1799_v30, 0.0  ;;  %v6357_v23 = vld [vmem:[%s8426_s0 + $0x298] sm:$0xff]  }
 0x149   :  { %v1794_v38 = vadd.f32 %v1793_v37, %v6948_v62  ;;  %5736 = vmatprep.subr.bf16.mxu1 %v3064_v26  ;;  %v2785_v42 = vmax.f32 %v1791_v33, 0.0  ;;  %v6363_v37 = vld [vmem:[%s8426_s0 + $0x2c8] sm:$0xff]  }
 0x14a   :  { %v2788_v41 = vmax.f32 %v1802_v36, 0.0  ;;  %6113 = vmatmul.mubr.msk.bf16.gmra.mrb[160].mxu0 %vm1115_vm0, %v6355_v32 }
 0x14b   :  { %v2786_v13 = vmax.f32 %v1794_v38, 0.0  ;;  %6116 = vmatprep.mubr.msk.bf16.mxu0 %vm1115_vm0, %v6356_v35 }
 0x14c   :  { %v3066_v43 = vpack.c.bf16 %v2788_v41, %v2787_v40  ;;  %5737 = vmatpush3.bf16.msra.mxu1 %v7085_v22 }
 0x14d   :  { %v3065_v44 = vpack.c.bf16 %v2786_v13, %v2785_v42  ;;  %v6010_v46 = vpop.f32.mrb[56].mxu0 }
 0x14e   :  { %v1815_v48 = vadd.f32 %v6010_v46, %v6948_v62  ;;  %v1806_v49 = vpop.f32.mrb[57].mxu0 }
 0x14f   :  { %v1807_v50 = vadd.f32 %v1806_v49, %v6948_v62  ;;  %v6011_v51 = vpop.f32.mrb[58].mxu0  ;;  %5738 = vmatprep.subr.bf16.mxu1 %v3065_v44 }
 0x150   :  { %v1818_v53 = vadd.f32 %v6011_v51, %v6948_v62  ;;  %v1809_v22 = vpop.f32.mrb[59].mxu0  ;;  %5739 = vmatpush3.bf16.msra.mxu1 %v7107_v15  ;;  %v2791_v56 = vmax.f32 %v1815_v48, 0.0  ;;  %v6359_v15 = vld [vmem:[%s8426_s0 + $0x2a8] sm:$0xff]  }
 0x151   :  { %v1810_v54 = vadd.f32 %v1809_v22, %v6948_v62  ;;  %5740 = vmatprep.subr.bf16.mxu1 %v3066_v43  ;;  %v2789_v59 = vmax.f32 %v1807_v50, 0.0 }
 0x152   :  { %v2792_v58 = vmax.f32 %v1818_v53, 0.0  ;;  %6117 = vmatmul.mubr.msk.bf16.gmra.mrb[164].mxu0 %vm1115_vm0, %v6357_v23  ;;  %v6365_v53 = vld [vmem:[%s8426_s0 + $0x2d8] sm:$0xff]  }
 0x153   :  { %v2790_v29 = vmax.f32 %v1810_v54, 0.0  ;;  %6120 = vmatprep.mubr.msk.bf16.mxu0 %vm1115_vm0, %v6358_v52 }
 0x154   :  { %v3068_v60 = vpack.c.bf16 %v2792_v58, %v2791_v56  ;;  %5741 = vmatpush3.bf16.msra.mxu1 %v7105_v39  ;;  %v6366_v56 = vld [vmem:[%s8426_s0 + $0x2e0] sm:$0xff]  }
 0x155   :  { %v3067_v61 = vpack.c.bf16 %v2790_v29, %v2789_v59  ;;  %v6014_v0 = vpop.f32.mrb[60].mxu0 }
 0x156   :  { %v1831_v2 = vadd.f32 %v6014_v0, %v6948_v62  ;;  %v1822_v3 = vpop.f32.mrb[61].mxu0 }
 0x157   :  { %v1823_v4 = vadd.f32 %v1822_v3, %v6948_v62  ;;  %v6015_v5 = vpop.f32.mrb[62].mxu0  ;;  %5742 = vmatprep.subr.bf16.mxu1 %v3067_v61 }
 0x158   :  { %v1834_v7 = vadd.f32 %v6015_v5, %v6948_v62  ;;  %v1825_v39 = vpop.f32.mrb[63].mxu0  ;;  %5743 = vmatpush3.bf16.msra.mxu1 %v7123_v31  ;;  %v2795_v10 = vmax.f32 %v1831_v2, 0.0  ;;  %v6361_v31 = vld [vmem:[%s8426_s0 + $0x2b8] sm:$0xff]  }
 0x159   :  { %v1826_v8 = vadd.f32 %v1825_v39, %v6948_v62  ;;  %5744 = vmatprep.subr.bf16.mxu1 %v3068_v60  ;;  %v2793_v12 = vmax.f32 %v1823_v4, 0.0 }
 0x15a   :  { %v2796_v11 = vmax.f32 %v1834_v7, 0.0  ;;  %6121 = vmatmul.mubr.msk.bf16.gmra.mrb[168].mxu0 %vm1115_vm0, %v6359_v15  ;;  %v6367_v7 = vld [vmem:[%s8426_s0 + $0x2e8] sm:$0xff]  }
 0x15b   :  { %v2794_v45 = vmax.f32 %v1826_v8, 0.0  ;;  %6124 = vmatprep.mubr.msk.bf16.mxu0 %vm1115_vm0, %v6360_v6 }
 0x15c   :  { %v3070_v14 = vpack.c.bf16 %v2796_v11, %v2795_v10  ;;  %5745 = vmatpush3.bf16.msra.mxu1 %v7121_v55  ;;  %v6368_v10 = vld [vmem:[%s8426_s0 + $0x2f0] sm:$0xff]  }
 0x15d   :  { %v3069_v16 = vpack.c.bf16 %v2794_v45, %v2793_v12  ;;  %v6018_v17 = vpop.f32.mrb[64].mxu0 }
 0x15e   :  { %v1847_v18 = vadd.f32 %v6018_v17, %v6948_v62  ;;  %v1838_v19 = vpop.f32.mrb[65].mxu0 }
 0x15f   :  { %v1839_v20 = vadd.f32 %v1838_v19, %v6948_v62  ;;  %v6019_v21 = vpop.f32.mrb[66].mxu0  ;;  %5746 = vmatprep.subr.bf16.mxu1 %v3069_v16 }
 0x160   :  { %v1850_v24 = vadd.f32 %v6019_v21, %v6948_v62  ;;  %v1841_v55 = vpop.f32.mrb[67].mxu0  ;;  %5747 = vmatpush3.bf16.msra.mxu1 %v7139_v47  ;;  %v2799_v26 = vmax.f32 %v1847_v18, 0.0  ;;  %v6391_v47 = vld [vmem:[%s8427_s2 + $0x14] ss:$72 sps:$4 sm:$0xff]  }
 0x161   :  { %v1842_v25 = vadd.f32 %v1841_v55, %v6948_v62  ;;  %5748 = vmatprep.subr.bf16.mxu1 %v3070_v14  ;;  %v2797_v28 = vmax.f32 %v1839_v20, 0.0 }
 0x162   :  { %v2800_v27 = vmax.f32 %v1850_v24, 0.0  ;;  %6125 = vmatmul.mubr.msk.bf16.gmra.mrb[172].mxu0 %vm1115_vm0, %v6361_v31  ;;  %v6369_v24 = vld [vmem:[%s8426_s0 + $0x2f8] sm:$0xff]  }
 0x163   :  { %v2798_v30 = vmax.f32 %v1842_v25, 0.0  ;;  %6128 = vmatprep.mubr.msk.bf16.mxu0 %vm1115_vm0, %v6362_v1 }
 0x164   :  { %v7211_v32 = vpack.c.bf16 %v2800_v27, %v2799_v26  ;;  %5749 = vmatpush3.bf16.msra.mxu1 %v7137_v9  ;;  %v6364_v9 = vld [vmem:[%s8426_s0 + $0x2d0] sm:$0xff]   ;;  %v6373_v26 = vld [vmem:[%s8426_s0 + $0x300] sm:$0xff]  }
 0x165   :  { %v7217_v33 = vpack.c.bf16 %v2798_v30, %v2797_v28  ;;  %v6022_v34 = vpop.f32.mrb[68].mxu0 }
 0x166   :  { %v1863_v35 = vadd.f32 %v6022_v34, %v6948_v62  ;;  %v1854_v36 = vpop.f32.mrb[69].mxu0 }
 0x167   :  { %v1855_v38 = vadd.f32 %v1854_v36, %v6948_v62  ;;  %v6023_v40 = vpop.f32.mrb[70].mxu0  ;;  %3347 = vmatmul.mubr.bf16.vlgmr.msra.gmra.mrb[4].mxu1 %v6370_v63 }
 0x168   :  { %v1866_v41 = vadd.f32 %v6023_v40, %v6948_v62  ;;  %v1857_v42 = vpop.f32.mrb[71].mxu0  ;;  %3387 = vmatprep.mubr.bf16.mxu1 %v6391_v47  ;;  %v2803_v43 = vmax.f32 %v1863_v35, 0.0 }
 0x169   :  { %v1858_v13 = vadd.f32 %v1857_v42, %v6948_v62  ;;  %v2801_v46 = vmax.f32 %v1855_v38, 0.0 }
 0x16a   :  { %v2804_v44 = vmax.f32 %v1866_v41, 0.0  ;;  %6129 = vmatmul.mubr.msk.bf16.gmra.mrb[176].mxu0 %vm1115_vm0, %v6363_v37  ;;  %v6374_v41 = vld [vmem:[%s8426_s0 + $0x308] sm:$0xff]  }
 0x16b   :  { %v2802_v48 = vmax.f32 %v1858_v13, 0.0  ;;  %6132 = vmatprep.mubr.msk.bf16.mxu0 %vm1115_vm0, %v6364_v9 }
 0x16c   :  { %v7231_v49 = vpack.c.bf16 %v2804_v44, %v2803_v43  ;;  %v6375_v43 = vld [vmem:[%s8426_s0 + $0x310] sm:$0xff]  }
 0x16d   :  { %v7233_v23 = vpack.c.bf16 %v2802_v48, %v2801_v46  ;;  %v6026_v50 = vpop.f32.mrb[72].mxu0 }
 0x16e   :  { %v1879_v51 = vadd.f32 %v6026_v50, %v6948_v62  ;;  %v1870_v52 = vpop.f32.mrb[73].mxu0 }
 0x16f   :  { %v1871_v22 = vadd.f32 %v1870_v52, %v6948_v62  ;;  %v6027_v54 = vpop.f32.mrb[74].mxu0 }
 0x170   :  { %v1882_v58 = vadd.f32 %v6027_v54, %v6948_v62  ;;  %v1873_v59 = vpop.f32.mrb[75].mxu0  ;;  %v2807_v60 = vmax.f32 %v1879_v51, 0.0 }
 0x171   :  { %v1874_v29 = vadd.f32 %v1873_v59, %v6948_v62  ;;  %v2805_v0 = vmax.f32 %v1871_v22, 0.0 }
 0x172   :  { %v2808_v61 = vmax.f32 %v1882_v58, 0.0  ;;  %6133 = vmatmul.mubr.msk.bf16.gmra.mrb[180].mxu0 %vm1115_vm0, %v6365_v53 }
 0x173   :  { %v2806_v2 = vmax.f32 %v1874_v29, 0.0  ;;  %6136 = vmatprep.mubr.msk.bf16.mxu0 %vm1115_vm0, %v6366_v56 }
 0x174   :  { %v7247_v3 = vpack.c.bf16 %v2808_v61, %v2807_v60  ;;  %v6377_v61 = vld [vmem:[%s8426_s0 + $0x320] sm:$0xff]  }
 0x175   :  { %v7249_v15 = vpack.c.bf16 %v2806_v2, %v2805_v0  ;;  %v6030_v4 = vpop.f32.mrb[76].mxu0 }
 0x176   :  { %v1895_v5 = vadd.f32 %v6030_v4, %v6948_v62  ;;  %v1886_v6 = vpop.f32.mrb[77].mxu0 }
 0x177   :  { %v1887_v39 = vadd.f32 %v1886_v6, %v6948_v62  ;;  %v6031_v8 = vpop.f32.mrb[78].mxu0 }
 0x178   :  { %v1898_v11 = vadd.f32 %v6031_v8, %v6948_v62  ;;  %v1889_v12 = vpop.f32.mrb[79].mxu0  ;;  %v2811_v14 = vmax.f32 %v1895_v5, 0.0 }
 0x179   :  { %v1890_v45 = vadd.f32 %v1889_v12, %v6948_v62  ;;  %v2809_v17 = vmax.f32 %v1887_v39, 0.0 }
 0x17a   :  { %v2812_v16 = vmax.f32 %v1898_v11, 0.0  ;;  %6137 = vmatmul.mubr.msk.bf16.gmra.mrb[184].mxu0 %vm1115_vm0, %v6367_v7 }
 0x17b   :  { %v2810_v18 = vmax.f32 %v1890_v45, 0.0  ;;  %6140 = vmatprep.mubr.msk.bf16.mxu0 %vm1115_vm0, %v6368_v10 }
 0x17c   :  { %v7263_v19 = vpack.c.bf16 %v2812_v16, %v2811_v14  ;;  %v6379_v16 = vld [vmem:[%s8426_s0 + $0x330] sm:$0xff]  }
 0x17d   :  { %v7265_v31 = vpack.c.bf16 %v2810_v18, %v2809_v17  ;;  %v6034_v20 = vpop.f32.mrb[80].mxu0 }
 0x17e   :  { %v1911_v21 = vadd.f32 %v6034_v20, %v6948_v62  ;;  %v1902_v1 = vpop.f32.mrb[81].mxu0 }
 0x17f   :  { %v1903_v55 = vadd.f32 %v1902_v1, %v6948_v62  ;;  %v6035_v25 = vpop.f32.mrb[82].mxu0 }
 0x180   :  { %v1914_v27 = vadd.f32 %v6035_v25, %v6948_v62  ;;  %v1905_v28 = vpop.f32.mrb[83].mxu0  ;;  %v2815_v63 = vmax.f32 %v1911_v21, 0.0 }
 0x181   :  { %v1906_v30 = vadd.f32 %v1905_v28, %v6948_v62  ;;  %v2813_v34 = vmax.f32 %v1903_v55, 0.0 }
 0x182   :  { %v2816_v47 = vmax.f32 %v1914_v27, 0.0  ;;  %6141 = vmatmul.mubr.msk.bf16.gmra.mrb[188].mxu0 %vm1115_vm0, %v6369_v24 }
 0x183   :  { %v2814_v35 = vmax.f32 %v1906_v30, 0.0  ;;  %6144 = vmatprep.mubr.msk.bf16.mxu0 %vm1115_vm0, %v6373_v26 }
 0x184   :  { %v3080_v36 = vpack.c.bf16 %v2816_v47, %v2815_v63  ;;  %v6381_v47 = vld [vmem:[%s8426_s0 + $0x340] sm:$0xff]  }
 0x185   :  { %v3079_v37 = vpack.c.bf16 %v2814_v35, %v2813_v34  ;;  %v6038_v38 = vpop.f32.mrb[84].mxu0 }
 0x186   :  { %v1927_v40 = vadd.f32 %v6038_v38, %v6948_v62  ;;  %v1918_v9 = vpop.f32.mrb[85].mxu0 }
 0x187   :  { %v1919_v42 = vadd.f32 %v1918_v9, %v6948_v62  ;;  %v6039_v13 = vpop.f32.mrb[86].mxu0  ;;  %5756 = vmatprep.subr.bf16.mxu1 %v3079_v37  ;;  %v6389_v9 = vld [vmem:[%s8427_s2 + $0x10] ss:$72 sps:$4 sm:$0xff]  }
 0x188   :  { %v1930_v44 = vadd.f32 %v6039_v13, %v6948_v62  ;;  %v1921_v46 = vpop.f32.mrb[87].mxu0  ;;  %5757 = vmatpush3.bf16.msra.mxu1 %v7217_v33  ;;  %v2819_v50 = vmax.f32 %v1927_v40, 0.0  ;;  %v6376_v33 = vld [vmem:[%s8426_s0 + $0x318] sm:$0xff]  }
 0x189   :  { %v1922_v48 = vadd.f32 %v1921_v46, %v6948_v62  ;;  %5758 = vmatprep.subr.bf16.mxu1 %v3080_v36  ;;  %v2817_v52 = vmax.f32 %v1919_v42, 0.0  ;;  %v6382_v46 = vld [vmem:[%s8426_s0 + $0x348] sm:$0xff]  }
 0x18a   :  { %v2820_v51 = vmax.f32 %v1930_v44, 0.0  ;;  %6145 = vmatmul.mubr.msk.bf16.gmra.mrb[192].mxu0 %vm1115_vm0, %v6374_v41 }
 0x18b   :  { %v2818_v53 = vmax.f32 %v1922_v48, 0.0  ;;  %6148 = vmatprep.mubr.msk.bf16.mxu0 %vm1115_vm0, %v6375_v43 }
 0x18c   :  { %v3082_v22 = vpack.c.bf16 %v2820_v51, %v2819_v50  ;;  %5759 = vmatpush3.bf16.msra.mxu1 %v7211_v32 }
 0x18d   :  { %v3081_v54 = vpack.c.bf16 %v2818_v53, %v2817_v52  ;;  %v6042_v56 = vpop.f32.mrb[88].mxu0 }
 0x18e   :  { %v1943_v58 = vadd.f32 %v6042_v56, %v6948_v62  ;;  %v1934_v59 = vpop.f32.mrb[89].mxu0 }
 0x18f   :  { %v1935_v29 = vadd.f32 %v1934_v59, %v6948_v62  ;;  %v6043_v60 = vpop.f32.mrb[90].mxu0  ;;  %5760 = vmatprep.subr.bf16.mxu1 %v3081_v54 }
 0x190   :  { %v1946_v0 = vadd.f32 %v6043_v60, %v6948_v62  ;;  %v1937_v32 = vpop.f32.mrb[91].mxu0  ;;  %5761 = vmatpush3.bf16.msra.mxu1 %v7233_v23  ;;  %v2823_v4 = vmax.f32 %v1943_v58, 0.0  ;;  %v6378_v23 = vld [vmem:[%s8426_s0 + $0x328] sm:$0xff]  }
 0x191   :  { %v1938_v2 = vadd.f32 %v1937_v32, %v6948_v62  ;;  %5762 = vmatprep.subr.bf16.mxu1 %v3082_v22  ;;  %v2821_v6 = vmax.f32 %v1935_v29, 0.0 }
 0x192   :  { %v2824_v5 = vmax.f32 %v1946_v0, 0.0  ;;  %6149 = vmatmul.mubr.msk.bf16.gmra.mrb[196].mxu0 %vm1115_vm0, %v6376_v33  ;;  %v6384_v0 = vld [vmem:[%s8426_s0 + $0x358] sm:$0xff]  }
 0x193   :  { %v2822_v7 = vmax.f32 %v1938_v2, 0.0  ;;  %6152 = vmatprep.mubr.msk.bf16.mxu0 %vm1115_vm0, %v6377_v61 }
 0x194   :  { %v3084_v39 = vpack.c.bf16 %v2824_v5, %v2823_v4  ;;  %5763 = vmatpush3.bf16.msra.mxu1 %v7231_v49  ;;  %v6385_v4 = vld [vmem:[%s8426_s0 + $0x360] sm:$0xff]  }
 0x195   :  { %v3083_v8 = vpack.c.bf16 %v2822_v7, %v2821_v6  ;;  %v6046_v10 = vpop.f32.mrb[92].mxu0 }
 0x196   :  { %v1959_v11 = vadd.f32 %v6046_v10, %v6948_v62  ;;  %v1950_v12 = vpop.f32.mrb[93].mxu0 }
 0x197   :  { %v1951_v45 = vadd.f32 %v1950_v12, %v6948_v62  ;;  %v6047_v14 = vpop.f32.mrb[94].mxu0  ;;  %5764 = vmatprep.subr.bf16.mxu1 %v3083_v8 }
 0x198   :  { %v1962_v17 = vadd.f32 %v6047_v14, %v6948_v62  ;;  %v1953_v49 = vpop.f32.mrb[95].mxu0  ;;  %5765 = vmatpush3.bf16.msra.mxu1 %v7249_v15  ;;  %v2827_v20 = vmax.f32 %v1959_v11, 0.0  ;;  %v6380_v15 = vld [vmem:[%s8426_s0 + $0x338] sm:$0xff]  }
 0x199   :  { %v1954_v18 = vadd.f32 %v1953_v49, %v6948_v62  ;;  %5766 = vmatprep.subr.bf16.mxu1 %v3084_v39  ;;  %v2825_v1 = vmax.f32 %v1951_v45, 0.0 }
 0x19a   :  { %v2828_v21 = vmax.f32 %v1962_v17, 0.0  ;;  %6153 = vmatmul.mubr.msk.bf16.gmra.mrb[200].mxu0 %vm1115_vm0, %v6378_v23  ;;  %v6386_v17 = vld [vmem:[%s8426_s0 + $0x368] sm:$0xff]  }
 0x19b   :  { %v2826_v24 = vmax.f32 %v1954_v18, 0.0  ;;  %6156 = vmatprep.mubr.msk.bf16.mxu0 %vm1115_vm0, %v6379_v16 }
 0x19c   :  { %v3086_v55 = vpack.c.bf16 %v2828_v21, %v2827_v20  ;;  %5767 = vmatpush3.bf16.msra.mxu1 %v7247_v3  ;;  %v6387_v20 = vld [vmem:[%s8426_s0 + $0x370] sm:$0xff]  }
 0x19d   :  { %v3085_v25 = vpack.c.bf16 %v2826_v24, %v2825_v1  ;;  %v6050_v26 = vpop.f32.mrb[96].mxu0 }
 0x19e   :  { %v1975_v27 = vadd.f32 %v6050_v26, %v6948_v62  ;;  %v1966_v28 = vpop.f32.mrb[97].mxu0 }
 0x19f   :  { %v1967_v30 = vadd.f32 %v1966_v28, %v6948_v62  ;;  %v6051_v63 = vpop.f32.mrb[98].mxu0  ;;  %5768 = vmatprep.subr.bf16.mxu1 %v3085_v25 }
 0x1a0   :  { %v1978_v34 = vadd.f32 %v6051_v63, %v6948_v62  ;;  %v1969_v3 = vpop.f32.mrb[99].mxu0  ;;  %5769 = vmatpush3.bf16.msra.mxu1 %v7265_v31  ;;  %v2831_v36 = vmax.f32 %v1975_v27, 0.0  ;;  %v6410_v31 = vld [vmem:[%s8427_s2 + $0x1c] ss:$72 sps:$4 sm:$0xff]  }
 0x1a1   :  { %v1970_v35 = vadd.f32 %v1969_v3, %v6948_v62  ;;  %5770 = vmatprep.subr.bf16.mxu1 %v3086_v55  ;;  %v2829_v38 = vmax.f32 %v1967_v30, 0.0 }
 0x1a2   :  { %v2832_v37 = vmax.f32 %v1978_v34, 0.0  ;;  %6157 = vmatmul.mubr.msk.bf16.gmra.mrb[204].mxu0 %vm1115_vm0, %v6380_v15  ;;  %v6388_v34 = vld [vmem:[%s8426_s0 + $0x378] sm:$0xff]  }
 0x1a3   :  { %v2830_v40 = vmax.f32 %v1970_v35, 0.0  ;;  %6160 = vmatprep.mubr.msk.bf16.mxu0 %vm1115_vm0, %v6381_v47 }
 0x1a4   :  { %v7337_v41 = vpack.c.bf16 %v2832_v37, %v2831_v36  ;;  %5771 = vmatpush3.bf16.msra.mxu1 %v7263_v19  ;;  %v6383_v19 = vld [vmem:[%s8426_s0 + $0x350] sm:$0xff]   ;;  %v6392_v36 = vld [vmem:[%s8426_s0 + $0x380] sm:$0xff]  }
 0x1a5   :  { %v7343_v42 = vpack.c.bf16 %v2830_v40, %v2829_v38  ;;  %v6054_v13 = vpop.f32.mrb[100].mxu0 }
 0x1a6   :  { %v1991_v43 = vadd.f32 %v6054_v13, %v6948_v62  ;;  %v1982_v44 = vpop.f32.mrb[101].mxu0 }
 0x1a7   :  { %v1983_v48 = vadd.f32 %v1982_v44, %v6948_v62  ;;  %v6055_v50 = vpop.f32.mrb[102].mxu0  ;;  %3388 = vmatmul.mubr.bf16.vlgmr.msra.gmra.mrb[8].mxu1 %v6389_v9 }
 0x1a8   :  { %v1994_v51 = vadd.f32 %v6055_v50, %v6948_v62  ;;  %v1985_v52 = vpop.f32.mrb[103].mxu0  ;;  %3428 = vmatprep.mubr.bf16.mxu1 %v6410_v31  ;;  %v2835_v22 = vmax.f32 %v1991_v43, 0.0 }
 0x1a9   :  { %v1986_v53 = vadd.f32 %v1985_v52, %v6948_v62  ;;  %v2833_v56 = vmax.f32 %v1983_v48, 0.0 }
 0x1aa   :  { %v2836_v54 = vmax.f32 %v1994_v51, 0.0  ;;  %6161 = vmatmul.mubr.msk.bf16.gmra.mrb[208].mxu0 %vm1115_vm0, %v6382_v46  ;;  %v6393_v51 = vld [vmem:[%s8426_s0 + $0x388] sm:$0xff]  }
 0x1ab   :  { %v2834_v58 = vmax.f32 %v1986_v53, 0.0  ;;  %6164 = vmatprep.mubr.msk.bf16.mxu0 %vm1115_vm0, %v6383_v19 }
 0x1ac   :  { %v7357_v59 = vpack.c.bf16 %v2836_v54, %v2835_v22  ;;  %v6394_v22 = vld [vmem:[%s8426_s0 + $0x390] sm:$0xff]  }
 0x1ad   :  { %v7359_v33 = vpack.c.bf16 %v2834_v58, %v2833_v56  ;;  %v6058_v29 = vpop.f32.mrb[104].mxu0 }
 0x1ae   :  { %v2007_v60 = vadd.f32 %v6058_v29, %v6948_v62  ;;  %v1998_v61 = vpop.f32.mrb[105].mxu0 }
 0x1af   :  { %v1999_v32 = vadd.f32 %v1998_v61, %v6948_v62  ;;  %v6059_v2 = vpop.f32.mrb[106].mxu0 }
 0x1b0   :  { %v2010_v5 = vadd.f32 %v6059_v2, %v6948_v62  ;;  %v2001_v6 = vpop.f32.mrb[107].mxu0  ;;  %v2839_v39 = vmax.f32 %v2007_v60, 0.0 }
 0x1b1   :  { %v2002_v7 = vadd.f32 %v2001_v6, %v6948_v62  ;;  %v2837_v10 = vmax.f32 %v1999_v32, 0.0 }
 0x1b2   :  { %v2840_v8 = vmax.f32 %v2010_v5, 0.0  ;;  %6165 = vmatmul.mubr.msk.bf16.gmra.mrb[212].mxu0 %vm1115_vm0, %v6384_v0 }
 0x1b3   :  { %v2838_v11 = vmax.f32 %v2002_v7, 0.0  ;;  %6168 = vmatprep.mubr.msk.bf16.mxu0 %vm1115_vm0, %v6385_v4 }
 0x1b4   :  { %v7373_v12 = vpack.c.bf16 %v2840_v8, %v2839_v39  ;;  %v6396_v8 = vld [vmem:[%s8426_s0 + $0x3a0] sm:$0xff]  }
 0x1b5   :  { %v7375_v23 = vpack.c.bf16 %v2838_v11, %v2837_v10  ;;  %v6062_v45 = vpop.f32.mrb[108].mxu0 }
 0x1b6   :  { %v2023_v14 = vadd.f32 %v6062_v45, %v6948_v62  ;;  %v2014_v16 = vpop.f32.mrb[109].mxu0 }
 0x1b7   :  { %v2015_v49 = vadd.f32 %v2014_v16, %v6948_v62  ;;  %v6063_v18 = vpop.f32.mrb[110].mxu0 }
 0x1b8   :  { %v2026_v21 = vadd.f32 %v6063_v18, %v6948_v62  ;;  %v2017_v1 = vpop.f32.mrb[111].mxu0  ;;  %v2843_v55 = vmax.f32 %v2023_v14, 0.0 }
 0x1b9   :  { %v2018_v24 = vadd.f32 %v2017_v1, %v6948_v62  ;;  %v2841_v26 = vmax.f32 %v2015_v49, 0.0 }
 0x1ba   :  { %v2844_v25 = vmax.f32 %v2026_v21, 0.0  ;;  %6169 = vmatmul.mubr.msk.bf16.gmra.mrb[216].mxu0 %vm1115_vm0, %v6386_v17 }
 0x1bb   :  { %v2842_v27 = vmax.f32 %v2018_v24, 0.0  ;;  %6172 = vmatprep.mubr.msk.bf16.mxu0 %vm1115_vm0, %v6387_v20 }
 0x1bc   :  { %v7389_v28 = vpack.c.bf16 %v2844_v25, %v2843_v55  ;;  %v6398_v25 = vld [vmem:[%s8426_s0 + $0x3b0] sm:$0xff]  }
 0x1bd   :  { %v7391_v15 = vpack.c.bf16 %v2842_v27, %v2841_v26  ;;  %v6066_v30 = vpop.f32.mrb[112].mxu0 }
 0x1be   :  { %v2039_v63 = vadd.f32 %v6066_v30, %v6948_v62  ;;  %v2030_v47 = vpop.f32.mrb[113].mxu0 }
 0x1bf   :  { %v2031_v3 = vadd.f32 %v2030_v47, %v6948_v62  ;;  %v6067_v35 = vpop.f32.mrb[114].mxu0 }
 0x1c0   :  { %v2042_v37 = vadd.f32 %v6067_v35, %v6948_v62  ;;  %v2033_v38 = vpop.f32.mrb[115].mxu0  ;;  %v2847_v9 = vmax.f32 %v2039_v63, 0.0 }
 0x1c1   :  { %v2034_v40 = vadd.f32 %v2033_v38, %v6948_v62  ;;  %v2845_v13 = vmax.f32 %v2031_v3, 0.0 }
 0x1c2   :  { %v2848_v31 = vmax.f32 %v2042_v37, 0.0  ;;  %6173 = vmatmul.mubr.msk.bf16.gmra.mrb[220].mxu0 %vm1115_vm0, %v6388_v34 }
 0x1c3   :  { %v2846_v43 = vmax.f32 %v2034_v40, 0.0  ;;  %6176 = vmatprep.mubr.msk.bf16.mxu0 %vm1115_vm0, %v6392_v36 }
 0x1c4   :  { %v3096_v44 = vpack.c.bf16 %v2848_v31, %v2847_v9  ;;  %v6400_v31 = vld [vmem:[%s8426_s0 + $0x3c0] sm:$0xff]  }
 0x1c5   :  { %v3095_v46 = vpack.c.bf16 %v2846_v43, %v2845_v13  ;;  %v6070_v48 = vpop.f32.mrb[116].mxu0 }
 0x1c6   :  { %v2055_v50 = vadd.f32 %v6070_v48, %v6948_v62  ;;  %v2046_v19 = vpop.f32.mrb[117].mxu0 }
 0x1c7   :  { %v2047_v52 = vadd.f32 %v2046_v19, %v6948_v62  ;;  %v6071_v53 = vpop.f32.mrb[118].mxu0  ;;  %5778 = vmatprep.subr.bf16.mxu1 %v3095_v46  ;;  %v6408_v19 = vld [vmem:[%s8427_s2 + $0x18] ss:$72 sps:$4 sm:$0xff]  }
 0x1c8   :  { %v2058_v54 = vadd.f32 %v6071_v53, %v6948_v62  ;;  %v2049_v56 = vpop.f32.mrb[119].mxu0  ;;  %5779 = vmatpush3.bf16.msra.mxu1 %v7343_v42  ;;  %v2851_v29 = vmax.f32 %v2055_v50, 0.0  ;;  %v6395_v42 = vld [vmem:[%s8426_s0 + $0x398] sm:$0xff]  }
 0x1c9   :  { %v2050_v58 = vadd.f32 %v2049_v56, %v6948_v62  ;;  %5780 = vmatprep.subr.bf16.mxu1 %v3096_v44  ;;  %v2849_v61 = vmax.f32 %v2047_v52, 0.0  ;;  %v6401_v56 = vld [vmem:[%s8426_s0 + $0x3c8] sm:$0xff]  }
 0x1ca   :  { %v2852_v60 = vmax.f32 %v2058_v54, 0.0  ;;  %6177 = vmatmul.mubr.msk.bf16.gmra.mrb[224].mxu0 %vm1115_vm0, %v6393_v51 }
 0x1cb   :  { %v2850_v0 = vmax.f32 %v2050_v58, 0.0  ;;  %6180 = vmatprep.mubr.msk.bf16.mxu0 %vm1115_vm0, %v6394_v22 }
 0x1cc   :  { %v3098_v32 = vpack.c.bf16 %v2852_v60, %v2851_v29  ;;  %5781 = vmatpush3.bf16.msra.mxu1 %v7337_v41 }
 0x1cd   :  { %v3097_v2 = vpack.c.bf16 %v2850_v0, %v2849_v61  ;;  %v6074_v4 = vpop.f32.mrb[120].mxu0 }
 0x1ce   :  { %v2071_v5 = vadd.f32 %v6074_v4, %v6948_v62  ;;  %v2062_v6 = vpop.f32.mrb[121].mxu0 }
 0x1cf   :  { %v2063_v7 = vadd.f32 %v2062_v6, %v6948_v62  ;;  %v6075_v39 = vpop.f32.mrb[122].mxu0  ;;  %5782 = vmatprep.subr.bf16.mxu1 %v3097_v2 }
 0x1d0   :  { %v2074_v10 = vadd.f32 %v6075_v39, %v6948_v62  ;;  %v2065_v41 = vpop.f32.mrb[123].mxu0  ;;  %5783 = vmatpush3.bf16.msra.mxu1 %v7359_v33  ;;  %v2855_v45 = vmax.f32 %v2071_v5, 0.0  ;;  %v6397_v33 = vld [vmem:[%s8426_s0 + $0x3a8] sm:$0xff]  }
 0x1d1   :  { %v2066_v11 = vadd.f32 %v2065_v41, %v6948_v62  ;;  %5784 = vmatprep.subr.bf16.mxu1 %v3098_v32  ;;  %v2853_v16 = vmax.f32 %v2063_v7, 0.0 }
 0x1d2   :  { %v2856_v14 = vmax.f32 %v2074_v10, 0.0  ;;  %6181 = vmatmul.mubr.msk.bf16.gmra.mrb[228].mxu0 %vm1115_vm0, %v6395_v42  ;;  %v6403_v10 = vld [vmem:[%s8426_s0 + $0x3d8] sm:$0xff]  }
 0x1d3   :  { %v2854_v17 = vmax.f32 %v2066_v11, 0.0  ;;  %6184 = vmatprep.mubr.msk.bf16.mxu0 %vm1115_vm0, %v6396_v8 }
 0x1d4   :  { %v3100_v49 = vpack.c.bf16 %v2856_v14, %v2855_v45  ;;  %5785 = vmatpush3.bf16.msra.mxu1 %v7357_v59  ;;  %v6404_v45 = vld [vmem:[%s8426_s0 + $0x3e0] sm:$0xff]  }
 0x1d5   :  { %v3099_v18 = vpack.c.bf16 %v2854_v17, %v2853_v16  ;;  %v6078_v20 = vpop.f32.mrb[124].mxu0 }
 0x1d6   :  { %v2087_v21 = vadd.f32 %v6078_v20, %v6948_v62  ;;  %v2078_v1 = vpop.f32.mrb[125].mxu0 }
 0x1d7   :  { %v2079_v24 = vadd.f32 %v2078_v1, %v6948_v62  ;;  %v6079_v55 = vpop.f32.mrb[126].mxu0  ;;  %5786 = vmatprep.subr.bf16.mxu1 %v3099_v18 }
 0x1d8   :  { %v2090_v26 = vadd.f32 %v6079_v55, %v6948_v62  ;;  %v2081_v59 = vpop.f32.mrb[127].mxu0  ;;  %5787 = vmatpush3.bf16.msra.mxu1 %v7375_v23  ;;  %v2859_v30 = vmax.f32 %v2087_v21, 0.0  ;;  %v6399_v23 = vld [vmem:[%s8426_s0 + $0x3b8] sm:$0xff]  }
 0x1d9   :  { %v2082_v27 = vadd.f32 %v2081_v59, %v6948_v62  ;;  %5788 = vmatprep.subr.bf16.mxu1 %v3100_v49  ;;  %v2857_v47 = vmax.f32 %v2079_v24, 0.0 }
 0x1da   :  { %v2860_v63 = vmax.f32 %v2090_v26, 0.0  ;;  %6185 = vmatmul.mubr.msk.bf16.gmra.mrb[232].mxu0 %vm1115_vm0, %v6397_v33  ;;  %v6405_v26 = vld [vmem:[%s8426_s0 + $0x3e8] sm:$0xff]  }
 0x1db   :  { %v2858_v34 = vmax.f32 %v2082_v27, 0.0  ;;  %6188 = vmatprep.mubr.msk.bf16.mxu0 %vm1115_vm0, %v6398_v25 }
 0x1dc   :  { %v3102_v3 = vpack.c.bf16 %v2860_v63, %v2859_v30  ;;  %5789 = vmatpush3.bf16.msra.mxu1 %v7373_v12  ;;  %v6406_v30 = vld [vmem:[%s8426_s0 + $0x3f0] sm:$0xff]  }
 0x1dd   :  { %v3101_v35 = vpack.c.bf16 %v2858_v34, %v2857_v47  ;;  %v6082_v36 = vpop.f32.mrb[128].mxu0 }
 0x1de   :  { %v2103_v37 = vadd.f32 %v6082_v36, %v6948_v62  ;;  %v2094_v38 = vpop.f32.mrb[129].mxu0 }
 0x1df   :  { %v2095_v40 = vadd.f32 %v2094_v38, %v6948_v62  ;;  %v6083_v9 = vpop.f32.mrb[130].mxu0  ;;  %5790 = vmatprep.subr.bf16.mxu1 %v3101_v35 }
 0x1e0   :  { %v2106_v13 = vadd.f32 %v6083_v9, %v6948_v62  ;;  %v2097_v12 = vpop.f32.mrb[131].mxu0  ;;  %5791 = vmatpush3.bf16.msra.mxu1 %v7391_v15  ;;  %v2863_v44 = vmax.f32 %v2103_v37, 0.0  ;;  %v6423_v15 = vld [vmem:[%s8427_s2 + $0x24] ss:$72 sps:$4 sm:$0xff]  }
 0x1e1   :  { %v2098_v43 = vadd.f32 %v2097_v12, %v6948_v62  ;;  %5792 = vmatprep.subr.bf16.mxu1 %v3102_v3  ;;  %v2861_v48 = vmax.f32 %v2095_v40, 0.0 }
 0x1e2   :  { %v2864_v46 = vmax.f32 %v2106_v13, 0.0  ;;  %6189 = vmatmul.mubr.msk.bf16.gmra.mrb[236].mxu0 %vm1115_vm0, %v6399_v23  ;;  %v6407_v13 = vld [vmem:[%s8426_s0 + $0x3f8] sm:$0xff]  }
 0x1e3   :  { %v2862_v50 = vmax.f32 %v2098_v43, 0.0  ;;  %6192 = vmatprep.mubr.msk.bf16.mxu0 %vm1115_vm0, %v6400_v31 }
 0x1e4   :  { %v7463_v51 = vpack.c.bf16 %v2864_v46, %v2863_v44  ;;  %5793 = vmatpush3.bf16.msra.mxu1 %v7389_v28  ;;  %v6402_v28 = vld [vmem:[%s8426_s0 + $0x3d0] sm:$0xff]   ;;  %v6411_v44 = vld [vmem:[%s8426_s0 + $0x400] sm:$0xff]  }
 0x1e5   :  { %v7469_v52 = vpack.c.bf16 %v2862_v50, %v2861_v48  ;;  %v6086_v53 = vpop.f32.mrb[132].mxu0 }
 0x1e6   :  { %v2119_v22 = vadd.f32 %v6086_v53, %v6948_v62  ;;  %v2110_v54 = vpop.f32.mrb[133].mxu0 }
 0x1e7   :  { %v2111_v58 = vadd.f32 %v2110_v54, %v6948_v62  ;;  %v6087_v29 = vpop.f32.mrb[134].mxu0  ;;  %3429 = vmatmul.mubr.bf16.vlgmr.msra.gmra.mrb[12].mxu1 %v6408_v19 }
 0x1e8   :  { %v2122_v60 = vadd.f32 %v6087_v29, %v6948_v62  ;;  %v2113_v61 = vpop.f32.mrb[135].mxu0  ;;  %3469 = vmatprep.mubr.bf16.mxu1 %v6423_v15  ;;  %v2867_v32 = vmax.f32 %v2119_v22, 0.0 }
 0x1e9   :  { %v2114_v0 = vadd.f32 %v2113_v61, %v6948_v62  ;;  %v2865_v4 = vmax.f32 %v2111_v58, 0.0 }
 0x1ea   :  { %v2868_v2 = vmax.f32 %v2122_v60, 0.0  ;;  %6193 = vmatmul.mubr.msk.bf16.gmra.mrb[240].mxu0 %vm1115_vm0, %v6401_v56  ;;  %v6412_v60 = vld [vmem:[%s8426_s0 + $0x408] sm:$0xff]  }
 0x1eb   :  { %v2866_v5 = vmax.f32 %v2114_v0, 0.0  ;;  %6196 = vmatprep.mubr.msk.bf16.mxu0 %vm1115_vm0, %v6402_v28 }
 0x1ec   :  { %v7483_v6 = vpack.c.bf16 %v2868_v2, %v2867_v32  ;;  %v6413_v32 = vld [vmem:[%s8426_s0 + $0x410] sm:$0xff]  }
 0x1ed   :  { %v7485_v42 = vpack.c.bf16 %v2866_v5, %v2865_v4  ;;  %v6090_v7 = vpop.f32.mrb[136].mxu0 }
 0x1ee   :  { %v2135_v39 = vadd.f32 %v6090_v7, %v6948_v62  ;;  %v2126_v8 = vpop.f32.mrb[137].mxu0 }
 0x1ef   :  { %v2127_v41 = vadd.f32 %v2126_v8, %v6948_v62  ;;  %v6091_v11 = vpop.f32.mrb[138].mxu0 }
 0x1f0   :  { %v2138_v14 = vadd.f32 %v6091_v11, %v6948_v62  ;;  %v2129_v16 = vpop.f32.mrb[139].mxu0  ;;  %v2871_v49 = vmax.f32 %v2135_v39, 0.0 }
 0x1f1   :  { %v2130_v17 = vadd.f32 %v2129_v16, %v6948_v62  ;;  %v2869_v20 = vmax.f32 %v2127_v41, 0.0 }
 0x1f2   :  { %v2872_v18 = vmax.f32 %v2138_v14, 0.0  ;;  %6197 = vmatmul.mubr.msk.bf16.gmra.mrb[244].mxu0 %vm1115_vm0, %v6403_v10 }
 0x1f3   :  { %v2870_v21 = vmax.f32 %v2130_v17, 0.0  ;;  %6200 = vmatprep.mubr.msk.bf16.mxu0 %vm1115_vm0, %v6404_v45 }
 0x1f4   :  { %v7499_v1 = vpack.c.bf16 %v2872_v18, %v2871_v49  ;;  %v6415_v18 = vld [vmem:[%s8426_s0 + $0x420] sm:$0xff]  }
 0x1f5   :  { %v7501_v33 = vpack.c.bf16 %v2870_v21, %v2869_v20  ;;  %v6094_v24 = vpop.f32.mrb[140].mxu0 }
 0x1f6   :  { %v2151_v55 = vadd.f32 %v6094_v24, %v6948_v62  ;;  %v2142_v25 = vpop.f32.mrb[141].mxu0 }
 0x1f7   :  { %v2143_v59 = vadd.f32 %v2142_v25, %v6948_v62  ;;  %v6095_v27 = vpop.f32.mrb[142].mxu0 }
 0x1f8   :  { %v2154_v63 = vadd.f32 %v6095_v27, %v6948_v62  ;;  %v2145_v47 = vpop.f32.mrb[143].mxu0  ;;  %v2875_v3 = vmax.f32 %v2151_v55, 0.0 }
 0x1f9   :  { %v2146_v34 = vadd.f32 %v2145_v47, %v6948_v62  ;;  %v2873_v36 = vmax.f32 %v2143_v59, 0.0 }
 0x1fa   :  { %v2876_v35 = vmax.f32 %v2154_v63, 0.0  ;;  %6201 = vmatmul.mubr.msk.bf16.gmra.mrb[248].mxu0 %vm1115_vm0, %v6405_v26 }
 0x1fb   :  { %v2874_v37 = vmax.f32 %v2146_v34, 0.0  ;;  %6204 = vmatprep.mubr.msk.bf16.mxu0 %vm1115_vm0, %v6406_v30 }
 0x1fc   :  { %v7515_v38 = vpack.c.bf16 %v2876_v35, %v2875_v3  ;;  %v6417_v35 = vld [vmem:[%s8426_s0 + $0x430] sm:$0xff]  }
 0x1fd   :  { %v7517_v23 = vpack.c.bf16 %v2874_v37, %v2873_v36  ;;  %v6098_v40 = vpop.f32.mrb[144].mxu0 }
 0x1fe   :  { %v2167_v9 = vadd.f32 %v6098_v40, %v6948_v62  ;;  %v2158_v31 = vpop.f32.mrb[145].mxu0 }
 0x1ff   :  { %v2159_v12 = vadd.f32 %v2158_v31, %v6948_v62  ;;  %v6099_v43 = vpop.f32.mrb[146].mxu0 }
 0x200   :  { %v2170_v46 = vadd.f32 %v6099_v43, %v6948_v62  ;;  %v2161_v48 = vpop.f32.mrb[147].mxu0  ;;  %v2879_v19 = vmax.f32 %v2167_v9, 0.0 }
 0x201   :  { %v2162_v50 = vadd.f32 %v2161_v48, %v6948_v62  ;;  %v2877_v53 = vmax.f32 %v2159_v12, 0.0 }
 0x202   :  { %v2880_v15 = vmax.f32 %v2170_v46, 0.0  ;;  %6205 = vmatmul.mubr.msk.bf16.gmra.mrb[252].mxu0 %vm1115_vm0, %v6407_v13 }
 0x203   :  { %v2878_v22 = vmax.f32 %v2162_v50, 0.0  ;;  %6208 = vmatprep.mubr.msk.bf16.mxu0 %vm1115_vm0, %v6411_v44 }
 0x204   :  { %v3112_v54 = vpack.c.bf16 %v2880_v15, %v2879_v19  ;;  %v6419_v15 = vld [vmem:[%s8426_s0 + $0x440] sm:$0xff]  }
 0x205   :  { %v3111_v56 = vpack.c.bf16 %v2878_v22, %v2877_v53  ;;  %v6102_v58 = vpop.f32.mrb[148].mxu0 }
 0x206   :  { %v2183_v29 = vadd.f32 %v6102_v58, %v6948_v62  ;;  %v2174_v28 = vpop.f32.mrb[149].mxu0 }
 0x207   :  { %v2175_v61 = vadd.f32 %v2174_v28, %v6948_v62  ;;  %v6103_v0 = vpop.f32.mrb[150].mxu0  ;;  %5800 = vmatprep.subr.bf16.mxu1 %v3111_v56  ;;  %v6421_v28 = vld [vmem:[%s8427_s2 + $0x20] ss:$72 sps:$4 sm:$0xff]  }
 0x208   :  { %v2186_v2 = vadd.f32 %v6103_v0, %v6948_v62  ;;  %v2177_v4 = vpop.f32.mrb[151].mxu0  ;;  %5801 = vmatpush3.bf16.msra.mxu1 %v7469_v52  ;;  %v2883_v7 = vmax.f32 %v2183_v29, 0.0  ;;  %v6414_v52 = vld [vmem:[%s8426_s0 + $0x418] sm:$0xff]  }
 0x209   :  { %v2178_v5 = vadd.f32 %v2177_v4, %v6948_v62  ;;  %5802 = vmatprep.subr.bf16.mxu1 %v3112_v54  ;;  %v2881_v8 = vmax.f32 %v2175_v61, 0.0  ;;  %v6420_v4 = vld [vmem:[%s8426_s0 + $0x448] sm:$0xff]  }
 0x20a   :  { %v2884_v39 = vmax.f32 %v2186_v2, 0.0  ;;  %6209 = vmatmul.mubr.msk.bf16.gmra.mrb[0].mxu0 %vm1115_vm0, %v6412_v60 }
 0x20b   :  { %v2882_v10 = vmax.f32 %v2178_v5, 0.0  ;;  %6212 = vmatprep.mubr.msk.bf16.mxu0 %vm1115_vm0, %v6413_v32 }
 0x20c   :  { %v3114_v41 = vpack.c.bf16 %v2884_v39, %v2883_v7  ;;  %5803 = vmatpush3.bf16.msra.mxu1 %v7463_v51 }
 0x20d   :  { %v3113_v11 = vpack.c.bf16 %v2882_v10, %v2881_v8  ;;  %v6106_v45 = vpop.f32.mrb[152].mxu0 }
 0x20e   :  { %v2199_v14 = vadd.f32 %v6106_v45, %v6948_v62  ;;  %v2190_v16 = vpop.f32.mrb[153].mxu0 }
 0x20f   :  { %v2191_v17 = vadd.f32 %v2190_v16, %v6948_v62  ;;  %v6107_v49 = vpop.f32.mrb[154].mxu0  ;;  %5804 = vmatprep.subr.bf16.mxu1 %v3113_v11 }
 0x210   :  { %v2202_v20 = vadd.f32 %v6107_v49, %v6948_v62  ;;  %v2193_v51 = vpop.f32.mrb[155].mxu0  ;;  %5805 = vmatpush3.bf16.msra.mxu1 %v7485_v42  ;;  %v2887_v24 = vmax.f32 %v2199_v14, 0.0  ;;  %v6416_v42 = vld [vmem:[%s8426_s0 + $0x428] sm:$0xff]  }
 0x211   :  { %v2194_v21 = vadd.f32 %v2193_v51, %v6948_v62  ;;  %5806 = vmatprep.subr.bf16.mxu1 %v3114_v41  ;;  %v2885_v25 = vmax.f32 %v2191_v17, 0.0 }
 0x212   :  { %v2888_v55 = vmax.f32 %v2202_v20, 0.0  ;;  %6213 = vmatmul.mubr.msk.bf16.gmra.mrb[4].mxu0 %vm1115_vm0, %v6414_v52  ;;  %v6425_v20 = vld [vmem:[%s8426_s0 + $0x458] sm:$0xff]  }
 0x213   :  { %v2886_v26 = vmax.f32 %v2194_v21, 0.0  ;;  %6216 = vmatprep.mubr.msk.bf16.mxu0 %vm1115_vm0, %v6415_v18 }
 0x214   :  { %v3116_v59 = vpack.c.bf16 %v2888_v55, %v2887_v24  ;;  %5807 = vmatpush3.bf16.msra.mxu1 %v7483_v6  ;;  %v6426_v24 = vld [vmem:[%s8426_s0 + $0x460] sm:$0xff]  }
 0x215   :  { %v3115_v27 = vpack.c.bf16 %v2886_v26, %v2885_v25  ;;  %v6110_v30 = vpop.f32.mrb[156].mxu0 }
 0x216   :  { %v2215_v63 = vadd.f32 %v6110_v30, %v6948_v62  ;;  %v2206_v47 = vpop.f32.mrb[157].mxu0 }
 0x217   :  { %v2207_v34 = vadd.f32 %v2206_v47, %v6948_v62  ;;  %v6111_v3 = vpop.f32.mrb[158].mxu0  ;;  %5808 = vmatprep.subr.bf16.mxu1 %v3115_v27 }
 0x218   :  { %v2218_v36 = vadd.f32 %v6111_v3, %v6948_v62  ;;  %v2209_v6 = vpop.f32.mrb[159].mxu0  ;;  %5809 = vmatpush3.bf16.msra.mxu1 %v7501_v33  ;;  %v2891_v40 = vmax.f32 %v2215_v63, 0.0  ;;  %v6418_v33 = vld [vmem:[%s8426_s0 + $0x438] sm:$0xff]  }
 0x219   :  { %v2210_v37 = vadd.f32 %v2209_v6, %v6948_v62  ;;  %5810 = vmatprep.subr.bf16.mxu1 %v3116_v59  ;;  %v2889_v31 = vmax.f32 %v2207_v34, 0.0 }
 0x21a   :  { %v2892_v9 = vmax.f32 %v2218_v36, 0.0  ;;  %6217 = vmatmul.mubr.msk.bf16.gmra.mrb[8].mxu0 %vm1115_vm0, %v6416_v42  ;;  %v6427_v36 = vld [vmem:[%s8426_s0 + $0x468] sm:$0xff]  }
 0x21b   :  { %v2890_v13 = vmax.f32 %v2210_v37, 0.0  ;;  %6220 = vmatprep.mubr.msk.bf16.mxu0 %vm1115_vm0, %v6417_v35 }
 0x21c   :  { %v3118_v12 = vpack.c.bf16 %v2892_v9, %v2891_v40  ;;  %5811 = vmatpush3.bf16.msra.mxu1 %v7499_v1  ;;  %v6428_v40 = vld [vmem:[%s8426_s0 + $0x470] sm:$0xff]  }
 0x21d   :  { %v3117_v43 = vpack.c.bf16 %v2890_v13, %v2889_v31  ;;  %v6114_v44 = vpop.f32.mrb[160].mxu0 }
 0x21e   :  { %v2231_v46 = vadd.f32 %v6114_v44, %v6948_v62  ;;  %v2222_v48 = vpop.f32.mrb[161].mxu0 }
 0x21f   :  { %v2223_v50 = vadd.f32 %v2222_v48, %v6948_v62  ;;  %v6115_v19 = vpop.f32.mrb[162].mxu0  ;;  %5812 = vmatprep.subr.bf16.mxu1 %v3117_v43 }
 0x220   :  { %v2234_v53 = vadd.f32 %v6115_v19, %v6948_v62  ;;  %v2225_v1 = vpop.f32.mrb[163].mxu0  ;;  %5813 = vmatpush3.bf16.msra.mxu1 %v7517_v23  ;;  %v2895_v54 = vmax.f32 %v2231_v46, 0.0  ;;  %v6432_v23 = vld [vmem:[%s8427_s2 + $0x2c] ss:$72 sps:$4 sm:$0xff]  }
 0x221   :  { %v2226_v22 = vadd.f32 %v2225_v1, %v6948_v62  ;;  %5814 = vmatprep.subr.bf16.mxu1 %v3118_v12  ;;  %v2893_v58 = vmax.f32 %v2223_v50, 0.0 }
 0x222   :  { %v2896_v56 = vmax.f32 %v2234_v53, 0.0  ;;  %6221 = vmatmul.mubr.msk.bf16.gmra.mrb[12].mxu0 %vm1115_vm0, %v6418_v33  ;;  %v6429_v53 = vld [vmem:[%s8426_s0 + $0x478] sm:$0xff]  }
 0x223   :  { %v2894_v29 = vmax.f32 %v2226_v22, 0.0  ;;  %6224 = vmatprep.mubr.msk.bf16.mxu0 %vm1115_vm0, %v6419_v15 }
 0x224   :  { %v7589_v60 = vpack.c.bf16 %v2896_v56, %v2895_v54  ;;  %5815 = vmatpush3.bf16.msra.mxu1 %v7515_v38  ;;  %v6424_v38 = vld [vmem:[%s8426_s0 + $0x450] sm:$0xff]  }
 0x225   :  { %v7595_v61 = vpack.c.bf16 %v2894_v29, %v2893_v58  ;;  %v6118_v0 = vpop.f32.mrb[164].mxu0 }
 0x226   :  { %v2247_v32 = vadd.f32 %v6118_v0, %v6948_v62  ;;  %v2238_v2 = vpop.f32.mrb[165].mxu0 }
 0x227   :  { %v2239_v5 = vadd.f32 %v2238_v2, %v6948_v62  ;;  %v6119_v7 = vpop.f32.mrb[166].mxu0  ;;  %3470 = vmatmul.mubr.bf16.vlgmr.msra.gmra.mrb[16].mxu1 %v6421_v28 }
 0x228   :  { %v2250_v39 = vadd.f32 %v6119_v7, %v6948_v62  ;;  %v2241_v8 = vpop.f32.mrb[167].mxu0  ;;  %3510 = vmatprep.mubr.bf16.mxu1 %v6432_v23  ;;  %v2899_v41 = vmax.f32 %v2247_v32, 0.0 }
 0x229   :  { %v2242_v10 = vadd.f32 %v2241_v8, %v6948_v62  ;;  %v2897_v45 = vmax.f32 %v2239_v5, 0.0 }
 0x22a   :  { %v2900_v11 = vmax.f32 %v2250_v39, 0.0  ;;  %6225 = vmatmul.mubr.msk.bf16.gmra.mrb[16].mxu0 %vm1115_vm0, %v6420_v4 }
 0x22b   :  { %v2898_v14 = vmax.f32 %v2242_v10, 0.0  ;;  %6228 = vmatprep.mubr.msk.bf16.mxu0 %vm1115_vm0, %v6424_v38 }
 0x22c   :  { %v7609_v16 = vpack.c.bf16 %v2900_v11, %v2899_v41 }
 0x22d   :  { %v7611_v52 = vpack.c.bf16 %v2898_v14, %v2897_v45  ;;  %v6122_v17 = vpop.f32.mrb[168].mxu0 }
 0x22e   :  { %v2263_v49 = vadd.f32 %v6122_v17, %v6948_v62  ;;  %v2254_v18 = vpop.f32.mrb[169].mxu0 }
 0x22f   :  { %v2255_v51 = vadd.f32 %v2254_v18, %v6948_v62  ;;  %v6123_v21 = vpop.f32.mrb[170].mxu0 }
 0x230   :  { %v2266_v55 = vadd.f32 %v6123_v21, %v6948_v62  ;;  %v2257_v25 = vpop.f32.mrb[171].mxu0  ;;  %v2903_v59 = vmax.f32 %v2263_v49, 0.0 }
 0x231   :  { %v2258_v26 = vadd.f32 %v2257_v25, %v6948_v62  ;;  %v2901_v30 = vmax.f32 %v2255_v51, 0.0 }
 0x232   :  { %v2904_v27 = vmax.f32 %v2266_v55, 0.0  ;;  %6229 = vmatmul.mubr.msk.bf16.gmra.mrb[20].mxu0 %vm1115_vm0, %v6425_v20 }
 0x233   :  { %v2902_v63 = vmax.f32 %v2258_v26, 0.0  ;;  %6232 = vmatprep.mubr.msk.bf16.mxu0 %vm1115_vm0, %v6426_v24 }
 0x234   :  { %v7625_v47 = vpack.c.bf16 %v2904_v27, %v2903_v59 }
 0x235   :  { %v7627_v42 = vpack.c.bf16 %v2902_v63, %v2901_v30  ;;  %v6126_v34 = vpop.f32.mrb[172].mxu0 }
 0x236   :  { %v2279_v3 = vadd.f32 %v6126_v34, %v6948_v62  ;;  %v2270_v35 = vpop.f32.mrb[173].mxu0 }
 0x237   :  { %v2271_v6 = vadd.f32 %v2270_v35, %v6948_v62  ;;  %v6127_v37 = vpop.f32.mrb[174].mxu0 }
 0x238   :  { %v2282_v9 = vadd.f32 %v6127_v37, %v6948_v62  ;;  %v2273_v31 = vpop.f32.mrb[175].mxu0  ;;  %v2907_v12 = vmax.f32 %v2279_v3, 0.0 }
 0x239   :  { %v2274_v13 = vadd.f32 %v2273_v31, %v6948_v62  ;;  %v2905_v44 = vmax.f32 %v2271_v6, 0.0 }
 0x23a   :  { %v2908_v43 = vmax.f32 %v2282_v9, 0.0  ;;  %6233 = vmatmul.mubr.msk.bf16.gmra.mrb[24].mxu0 %vm1115_vm0, %v6427_v36 }
 0x23b   :  { %v2906_v46 = vmax.f32 %v2274_v13, 0.0  ;;  %6236 = vmatprep.mubr.msk.bf16.mxu0 %vm1115_vm0, %v6428_v40 }
 0x23c   :  { %v7641_v48 = vpack.c.bf16 %v2908_v43, %v2907_v12 }
 0x23d   :  { %v7643_v33 = vpack.c.bf16 %v2906_v46, %v2905_v44  ;;  %v6130_v50 = vpop.f32.mrb[176].mxu0 }
 0x23e   :  { %v2295_v19 = vadd.f32 %v6130_v50, %v6948_v62  ;;  %v2286_v15 = vpop.f32.mrb[177].mxu0 }
 0x23f   :  { %v2287_v1 = vadd.f32 %v2286_v15, %v6948_v62  ;;  %v6131_v22 = vpop.f32.mrb[178].mxu0 }
 0x240   :  { %v2298_v54 = vadd.f32 %v6131_v22, %v6948_v62  ;;  %v2289_v56 = vpop.f32.mrb[179].mxu0  ;;  %v2911_v29 = vmax.f32 %v2295_v19, 0.0 }
 0x241   :  { %v2290_v58 = vadd.f32 %v2289_v56, %v6948_v62  ;;  %v2909_v23 = vmax.f32 %v2287_v1, 0.0 }
 0x242   :  { %v2912_v28 = vmax.f32 %v2298_v54, 0.0  ;;  %6237 = vmatmul.mubr.msk.bf16.gmra.mrb[28].mxu0 %vm1115_vm0, %v6429_v53 }
 0x243   :  { %v2910_v0 = vmax.f32 %v2290_v58, 0.0 }
 0x244   :  { %v3128_v32 = vpack.c.bf16 %v2912_v28, %v2911_v29  ;;  %v6430_v29 = vld [vmem:[%s8427_s2 + $0x28] ss:$72 sps:$4 sm:$0xff]  }
 0x245   :  { %v3127_v2 = vpack.c.bf16 %v2910_v0, %v2909_v23  ;;  %v6134_v4 = vpop.f32.mrb[180].mxu0  ;;  %v6435_v23 = vld [vmem:[%s8427_s2 + $0x34] ss:$72 sps:$4 sm:$0xff]  }
 0x246   :  { %v2311_v5 = vadd.f32 %v6134_v4, %v6948_v62  ;;  %v2302_v7 = vpop.f32.mrb[181].mxu0 }
 0x247   :  { %v2303_v38 = vadd.f32 %v2302_v7, %v6948_v62  ;;  %v6135_v39 = vpop.f32.mrb[182].mxu0  ;;  %5822 = vmatprep.subr.bf16.mxu1 %v3127_v2 }
 0x248   :  { %v2314_v8 = vadd.f32 %v6135_v39, %v6948_v62  ;;  %v2305_v10 = vpop.f32.mrb[183].mxu0  ;;  %5823 = vmatpush3.bf16.msra.mxu1 %v7595_v61  ;;  %v2915_v11 = vmax.f32 %v2311_v5, 0.0 }
 0x249   :  { %v2306_v41 = vadd.f32 %v2305_v10, %v6948_v62  ;;  %5824 = vmatprep.subr.bf16.mxu1 %v3128_v32  ;;  %v2913_v14 = vmax.f32 %v2303_v38, 0.0 }
 0x24a   :  { %v2916_v45 = vmax.f32 %v2314_v8, 0.0 }
 0x24b   :  { %v2914_v17 = vmax.f32 %v2306_v41, 0.0 }
 0x24c   :  { %v3130_v49 = vpack.c.bf16 %v2916_v45, %v2915_v11  ;;  %5825 = vmatpush3.bf16.msra.mxu1 %v7589_v60 }
 0x24d   :  { %v3129_v18 = vpack.c.bf16 %v2914_v17, %v2913_v14  ;;  %v6138_v20 = vpop.f32.mrb[184].mxu0 }
 0x24e   :  { %v2327_v51 = vadd.f32 %v6138_v20, %v6948_v62  ;;  %v2318_v21 = vpop.f32.mrb[185].mxu0 }
 0x24f   :  { %v2319_v24 = vadd.f32 %v2318_v21, %v6948_v62  ;;  %v6139_v55 = vpop.f32.mrb[186].mxu0  ;;  %5826 = vmatprep.subr.bf16.mxu1 %v3129_v18  ;;  %v5728_v18 = vpop.f32.mrb[0].mxu1 }
 0x250   :  { %v2330_v61 = vadd.f32 %v6139_v55, %v6948_v62  ;;  %v2321_v25 = vpop.f32.mrb[187].mxu0  ;;  %5827 = vmatpush3.bf16.msra.mxu1 %v7611_v52  ;;  %v2919_v59 = vmax.f32 %v2327_v51, 0.0  ;;  %v5729_v21 = vpop.f32.mrb[1].mxu1 }
 0x251   :  { %v2322_v26 = vadd.f32 %v2321_v25, %v6948_v62  ;;  %5828 = vmatprep.subr.bf16.mxu1 %v3130_v49  ;;  %v2917_v60 = vmax.f32 %v2319_v24, 0.0 }
 0x252   :  { %v2920_v27 = vmax.f32 %v2330_v61, 0.0  ;;  %v5731_v61 = vpop.f32.mrb[2].mxu1 }
 0x253   :  { %v2918_v30 = vmax.f32 %v2322_v26, 0.0  ;;  %v5732_v26 = vpop.f32.mrb[3].mxu1 }
 0x254   :  { %v3132_v63 = vpack.c.bf16 %v2920_v27, %v2919_v59  ;;  %5829 = vmatpush3.bf16.msra.mxu1 %v7609_v16 }
 0x255   :  { %v3131_v34 = vpack.c.bf16 %v2918_v30, %v2917_v60  ;;  %v6142_v3 = vpop.f32.mrb[188].mxu0  ;;  %v5750_v60 = vpop.f32.mrb[4].mxu1 }
 0x256   :  { %v2343_v35 = vadd.f32 %v6142_v3, %v6948_v62  ;;  %v2334_v36 = vpop.f32.mrb[189].mxu0 }
 0x257   :  { %v2335_v6 = vadd.f32 %v2334_v36, %v6948_v62  ;;  %v6143_v37 = vpop.f32.mrb[190].mxu0  ;;  %5830 = vmatprep.subr.bf16.mxu1 %v3131_v34  ;;  %v5751_v34 = vpop.f32.mrb[5].mxu1 }
 0x258   :  { %v2346_v52 = vadd.f32 %v6143_v37, %v6948_v62  ;;  %v2337_v40 = vpop.f32.mrb[191].mxu0  ;;  %5831 = vmatpush3.bf16.msra.mxu1 %v7627_v42  ;;  %v2923_v31 = vmax.f32 %v2343_v35, 0.0  ;;  %v5730_v35 = vadd.f32 %v5729_v21, %v5728_v18  ;;  %v5753_v36 = vpop.f32.mrb[6].mxu1 }
 0x259   :  { %v2338_v9 = vadd.f32 %v2337_v40, %v6948_v62  ;;  %5832 = vmatprep.subr.bf16.mxu1 %v3132_v63  ;;  %v2921_v16 = vmax.f32 %v2335_v6, 0.0  ;;  %v5752_v40 = vadd.f32 %v5751_v34, %v5750_v60 }
 0x25a   :  { %v2924_v13 = vmax.f32 %v2346_v52, 0.0  ;;  %v5733_v52 = vadd.f32 %v5732_v26, %v5731_v61 }
 0x25b   :  { %v2922_v12 = vmax.f32 %v2338_v9, 0.0  ;;  %v5754_v9 = vpop.f32.mrb[7].mxu1 }
 0x25c   :  { %v3134_v43 = vpack.c.bf16 %v2924_v13, %v2923_v31  ;;  %5833 = vmatpush3.bf16.msra.mxu1 %v7625_v47 }
 0x25d   :  { %v3133_v44 = vpack.c.bf16 %v2922_v12, %v2921_v16  ;;  %v6146_v46 = vpop.f32.mrb[192].mxu0 }
 0x25e   :  { %v2359_v50 = vadd.f32 %v6146_v46, %v6948_v62  ;;  %v2350_v19 = vpop.f32.mrb[193].mxu0 }
 0x25f   :  { %v2351_v15 = vadd.f32 %v2350_v19, %v6948_v62  ;;  %v6147_v53 = vpop.f32.mrb[194].mxu0  ;;  %5834 = vmatprep.subr.bf16.mxu1 %v3133_v44 }
 0x260   :  { %v2362_v42 = vadd.f32 %v6147_v53, %v6948_v62  ;;  %v2353_v1 = vpop.f32.mrb[195].mxu0  ;;  %5835 = vmatpush3.bf16.msra.mxu1 %v7643_v33  ;;  %v2927_v54 = vmax.f32 %v2359_v50, 0.0  ;;  %v5755_v50 = vadd.f32 %v5754_v9, %v5753_v36 }
 0x261   :  { %v2354_v22 = vadd.f32 %v2353_v1, %v6948_v62  ;;  %5836 = vmatprep.subr.bf16.mxu1 %v3134_v43  ;;  %v2925_v47 = vmax.f32 %v2351_v15, 0.0  ;;  %v3349_v43 = vadd.f32 %v5752_v40, %v5730_v35 }
 0x262   :  { %v2928_v56 = vmax.f32 %v2362_v42, 0.0  ;;  %v3352_v42 = vadd.f32 %v5755_v50, %v5733_v52 }
 0x263   :  { %v2926_v58 = vmax.f32 %v2354_v22, 0.0 }
 0x264   :  { %v7679_v28 = vpack.c.bf16 %v2928_v56, %v2927_v54  ;;  %5837 = vmatpush3.bf16.msra.mxu1 %v7641_v48 }
 0x265   :  { %v7685_v33 = vpack.c.bf16 %v2926_v58, %v2925_v47  ;;  %v6150_v0 = vpop.f32.mrb[196].mxu0 }
 0x266   :  { %v2375_v32 = vadd.f32 %v6150_v0, %v6948_v62  ;;  %v2366_v2 = vpop.f32.mrb[197].mxu0 }
 0x267   :  { %v2367_v4 = vadd.f32 %v2366_v2, %v6948_v62  ;;  %v6151_v5 = vpop.f32.mrb[198].mxu0  ;;  %3511 = vmatmul.mubr.bf16.vlgmr.msra.gmra.mrb[20].mxu1 %v6430_v29 }
 0x268   :  { %v2378_v7 = vadd.f32 %v6151_v5, %v6948_v62  ;;  %v2369_v38 = vpop.f32.mrb[199].mxu0  ;;  %3551 = vmatprep.mubr.bf16.mxu1 %v6435_v23  ;;  %v2931_v39 = vmax.f32 %v2375_v32, 0.0 }
 0x269   :  { %v2370_v48 = vadd.f32 %v2369_v38, %v6948_v62  ;;  %v2929_v10 = vmax.f32 %v2367_v4, 0.0 }
 0x26a   :  { %v2932_v8 = vmax.f32 %v2378_v7, 0.0 }
 0x26b   :  { %v2930_v41 = vmax.f32 %v2370_v48, 0.0 }
 0x26c   :  { %v7691_v11 = vpack.c.bf16 %v2932_v8, %v2931_v39 }
 0x26d   :  { %v7693_v45 = vpack.c.bf16 %v2930_v41, %v2929_v10  ;;  %v6154_v14 = vpop.f32.mrb[200].mxu0 }
 0x26e   :  { %v2391_v17 = vadd.f32 %v6154_v14, %v6948_v62  ;;  %v2382_v49 = vpop.f32.mrb[201].mxu0 }
 0x26f   :  { %v2383_v20 = vadd.f32 %v2382_v49, %v6948_v62  ;;  %v6155_v51 = vpop.f32.mrb[202].mxu0 }
 0x270   :  { %v2394_v24 = vadd.f32 %v6155_v51, %v6948_v62  ;;  %v2385_v55 = vpop.f32.mrb[203].mxu0  ;;  %v2935_v59 = vmax.f32 %v2391_v17, 0.0 }
 0x271   :  { %v2386_v25 = vadd.f32 %v2385_v55, %v6948_v62  ;;  %v2933_v30 = vmax.f32 %v2383_v20, 0.0 }
 0x272   :  { %v2936_v27 = vmax.f32 %v2394_v24, 0.0 }
 0x273   :  { %v2934_v63 = vmax.f32 %v2386_v25, 0.0 }
 0x274   :  { %v7699_v3 = vpack.c.bf16 %v2936_v27, %v2935_v59 }
 0x275   :  { %v7701_v6 = vpack.c.bf16 %v2934_v63, %v2933_v30  ;;  %v6158_v37 = vpop.f32.mrb[204].mxu0 }
 0x276   :  { %v2407_v31 = vadd.f32 %v6158_v37, %v6948_v62  ;;  %v2398_v13 = vpop.f32.mrb[205].mxu0 }
 0x277   :  { %v2399_v16 = vadd.f32 %v2398_v13, %v6948_v62  ;;  %v6159_v12 = vpop.f32.mrb[206].mxu0 }
 0x278   :  { %v2410_v44 = vadd.f32 %v6159_v12, %v6948_v62  ;;  %v2401_v46 = vpop.f32.mrb[207].mxu0  ;;  %v2939_v15 = vmax.f32 %v2407_v31, 0.0 }
 0x279   :  { %v2402_v19 = vadd.f32 %v2401_v46, %v6948_v62  ;;  %v2937_v22 = vmax.f32 %v2399_v16, 0.0 }
 0x27a   :  { %v2940_v53 = vmax.f32 %v2410_v44, 0.0  ;;  %v5772_v1 = vpop.f32.mrb[8].mxu1 }
 0x27b   :  { %v2938_v54 = vmax.f32 %v2402_v19, 0.0  ;;  %v5773_v56 = vpop.f32.mrb[9].mxu1 }
 0x27c   :  { %v7707_v47 = vpack.c.bf16 %v2940_v53, %v2939_v15  ;;  %v5774_v58 = vadd.f32 %v5773_v56, %v5772_v1  ;;  %v5775_v29 = vpop.f32.mrb[10].mxu1 }
 0x27d   :  { %v7709_v23 = vpack.c.bf16 %v2938_v54, %v2937_v22  ;;  %v6162_v0 = vpop.f32.mrb[208].mxu0  ;;  %v5776_v32 = vpop.f32.mrb[11].mxu1 }
 0x27e   :  { %v2423_v2 = vadd.f32 %v6162_v0, %v6948_v62  ;;  %v2414_v4 = vpop.f32.mrb[209].mxu0  ;;  %v7712_v5 = vadd.f32 %v5774_v58, %v3349_v43  ;;  %v5777_v7 = vadd.f32 %v5776_v32, %v5775_v29 }
 0x27f   :  { %v2415_v38 = vadd.f32 %v2414_v4, %v6948_v62  ;;  %v6163_v48 = vpop.f32.mrb[210].mxu0 }
 0x280   :  { %v2426_v39 = vadd.f32 %v6163_v48, %v6948_v62  ;;  %v2417_v8 = vpop.f32.mrb[211].mxu0  ;;  %v7716_v10 = vadd.f32 %v5777_v7, %v3352_v42  ;;  %v2943_v14 = vmax.f32 %v2423_v2, 0.0 }
 0x281   :  { %v2418_v41 = vadd.f32 %v2417_v8, %v6948_v62  ;;  %v2941_v49 = vmax.f32 %v2415_v38, 0.0 }
 0x282   :  { %v2944_v17 = vmax.f32 %v2426_v39, 0.0 }
 0x283   :  { %v2942_v18 = vmax.f32 %v2418_v41, 0.0 }
 0x284   :  { %v3144_v20 = vpack.c.bf16 %v2944_v17, %v2943_v14 }
 0x285   :  { %v3143_v51 = vpack.c.bf16 %v2942_v18, %v2941_v49  ;;  %v6166_v21 = vpop.f32.mrb[212].mxu0  ;;  %v6433_v49 = vld [vmem:[%s8427_s2 + $0x30] ss:$72 sps:$4 sm:$0xff]  }
 0x286   :  { %v2439_v24 = vadd.f32 %v6166_v21, %v6948_v62  ;;  %v2430_v55 = vpop.f32.mrb[213].mxu0 }
 0x287   :  { %v2431_v61 = vadd.f32 %v2430_v55, %v6948_v62  ;;  %v6167_v25 = vpop.f32.mrb[214].mxu0  ;;  %5844 = vmatprep.subr.bf16.mxu1 %v3143_v51 }
 0x288   :  { %v2442_v26 = vadd.f32 %v6167_v25, %v6948_v62  ;;  %v2433_v59 = vpop.f32.mrb[215].mxu0  ;;  %5845 = vmatpush3.bf16.msra.mxu1 %v7685_v33  ;;  %v2947_v60 = vmax.f32 %v2439_v24, 0.0 }
 0x289   :  { %v2434_v27 = vadd.f32 %v2433_v59, %v6948_v62  ;;  %5846 = vmatprep.subr.bf16.mxu1 %v3144_v20  ;;  %v2945_v63 = vmax.f32 %v2431_v61, 0.0  ;;  %v6438_v20 = vld [vmem:[%s8427_s2 + $0x3c] ss:$72 sps:$4 sm:$0xff]  }
 0x28a   :  { %v2948_v30 = vmax.f32 %v2442_v26, 0.0 }
 0x28b   :  { %v2946_v34 = vmax.f32 %v2434_v27, 0.0 }
 0x28c   :  { %v3146_v35 = vpack.c.bf16 %v2948_v30, %v2947_v60  ;;  %5847 = vmatpush3.bf16.msra.mxu1 %v7679_v28 }
 0x28d   :  { %v3145_v36 = vpack.c.bf16 %v2946_v34, %v2945_v63  ;;  %v6170_v37 = vpop.f32.mrb[216].mxu0 }
 0x28e   :  { %v2455_v52 = vadd.f32 %v6170_v37, %v6948_v62  ;;  %v2446_v40 = vpop.f32.mrb[217].mxu0 }
 0x28f   :  { %v2447_v9 = vadd.f32 %v2446_v40, %v6948_v62  ;;  %v6171_v31 = vpop.f32.mrb[218].mxu0  ;;  %5848 = vmatprep.subr.bf16.mxu1 %v3145_v36 }
 0x290   :  { %v2458_v33 = vadd.f32 %v6171_v31, %v6948_v62  ;;  %v2449_v13 = vpop.f32.mrb[219].mxu0  ;;  %5849 = vmatpush3.bf16.msra.mxu1 %v7693_v45  ;;  %v2951_v12 = vmax.f32 %v2455_v52, 0.0 }
 0x291   :  { %v2450_v16 = vadd.f32 %v2449_v13, %v6948_v62  ;;  %5850 = vmatprep.subr.bf16.mxu1 %v3146_v35  ;;  %v2949_v28 = vmax.f32 %v2447_v9, 0.0 }
 0x292   :  { %v2952_v43 = vmax.f32 %v2458_v33, 0.0 }
 0x293   :  { %v2950_v44 = vmax.f32 %v2450_v16, 0.0 }
 0x294   :  { %v3148_v46 = vpack.c.bf16 %v2952_v43, %v2951_v12  ;;  %5851 = vmatpush3.bf16.msra.mxu1 %v7691_v11 }
 0x295   :  { %v3147_v50 = vpack.c.bf16 %v2950_v44, %v2949_v28  ;;  %v6174_v19 = vpop.f32.mrb[220].mxu0 }
 0x296   :  { %v2471_v15 = vadd.f32 %v6174_v19, %v6948_v62  ;;  %v2462_v53 = vpop.f32.mrb[221].mxu0 }
 0x297   :  { %v2463_v42 = vadd.f32 %v2462_v53, %v6948_v62  ;;  %v6175_v1 = vpop.f32.mrb[222].mxu0  ;;  %5852 = vmatprep.subr.bf16.mxu1 %v3147_v50 }
 0x298   :  { %v2474_v45 = vadd.f32 %v6175_v1, %v6948_v62  ;;  %v2465_v22 = vpop.f32.mrb[223].mxu0  ;;  %5853 = vmatpush3.bf16.msra.mxu1 %v7701_v6  ;;  %v2955_v56 = vmax.f32 %v2471_v15, 0.0 }
 0x299   :  { %v2466_v54 = vadd.f32 %v2465_v22, %v6948_v62  ;;  %5854 = vmatprep.subr.bf16.mxu1 %v3148_v46  ;;  %v2953_v11 = vmax.f32 %v2463_v42, 0.0 }
 0x29a   :  { %v2956_v58 = vmax.f32 %v2474_v45, 0.0 }
 0x29b   :  { %v2954_v29 = vmax.f32 %v2466_v54, 0.0 }
 0x29c   :  { %v3150_v0 = vpack.c.bf16 %v2956_v58, %v2955_v56  ;;  %5855 = vmatpush3.bf16.msra.mxu1 %v7699_v3 }
 0x29d   :  { %v3149_v32 = vpack.c.bf16 %v2954_v29, %v2953_v11  ;;  %v6178_v2 = vpop.f32.mrb[224].mxu0 }
 0x29e   :  { %v2487_v4 = vadd.f32 %v6178_v2, %v6948_v62  ;;  %v2478_v7 = vpop.f32.mrb[225].mxu0 }
 0x29f   :  { %v2479_v38 = vadd.f32 %v2478_v7, %v6948_v62  ;;  %v6179_v48 = vpop.f32.mrb[226].mxu0  ;;  %5856 = vmatprep.subr.bf16.mxu1 %v3149_v32 }
 0x2a0   :  { %v2490_v6 = vadd.f32 %v6179_v48, %v6948_v62  ;;  %v2481_v39 = vpop.f32.mrb[227].mxu0  ;;  %5857 = vmatpush3.bf16.msra.mxu1 %v7709_v23  ;;  %v2959_v41 = vmax.f32 %v2487_v4, 0.0 }
 0x2a1   :  { %v2482_v8 = vadd.f32 %v2481_v39, %v6948_v62  ;;  %5858 = vmatprep.subr.bf16.mxu1 %v3150_v0  ;;  %v2957_v3 = vmax.f32 %v2479_v38, 0.0 }
 0x2a2   :  { %v2960_v14 = vmax.f32 %v2490_v6, 0.0 }
 0x2a3   :  { %v2958_v17 = vmax.f32 %v2482_v8, 0.0 }
 0x2a4   :  { %v7745_v18 = vpack.c.bf16 %v2960_v14, %v2959_v41  ;;  %5859 = vmatpush3.bf16.msra.mxu1 %v7707_v47 }
 0x2a5   :  { %v7751_v23 = vpack.c.bf16 %v2958_v17, %v2957_v3  ;;  %v6182_v51 = vpop.f32.mrb[228].mxu0 }
 0x2a6   :  { %v2503_v21 = vadd.f32 %v6182_v51, %v6948_v62  ;;  %v2494_v24 = vpop.f32.mrb[229].mxu0 }
 0x2a7   :  { %v2495_v55 = vadd.f32 %v2494_v24, %v6948_v62  ;;  %v6183_v61 = vpop.f32.mrb[230].mxu0  ;;  %3552 = vmatmul.mubr.bf16.vlgmr.msra.gmra.mrb[24].mxu1 %v6433_v49 }
 0x2a8   :  { %v2506_v25 = vadd.f32 %v6183_v61, %v6948_v62  ;;  %v2497_v26 = vpop.f32.mrb[231].mxu0  ;;  %3592 = vmatprep.mubr.bf16.mxu1 %v6438_v20  ;;  %v2963_v59 = vmax.f32 %v2503_v21, 0.0 }
 0x2a9   :  { %v2498_v47 = vadd.f32 %v2497_v26, %v6948_v62  ;;  %v2961_v60 = vmax.f32 %v2495_v55, 0.0 }
 0x2aa   :  { %v2964_v27 = vmax.f32 %v2506_v25, 0.0 }
 0x2ab   :  { %v2962_v30 = vmax.f32 %v2498_v47, 0.0 }
 0x2ac   :  { %v7757_v63 = vpack.c.bf16 %v2964_v27, %v2963_v59 }
 0x2ad   :  { %v7759_v34 = vpack.c.bf16 %v2962_v30, %v2961_v60  ;;  %v6186_v35 = vpop.f32.mrb[232].mxu0 }
 0x2ae   :  { %v2519_v36 = vadd.f32 %v6186_v35, %v6948_v62  ;;  %v2510_v37 = vpop.f32.mrb[233].mxu0 }
 0x2af   :  { %v2511_v52 = vadd.f32 %v2510_v37, %v6948_v62  ;;  %v6187_v40 = vpop.f32.mrb[234].mxu0 }
 0x2b0   :  { %v2522_v9 = vadd.f32 %v6187_v40, %v6948_v62  ;;  %v2513_v31 = vpop.f32.mrb[235].mxu0  ;;  %v2967_v13 = vmax.f32 %v2519_v36, 0.0 }
 0x2b1   :  { %v2514_v33 = vadd.f32 %v2513_v31, %v6948_v62  ;;  %v2965_v12 = vmax.f32 %v2511_v52, 0.0 }
 0x2b2   :  { %v2968_v16 = vmax.f32 %v2522_v9, 0.0 }
 0x2b3   :  { %v2966_v43 = vmax.f32 %v2514_v33, 0.0 }
 0x2b4   :  { %v7765_v28 = vpack.c.bf16 %v2968_v16, %v2967_v13 }
 0x2b5   :  { %v7767_v44 = vpack.c.bf16 %v2966_v43, %v2965_v12  ;;  %v6190_v46 = vpop.f32.mrb[236].mxu0 }
 0x2b6   :  { %v2535_v50 = vadd.f32 %v6190_v46, %v6948_v62  ;;  %v2526_v19 = vpop.f32.mrb[237].mxu0 }
 0x2b7   :  { %v2527_v15 = vadd.f32 %v2526_v19, %v6948_v62  ;;  %v6191_v53 = vpop.f32.mrb[238].mxu0 }
 0x2b8   :  { %v2538_v42 = vadd.f32 %v6191_v53, %v6948_v62  ;;  %v2529_v1 = vpop.f32.mrb[239].mxu0  ;;  %v2971_v22 = vmax.f32 %v2535_v50, 0.0 }
 0x2b9   :  { %v2530_v45 = vadd.f32 %v2529_v1, %v6948_v62  ;;  %v2969_v58 = vmax.f32 %v2527_v15, 0.0 }
 0x2ba   :  { %v2972_v54 = vmax.f32 %v2538_v42, 0.0  ;;  %v5794_v56 = vpop.f32.mrb[12].mxu1 }
 0x2bb   :  { %v2970_v11 = vmax.f32 %v2530_v45, 0.0  ;;  %v5795_v29 = vpop.f32.mrb[13].mxu1 }
 0x2bc   :  { %v7773_v0 = vpack.c.bf16 %v2972_v54, %v2971_v22  ;;  %v5796_v32 = vadd.f32 %v5795_v29, %v5794_v56  ;;  %v5797_v2 = vpop.f32.mrb[14].mxu1 }
 0x2bd   :  { %v7775_v4 = vpack.c.bf16 %v2970_v11, %v2969_v58  ;;  %v6194_v7 = vpop.f32.mrb[240].mxu0  ;;  %v5798_v38 = vpop.f32.mrb[15].mxu1 }
 0x2be   :  { %v2551_v48 = vadd.f32 %v6194_v7, %v6948_v62  ;;  %v2542_v6 = vpop.f32.mrb[241].mxu0  ;;  %v7779_v39 = vadd.f32 %v5796_v32, %v7712_v5  ;;  %v5799_v8 = vadd.f32 %v5798_v38, %v5797_v2 }
 0x2bf   :  { %v2543_v41 = vadd.f32 %v2542_v6, %v6948_v62  ;;  %v6195_v14 = vpop.f32.mrb[242].mxu0 }
 0x2c0   :  { %v2554_v3 = vadd.f32 %v6195_v14, %v6948_v62  ;;  %v2545_v17 = vpop.f32.mrb[243].mxu0  ;;  %v7784_v49 = vadd.f32 %v5799_v8, %v7716_v10  ;;  %v2975_v51 = vmax.f32 %v2551_v48, 0.0 }
 0x2c1   :  { %v2546_v20 = vadd.f32 %v2545_v17, %v6948_v62  ;;  %v2973_v24 = vmax.f32 %v2543_v41, 0.0 }
 0x2c2   :  { %v2976_v21 = vmax.f32 %v2554_v3, 0.0 }
 0x2c3   :  { %v2974_v55 = vmax.f32 %v2546_v20, 0.0 }
 0x2c4   :  { %v3160_v61 = vpack.c.bf16 %v2976_v21, %v2975_v51 }
 0x2c5   :  { %v3159_v25 = vpack.c.bf16 %v2974_v55, %v2973_v24  ;;  %v6198_v5 = vpop.f32.mrb[244].mxu0  ;;  %v6436_v24 = vld [vmem:[%s8427_s2 + $0x38] ss:$72 sps:$4 sm:$0xff]  }
 0x2c6   :  { %v2567_v26 = vadd.f32 %v6198_v5, %v6948_v62  ;;  %v2558_v47 = vpop.f32.mrb[245].mxu0 }
 0x2c7   :  { %v2559_v59 = vadd.f32 %v2558_v47, %v6948_v62  ;;  %v6199_v27 = vpop.f32.mrb[246].mxu0  ;;  %5866 = vmatprep.subr.bf16.mxu1 %v3159_v25 }
 0x2c8   :  { %v2570_v60 = vadd.f32 %v6199_v27, %v6948_v62  ;;  %v2561_v10 = vpop.f32.mrb[247].mxu0  ;;  %5867 = vmatpush3.bf16.msra.mxu1 %v7751_v23  ;;  %v2979_v35 = vmax.f32 %v2567_v26, 0.0 }
 0x2c9   :  { %v2562_v30 = vadd.f32 %v2561_v10, %v6948_v62  ;;  %5868 = vmatprep.subr.bf16.mxu1 %v3160_v61  ;;  %v2977_v37 = vmax.f32 %v2559_v59, 0.0  ;;  %v6441_v61 = vld [vmem:[%s8427_s2 + $0x44] ss:$72 sps:$4 sm:$0xff]  }
 0x2ca   :  { %v2980_v36 = vmax.f32 %v2570_v60, 0.0 }
 0x2cb   :  { %v2978_v52 = vmax.f32 %v2562_v30, 0.0 }
 0x2cc   :  { %v3162_v40 = vpack.c.bf16 %v2980_v36, %v2979_v35  ;;  %5869 = vmatpush3.bf16.msra.mxu1 %v7745_v18 }
 0x2cd   :  { %v3161_v9 = vpack.c.bf16 %v2978_v52, %v2977_v37  ;;  %v6202_v31 = vpop.f32.mrb[248].mxu0 }
 0x2ce   :  { %v2583_v33 = vadd.f32 %v6202_v31, %v6948_v62  ;;  %v2574_v13 = vpop.f32.mrb[249].mxu0 }
 0x2cf   :  { %v2575_v16 = vadd.f32 %v2574_v13, %v6948_v62  ;;  %v6203_v12 = vpop.f32.mrb[250].mxu0  ;;  %5870 = vmatprep.subr.bf16.mxu1 %v3161_v9 }
 0x2d0   :  { %v2586_v23 = vadd.f32 %v6203_v12, %v6948_v62  ;;  %v2577_v43 = vpop.f32.mrb[251].mxu0  ;;  %5871 = vmatpush3.bf16.msra.mxu1 %v7759_v34  ;;  %v2983_v50 = vmax.f32 %v2583_v33, 0.0 }
 0x2d1   :  { %v2578_v46 = vadd.f32 %v2577_v43, %v6948_v62  ;;  %5872 = vmatprep.subr.bf16.mxu1 %v3162_v40  ;;  %v2981_v18 = vmax.f32 %v2575_v16, 0.0 }
 0x2d2   :  { %v2984_v19 = vmax.f32 %v2586_v23, 0.0 }
 0x2d3   :  { %v2982_v15 = vmax.f32 %v2578_v46, 0.0 }
 0x2d4   :  { %v3164_v53 = vpack.c.bf16 %v2984_v19, %v2983_v50  ;;  %5873 = vmatpush3.bf16.msra.mxu1 %v7757_v63 }
 0x2d5   :  { %v3163_v42 = vpack.c.bf16 %v2982_v15, %v2981_v18  ;;  %v6206_v1 = vpop.f32.mrb[252].mxu0 }
 0x2d6   :  { %v2599_v45 = vadd.f32 %v6206_v1, %v6948_v62  ;;  %v2590_v22 = vpop.f32.mrb[253].mxu0 }
 0x2d7   :  { %v2591_v54 = vadd.f32 %v2590_v22, %v6948_v62  ;;  %v6207_v56 = vpop.f32.mrb[254].mxu0  ;;  %5874 = vmatprep.subr.bf16.mxu1 %v3163_v42 }
 0x2d8   :  { %v2602_v34 = vadd.f32 %v6207_v56, %v6948_v62  ;;  %v2593_v58 = vpop.f32.mrb[255].mxu0  ;;  %5875 = vmatpush3.bf16.msra.mxu1 %v7767_v44  ;;  %v2987_v29 = vmax.f32 %v2599_v45, 0.0 }
 0x2d9   :  { %v2594_v11 = vadd.f32 %v2593_v58, %v6948_v62  ;;  %5876 = vmatprep.subr.bf16.mxu1 %v3164_v53  ;;  %v2985_v63 = vmax.f32 %v2591_v54, 0.0 }
 0x2da   :  { %v2988_v32 = vmax.f32 %v2602_v34, 0.0 }
 0x2db   :  { %v2986_v2 = vmax.f32 %v2594_v11, 0.0 }
 0x2dc   :  { %v3166_v7 = vpack.c.bf16 %v2988_v32, %v2987_v29  ;;  %5877 = vmatpush3.bf16.msra.mxu1 %v7765_v28 }
 0x2dd   :  { %v3165_v38 = vpack.c.bf16 %v2986_v2, %v2985_v63  ;;  %v6210_v48 = vpop.f32.mrb[0].mxu0 }
 0x2de   :  { %v2615_v6 = vadd.f32 %v6210_v48, %v6948_v62  ;;  %v2606_v8 = vpop.f32.mrb[1].mxu0 }
 0x2df   :  { %v2607_v41 = vadd.f32 %v2606_v8, %v6948_v62  ;;  %v6211_v14 = vpop.f32.mrb[2].mxu0  ;;  %5878 = vmatprep.subr.bf16.mxu1 %v3165_v38 }
 0x2e0   :  { %v2618_v44 = vadd.f32 %v6211_v14, %v6948_v62  ;;  %v2609_v3 = vpop.f32.mrb[3].mxu0  ;;  %5879 = vmatpush3.bf16.msra.mxu1 %v7775_v4  ;;  %v2991_v20 = vmax.f32 %v2615_v6, 0.0 }
 0x2e1   :  { %v2610_v17 = vadd.f32 %v2609_v3, %v6948_v62  ;;  %5880 = vmatprep.subr.bf16.mxu1 %v3166_v7  ;;  %v2989_v28 = vmax.f32 %v2607_v41, 0.0 }
 0x2e2   :  { %v2992_v51 = vmax.f32 %v2618_v44, 0.0 }
 0x2e3   :  { %v2990_v21 = vmax.f32 %v2610_v17, 0.0 }
 0x2e4   :  { %v7813_v55 = vpack.c.bf16 %v2992_v51, %v2991_v20  ;;  %5881 = vmatpush3.bf16.msra.mxu1 %v7773_v0 }
 0x2e5   :  { %v7819_v4 = vpack.c.bf16 %v2990_v21, %v2989_v28  ;;  %v6214_v25 = vpop.f32.mrb[4].mxu0 }
 0x2e6   :  { %v2631_v5 = vadd.f32 %v6214_v25, %v6948_v62  ;;  %v2622_v26 = vpop.f32.mrb[5].mxu0 }
 0x2e7   :  { %v2623_v47 = vadd.f32 %v2622_v26, %v6948_v62  ;;  %v6215_v59 = vpop.f32.mrb[6].mxu0  ;;  %3593 = vmatmul.mubr.bf16.vlgmr.msra.gmra.mrb[28].mxu1 %v6436_v24 }
 0x2e8   :  { %v2634_v27 = vadd.f32 %v6215_v59, %v6948_v62  ;;  %v2625_v60 = vpop.f32.mrb[7].mxu0  ;;  %3633 = vmatprep.mubr.bf16.mxu1 %v6441_v61  ;;  %v2995_v10 = vmax.f32 %v2631_v5, 0.0 }
 0x2e9   :  { %v2626_v0 = vadd.f32 %v2625_v60, %v6948_v62  ;;  %v2993_v35 = vmax.f32 %v2623_v47, 0.0 }
 0x2ea   :  { %v2996_v30 = vmax.f32 %v2634_v27, 0.0 }
 0x2eb   :  { %v2994_v36 = vmax.f32 %v2626_v0, 0.0 }
 0x2ec   :  { %v7825_v37 = vpack.c.bf16 %v2996_v30, %v2995_v10 }
 0x2ed   :  { %v7827_v52 = vpack.c.bf16 %v2994_v36, %v2993_v35  ;;  %v6218_v40 = vpop.f32.mrb[8].mxu0 }
 0x2ee   :  { %v2647_v9 = vadd.f32 %v6218_v40, %v6948_v62  ;;  %v2638_v31 = vpop.f32.mrb[9].mxu0 }
 0x2ef   :  { %v2639_v33 = vadd.f32 %v2638_v31, %v6948_v62  ;;  %v6219_v13 = vpop.f32.mrb[10].mxu0 }
 0x2f0   :  { %v2650_v16 = vadd.f32 %v6219_v13, %v6948_v62  ;;  %v2641_v12 = vpop.f32.mrb[11].mxu0  ;;  %v2999_v43 = vmax.f32 %v2647_v9, 0.0 }
 0x2f1   :  { %v2642_v23 = vadd.f32 %v2641_v12, %v6948_v62  ;;  %v2997_v50 = vmax.f32 %v2639_v33, 0.0 }
 0x2f2   :  { %v3000_v46 = vmax.f32 %v2650_v16, 0.0 }
 0x2f3   :  { %v2998_v19 = vmax.f32 %v2642_v23, 0.0 }
 0x2f4   :  { %v7833_v18 = vpack.c.bf16 %v3000_v46, %v2999_v43 }
 0x2f5   :  { %v7835_v15 = vpack.c.bf16 %v2998_v19, %v2997_v50  ;;  %v6222_v53 = vpop.f32.mrb[12].mxu0 }
 0x2f6   :  { %v2663_v42 = vadd.f32 %v6222_v53, %v6948_v62  ;;  %v2654_v1 = vpop.f32.mrb[13].mxu0 }
 0x2f7   :  { %v2655_v45 = vadd.f32 %v2654_v1, %v6948_v62  ;;  %v6223_v22 = vpop.f32.mrb[14].mxu0 }
 0x2f8   :  { %v2666_v54 = vadd.f32 %v6223_v22, %v6948_v62  ;;  %v2657_v56 = vpop.f32.mrb[15].mxu0  ;;  %v3003_v58 = vmax.f32 %v2663_v42, 0.0 }
 0x2f9   :  { %v2658_v34 = vadd.f32 %v2657_v56, %v6948_v62  ;;  %v3001_v32 = vmax.f32 %v2655_v45, 0.0 }
 0x2fa   :  { %v3004_v11 = vmax.f32 %v2666_v54, 0.0  ;;  %v5816_v29 = vpop.f32.mrb[16].mxu1 }
 0x2fb   :  { %v3002_v63 = vmax.f32 %v2658_v34, 0.0  ;;  %v5817_v2 = vpop.f32.mrb[17].mxu1 }
 0x2fc   :  { %v7841_v7 = vpack.c.bf16 %v3004_v11, %v3003_v58  ;;  %v5818_v38 = vadd.f32 %v5817_v2, %v5816_v29  ;;  %v5819_v48 = vpop.f32.mrb[18].mxu1 }
 0x2fd   :  { %v7843_v6 = vpack.c.bf16 %v3002_v63, %v3001_v32  ;;  %v6226_v8 = vpop.f32.mrb[16].mxu0  ;;  %v5820_v41 = vpop.f32.mrb[19].mxu1 }
 0x2fe   :  { %v2679_v14 = vadd.f32 %v6226_v8, %v6948_v62  ;;  %v2670_v44 = vpop.f32.mrb[17].mxu0  ;;  %v7847_v3 = vadd.f32 %v5818_v38, %v7779_v39  ;;  %v5821_v17 = vadd.f32 %v5820_v41, %v5819_v48 }
 0x2ff   :  { %v2671_v20 = vadd.f32 %v2670_v44, %v6948_v62  ;;  %v6227_v51 = vpop.f32.mrb[18].mxu0 }
 0x300   :  { %v2682_v28 = vadd.f32 %v6227_v51, %v6948_v62  ;;  %v2673_v21 = vpop.f32.mrb[19].mxu0  ;;  %v7852_v24 = vadd.f32 %v5821_v17, %v7784_v49  ;;  %v3007_v25 = vmax.f32 %v2679_v14, 0.0  ;;  %v6439_v14 = vld [vmem:[%s8427_s2 + $0x40] ss:$72 sps:$4 sm:$0xff]  }
 0x301   :  { %v2674_v61 = vadd.f32 %v2673_v21, %v6948_v62  ;;  %v3005_v26 = vmax.f32 %v2671_v20, 0.0 }
 0x302   :  { %v3008_v5 = vmax.f32 %v2682_v28, 0.0 }
 0x303   :  { %v3006_v47 = vmax.f32 %v2674_v61, 0.0 }
 0x304   :  { %v3176_v59 = vpack.c.bf16 %v3008_v5, %v3007_v25  ;;  %v6444_v5 = vld [vmem:[%s8425_s1 + $0x44] ss:$16 sps:$4 sm:$0xff]  }
 0x305   :  { %v3175_v27 = vpack.c.bf16 %v3006_v47, %v3005_v26  ;;  %v6230_v39 = vpop.f32.mrb[20].mxu0  ;;  %v6442_v26 = vld [vmem:[%s8425_s1 + $0x40] ss:$16 sps:$4 sm:$0xff]  }
 0x306   :  { %v2695_v60 = vadd.f32 %v6230_v39, %v6948_v62  ;;  %v2686_v0 = vpop.f32.mrb[21].mxu0  ;;  %v6450_v39 = vld [vmem:[%s8425_s1 + $0x4c] ss:$16 sps:$4 sm:$0xff]  }
 0x307   :  { %v2687_v10 = vadd.f32 %v2686_v0, %v6948_v62  ;;  %v6231_v30 = vpop.f32.mrb[22].mxu0  ;;  %5888 = vmatprep.subr.bf16.mxu1 %v3175_v27  ;;  %v6445_v27 = vld [vmem:[%s8425_s1 + $0x60] ss:$16 sps:$4 sm:$0xff]  }
 0x308   :  { %v2698_v35 = vadd.f32 %v6231_v30, %v6948_v62  ;;  %v2689_v49 = vpop.f32.mrb[23].mxu0  ;;  %5889 = vmatpush3.bf16.msra.mxu1 %v7819_v4  ;;  %v3011_v40 = vmax.f32 %v2695_v60, 0.0  ;;  %v6673_v60 = vmov 0  }
 0x309   :  { %v2690_v36 = vadd.f32 %v2689_v49, %v6948_v62  ;;  %5890 = vmatprep.subr.bf16.mxu1 %v3176_v59  ;;  %v3009_v31 = vmax.f32 %v2687_v10, 0.0 }
 0x30a   :  { %v3012_v9 = vmax.f32 %v2698_v35, 0.0 }
 0x30b   :  { %v3010_v33 = vmax.f32 %v2690_v36, 0.0 }
 0x30c   :  { %v3178_v13 = vpack.c.bf16 %v3012_v9, %v3011_v40  ;;  %5891 = vmatpush3.bf16.msra.mxu1 %v7813_v55 }
 0x30d   :  { %v3177_v16 = vpack.c.bf16 %v3010_v33, %v3009_v31  ;;  %v6234_v12 = vpop.f32.mrb[24].mxu0 }
 0x30e   :  { %v2711_v23 = vadd.f32 %v6234_v12, %v6948_v62  ;;  %v2702_v43 = vpop.f32.mrb[25].mxu0 }
 0x30f   :  { %v2703_v46 = vadd.f32 %v2702_v43, %v6948_v62  ;;  %v6235_v50 = vpop.f32.mrb[26].mxu0  ;;  %5892 = vmatprep.subr.bf16.mxu1 %v3177_v16 }
 0x310   :  { %v2714_v4 = vadd.f32 %v6235_v50, %v6948_v62  ;;  %v2705_v19 = vpop.f32.mrb[27].mxu0  ;;  %5893 = vmatpush3.bf16.msra.mxu1 %v7827_v52  ;;  %v3015_v42 = vmax.f32 %v2711_v23, 0.0 }
 0x311   :  { %v2706_v53 = vadd.f32 %v2705_v19, %v6948_v62  ;;  %5894 = vmatprep.subr.bf16.mxu1 %v3178_v13  ;;  %v3013_v55 = vmax.f32 %v2703_v46, 0.0  ;;  %v6448_v19 = vld [vmem:[%s8425_s1 + $0x48] ss:$16 sps:$4 sm:$0xff]  }
 0x312   :  { %v3016_v1 = vmax.f32 %v2714_v4, 0.0 }
 0x313   :  { %v3014_v45 = vmax.f32 %v2706_v53, 0.0 }
 0x314   :  { %v3180_v22 = vpack.c.bf16 %v3016_v1, %v3015_v42  ;;  %5895 = vmatpush3.bf16.msra.mxu1 %v7825_v37  ;;  %v6453_v42 = vld [vmem:[%s8425_s1 + $0x6c] ss:$16 sps:$4 sm:$0xff]   ;;  %v6451_v1 = vld [vmem:[%s8425_s1 + $0x68] ss:$16 sps:$4 sm:$0xff]  }
 0x315   :  { %v3179_v54 = vpack.c.bf16 %v3014_v45, %v3013_v55  ;;  %v6238_v56 = vpop.f32.mrb[28].mxu0  ;;  %v6456_v55 = vld [vmem:[%s8429_s4 + $0x4] ss:$16 sps:$4 sm:$0xff]   ;;  %v6454_v45 = vld [vmem:[%s8429_s4] ss:$16 sps:$4 sm:$0xff]  }
 0x316   :  { %v2727_v34 = vadd.f32 %v6238_v56, %v6948_v62  ;;  %v2718_v58 = vpop.f32.mrb[29].mxu0  ;;  %v6462_v56 = vld [vmem:[%s8429_s4 + $0x44] ss:$16 sps:$4 sm:$0xff]  }
 0x317   :  { %v2719_v11 = vadd.f32 %v2718_v58, %v6948_v62  ;;  %v6239_v29 = vpop.f32.mrb[30].mxu0  ;;  %5896 = vmatprep.subr.bf16.mxu1 %v3179_v54  ;;  %v6457_v54 = vld [vmem:[%s8429_s4 + $0x20] ss:$16 sps:$4 sm:$0xff]   ;;  %v6465_v58 = vld [vmem:[%s8429_s4 + $0x64] ss:$16 sps:$4 sm:$0xff]  }
 0x318   :  { %v2730_v52 = vadd.f32 %v6239_v29, %v6948_v62  ;;  %v2721_v32 = vpop.f32.mrb[31].mxu0  ;;  %5897 = vmatpush3.bf16.msra.mxu1 %v7835_v15  ;;  %v3019_v2 = vmax.f32 %v2727_v34, 0.0  ;;  %v6460_v34 = vld [vmem:[%s8429_s4 + $0x40] ss:$16 sps:$4 sm:$0xff]   ;;  %v6468_v29 = vld [vmem:[%s8429_s4 + $0x84] ss:$16 sps:$4 sm:$0xff]  }
 0x319   :  { %v2722_v63 = vadd.f32 %v2721_v32, %v6948_v62  ;;  %5898 = vmatprep.subr.bf16.mxu1 %v3180_v22  ;;  %v3017_v37 = vmax.f32 %v2719_v11, 0.0  ;;  %v6459_v22 = vld [vmem:[%s8429_s4 + $0x24] ss:$16 sps:$4 sm:$0xff]   ;;  %v6463_v11 = vld [vmem:[%s8429_s4 + $0x60] ss:$16 sps:$4 sm:$0xff]  }
 0x31a   :  { %v3020_v38 = vmax.f32 %v2730_v52, 0.0  ;;  %v6466_v52 = vld [vmem:[%s8429_s4 + $0x80] ss:$16 sps:$4 sm:$0xff]   ;;  %v6471_v32 = vld [vmem:[%s8429_s4 + $0xa4] ss:$16 sps:$4 sm:$0xff]  }
 0x31b   :  { %v3018_v48 = vmax.f32 %v2722_v63, 0.0  ;;  %v6469_v63 = vld [vmem:[%s8429_s4 + $0xa0] ss:$16 sps:$4 sm:$0xff]  }
 0x31c   :  { %v3182_v8 = vpack.c.bf16 %v3020_v38, %v3019_v2  ;;  %5899 = vmatpush3.bf16.msra.mxu1 %v7833_v18  ;;  %v6474_v2 = vld [vmem:[%s8429_s4 + $0xc4] ss:$16 sps:$4 sm:$0xff]   ;;  %v6472_v38 = vld [vmem:[%s8429_s4 + $0xc0] ss:$16 sps:$4 sm:$0xff]  }
 0x31d   :  { %v3181_v41 = vpack.c.bf16 %v3018_v48, %v3017_v37  ;;  %v6477_v37 = vld [vmem:[%s8429_s4 + $0xe4] ss:$16 sps:$4 sm:$0xff]   ;;  %v6475_v48 = vld [vmem:[%s8429_s4 + $0xe0] ss:$16 sps:$4 sm:$0xff]  }
 0x31f   :  { %5900 = vmatprep.subr.bf16.mxu1 %v3181_v41  ;;  %v6478_v41 = vld [vmem:[%s8429_s4 + $0x100] ss:$16 sps:$4 sm:$0xff]  }
 0x320   :  { %5901 = vmatpush3.bf16.msra.mxu1 %v7843_v6 }
 0x321   :  { %5902 = vmatprep.subr.bf16.mxu1 %v3182_v8  ;;  %v6480_v8 = vld [vmem:[%s8429_s4 + $0x104] ss:$16 sps:$4 sm:$0xff]  }
 0x324   :  { %5903 = vmatpush3.bf16.msra.mxu1 %v7841_v7 }
 0x325   :  { %3704 = vmatprep.subr.bf16.mxu1 %v6444_v5  ;;  %v6499_v5 = vld [vmem:[%s8429_s4 + $0x1e0] ss:$16 sps:$4 sm:$0xff]  }
 0x327   :  { %3634 = vmatmul.mubr.bf16.vlgmr.msra.gmra.mrb[32].mxu1 %v6439_v14  ;;  %v6483_v14 = vld [vmem:[%s8429_s4 + $0x124] ss:$16 sps:$4 sm:$0xff]  }
 0x328   :  { %3705 = vmatpush1.bf16.msra.mxu1 %v6442_v26  ;;  %3736 = vmatprep.mubr.bf16.mxu1 %v6673_v60  ;;  %v6547_v26 = vld [vmem:[%s8430_s5 + $0x40] sm:$0xff]  }
 0x329   :  { %5910 = vmatprep.subr.bf16.mxu0 %v6547_v26  ;;  %v6537_v26 = vld [vmem:[%s8429_s4 + $0x364] ss:$16 sps:$4 sm:$0xff]  }
 0x33a   :  { %v5838_v62 = vpop.f32.mrb[20].mxu1 }
 0x33b   :  { %v5839_v15 = vpop.f32.mrb[21].mxu1 }
 0x33c   :  { %v5840_v44 = vadd.f32 %v5839_v15, %v5838_v62  ;;  %v5841_v17 = vpop.f32.mrb[22].mxu1  ;;  %v6481_v62 = vld [vmem:[%s8429_s4 + $0x120] ss:$16 sps:$4 sm:$0xff]   ;;  %v6486_v15 = vld [vmem:[%s8429_s4 + $0x144] ss:$16 sps:$4 sm:$0xff]  }
 0x33d   :  { %v5842_v20 = vpop.f32.mrb[23].mxu1 }
 0x33e   :  { %v3513_v51 = vadd.f32 %v5840_v44, %v7847_v3  ;;  %v5843_v18 = vadd.f32 %v5842_v20, %v5841_v17  ;;  %v6484_v44 = vld [vmem:[%s8429_s4 + $0x140] ss:$16 sps:$4 sm:$0xff]   ;;  %v6489_v17 = vld [vmem:[%s8429_s4 + $0x164] ss:$16 sps:$4 sm:$0xff]  }
 0x33f   :  { %v6487_v20 = vld [vmem:[%s8429_s4 + $0x160] ss:$16 sps:$4 sm:$0xff]  }
 0x340   :  { %v3516_v28 = vadd.f32 %v5843_v18, %v7852_v24  ;;  %v6447_v24 = vld [vmem:[%s8425_s1 + $0x64] ss:$16 sps:$4 sm:$0xff]   ;;  %v6490_v18 = vld [vmem:[%s8429_s4 + $0x180] ss:$16 sps:$4 sm:$0xff]  }
 0x341   :  { %3706 = vmatprep.subr.bf16.mxu1 %v6447_v24  ;;  %v8022_v24 = vld [vmem:[%s8428_s6] sm:$0xff] }
 0x342   :  { %3707 = vmatpush1.bf16.msra.mxu1 %v6445_v27 }
 0x343   :  { %3747 = vmatprep.subr.bf16.mxu1 %v6450_v39 }
 0x37a   :  { %v5860_v21 = vpop.f32.mrb[24].mxu1 }
 0x37b   :  { %v5861_v6 = vpop.f32.mrb[25].mxu1 }
 0x37c   :  { %v5862_v61 = vadd.f32 %v5861_v6, %v5860_v21  ;;  %v5863_v25 = vpop.f32.mrb[26].mxu1  ;;  %v6493_v21 = vld [vmem:[%s8429_s4 + $0x1a0] ss:$16 sps:$4 sm:$0xff]   ;;  %v6498_v6 = vld [vmem:[%s8429_s4 + $0x1c4] ss:$16 sps:$4 sm:$0xff]  }
 0x37d   :  { %v5864_v7 = vpop.f32.mrb[27].mxu1 }
 0x37e   :  { %v3554_v47 = vadd.f32 %v5862_v61, %v3513_v51  ;;  %v5865_v59 = vadd.f32 %v5864_v7, %v5863_v25  ;;  %v6492_v51 = vld [vmem:[%s8429_s4 + $0x184] ss:$16 sps:$4 sm:$0xff]   ;;  %v6496_v61 = vld [vmem:[%s8429_s4 + $0x1c0] ss:$16 sps:$4 sm:$0xff]  }
 0x37f   :  { %v6501_v25 = vld [vmem:[%s8429_s4 + $0x1e4] ss:$16 sps:$4 sm:$0xff]  }
 0x380   :  { %v3557_v3 = vadd.f32 %v5865_v59, %v3516_v28  ;;  %v6495_v28 = vld [vmem:[%s8429_s4 + $0x1a4] ss:$16 sps:$4 sm:$0xff]   ;;  %v3647_v59 = vsub.s32 1, %v6934_v57 }
 0x381   :  { %v6504_v7 = vld [vmem:[%s8429_s4 + $0x204] ss:$16 sps:$4 sm:$0xff]  }
 0x382   :  { %v3648_v27 = vrot.slane %v8022_v24, %v3647_v59 }
 0x3ba   :  { %v5882_v0 = vpop.f32.mrb[28].mxu1 }
 0x3bb   :  { %v5883_v10 = vpop.f32.mrb[29].mxu1 }
 0x3bc   :  { %v5884_v30 = vadd.f32 %v5883_v10, %v5882_v0  ;;  %v5885_v35 = vpop.f32.mrb[30].mxu1 }
 0x3bd   :  { %v5886_v49 = vpop.f32.mrb[31].mxu1 }
 0x3be   :  { %v3595_v36 = vadd.f32 %v5884_v30, %v3554_v47  ;;  %v5887_v40 = vadd.f32 %v5886_v49, %v5885_v35  ;;  %v6551_v47 = vld [vmem:[%s8430_s5] sm:$0xff]  }
 0x3bf   :  { %5911 = vmatpush3.bf16.msra.mxu0 %v6551_v47  ;;  %v6535_v47 = vld [vmem:[%s8429_s4 + $0x360] ss:$16 sps:$4 sm:$0xff]  }
 0x3c0   :  { %v3598_v9 = vadd.f32 %v5887_v40, %v3557_v3  ;;  %v8017_v3 = vld [vmem:[%s8428_s6 + $0x8] sm:$0xff] }
 0x3c1   :  { %v3652_v39 = vrot.slane %v8017_v3, %v3647_v59 }
 0x3fa   :  { %v5904_v31 = vpop.f32.mrb[32].mxu1 }
 0x3fb   :  { %v5905_v33 = vpop.f32.mrb[33].mxu1 }
 0x3fc   :  { %v5906_v13 = vadd.f32 %v5905_v33, %v5904_v31  ;;  %v5907_v16 = vpop.f32.mrb[34].mxu1  ;;  %v90_v31 = vld [vmem:[%s8428_s6 + $0x18] sm:$0xff] }
 0x3fd   :  { %v5908_v12 = vpop.f32.mrb[35].mxu1 }
 0x3fe   :  { %v3636_v23 = vadd.f32 %v5906_v13, %v3595_v36  ;;  %v5909_v43 = vadd.f32 %v5908_v12, %v5907_v16  ;;  %v89_v36 = vld [vmem:[%s8428_s6 + $0x10] sm:$0xff] }
 0x3ff   :  { %v3656_v12 = vrot.slane %v89_v36, %v3647_v59  ;;  %v6554_v36 = vld [vmem:[%s8429_s4 + $0xc] ss:$16 sps:$4 sm:$0xff]  }
 0x400   :  { %v3639_v46 = vadd.f32 %v5909_v43, %v3598_v9  ;;  %v3642_v50 = vmul.f32 0.00390625, %v3636_v23 }
 0x402   :  { %v3643_v4 = vmul.f32 0.00390625, %v3639_v46  ;;  %v3660_v46 = vrot.slane %v90_v31, %v3647_v59  ;;  %v6540_v59 = vld [vmem:[%s8429_s4 + $0x384] ss:$16 sps:$4 sm:$0xff]  }
 0x403   :  { %v6650_v31 = vld [vmem:[%s8430_s5 + $0x50] sm:$0xff]  }
 0x404   :  { %v3644_v53 = vpack.c.bf16 %v3643_v4, %v3642_v50 }
 0x406   :  { %5408 = vmatmul.mubr.msk.bf16.vlgmr.msra.gmra.mrb[36].mxu1 %vm1115_vm0, %v3644_v53 }
 0x407   :  { %3748 = vmatpush1.bf16.msra.mxu1 %v6448_v19  ;;  %3779 = vmatprep.mubr.bf16.mxu1 %v6673_v60 }
 0x408   :  { %3749 = vmatprep.subr.bf16.mxu1 %v6453_v42 }
 0x40b   :  { %3750 = vmatpush1.bf16.msra.mxu1 %v6451_v1 }
 0x40c   :  { %4570 = vmatprep.subr.bf16.mxu1 %v6456_v55  ;;  %v6507_v55 = vld [vmem:[%s8429_s4 + $0x224] ss:$16 sps:$4 sm:$0xff]  }
 0x40e   :  { %5409 = vmatmul.mubr.msk.bf16.vlgmr.msra.gmra.mrb[40].mxu1 %vm1115_vm0, %v3644_v53  ;;  %v6502_v53 = vld [vmem:[%s8429_s4 + $0x200] ss:$16 sps:$4 sm:$0xff]  }
 0x40f   :  { %4571 = vmatpush1.bf16.msra.mxu1 %v6454_v45 }
 0x410   :  { %4572 = vmatprep.subr.bf16.mxu1 %v6459_v22 }
 0x413   :  { %4573 = vmatpush1.bf16.msra.mxu1 %v6457_v54 }
 0x414   :  { %4574 = vmatprep.subr.bf16.mxu1 %v6462_v56 }
 0x417   :  { %4575 = vmatpush1.bf16.msra.mxu1 %v6460_v34 }
 0x418   :  { %4576 = vmatprep.subr.bf16.mxu1 %v6465_v58  ;;  %v6505_v58 = vld [vmem:[%s8429_s4 + $0x220] ss:$16 sps:$4 sm:$0xff]  }
 0x41b   :  { %4577 = vmatpush1.bf16.msra.mxu1 %v6463_v11  ;;  %v6603_v11 = vld [vmem:[%s8430_s5 + $0x48] sm:$0xff]  }
 0x41c   :  { %4578 = vmatprep.subr.bf16.mxu1 %v6468_v29  ;;  %5912 = vmatprep.subr.bf16.mxu0 %v6603_v11  ;;  %v6582_v11 = vld [vmem:[%s8429_s4 + $0x148] ss:$16 sps:$4 sm:$0xff]  }
 0x41f   :  { %4579 = vmatpush1.bf16.msra.mxu1 %v6466_v52 }
 0x420   :  { %4580 = vmatprep.subr.bf16.mxu1 %v6471_v32  ;;  %v6510_v32 = vld [vmem:[%s8429_s4 + $0x244] ss:$16 sps:$4 sm:$0xff]  }
 0x423   :  { %4581 = vmatpush1.bf16.msra.mxu1 %v6469_v63  ;;  %v6607_v63 = vld [vmem:[%s8430_s5 + $0x8] sm:$0xff]  }
 0x424   :  { %4582 = vmatprep.subr.bf16.mxu1 %v6474_v2  ;;  %5913 = vmatpush3.bf16.msra.mxu0 %v6607_v63  ;;  %v6588_v63 = vld [vmem:[%s8429_s4 + $0x188] ss:$16 sps:$4 sm:$0xff]  }
 0x425   :  { %5914 = vmatprep.subr.bf16.mxu0 %v6650_v31  ;;  %v6640_v31 = vld [vmem:[%s8429_s4 + $0x38c] ss:$16 sps:$4 sm:$0xff]  }
 0x427   :  { %4583 = vmatpush1.bf16.msra.mxu1 %v6472_v38 }
 0x428   :  { %4584 = vmatprep.subr.bf16.mxu1 %v6477_v37 }
 0x42b   :  { %4585 = vmatpush1.bf16.msra.mxu1 %v6475_v48 }
 0x42c   :  { %4586 = vmatprep.subr.bf16.mxu1 %v6480_v8  ;;  %v6508_v8 = vld [vmem:[%s8429_s4 + $0x240] ss:$16 sps:$4 sm:$0xff]  }
 0x42f   :  { %4587 = vmatpush1.bf16.msra.mxu1 %v6478_v41  ;;  %v6513_v41 = vld [vmem:[%s8429_s4 + $0x264] ss:$16 sps:$4 sm:$0xff]  }
 0x430   :  { %4588 = vmatprep.subr.bf16.mxu1 %v6483_v14  ;;  %v6511_v14 = vld [vmem:[%s8429_s4 + $0x260] ss:$16 sps:$4 sm:$0xff]  }
 0x433   :  { %4589 = vmatpush1.bf16.msra.mxu1 %v6481_v62  ;;  %v6516_v62 = vld [vmem:[%s8429_s4 + $0x284] ss:$16 sps:$4 sm:$0xff]  }
 0x434   :  { %4590 = vmatprep.subr.bf16.mxu1 %v6486_v15  ;;  %v6514_v15 = vld [vmem:[%s8429_s4 + $0x280] ss:$16 sps:$4 sm:$0xff]  }
 0x437   :  { %4591 = vmatpush1.bf16.msra.mxu1 %v6484_v44  ;;  %v6519_v44 = vld [vmem:[%s8429_s4 + $0x2a4] ss:$16 sps:$4 sm:$0xff]  }
 0x438   :  { %4592 = vmatprep.subr.bf16.mxu1 %v6489_v17  ;;  %v6517_v17 = vld [vmem:[%s8429_s4 + $0x2a0] ss:$16 sps:$4 sm:$0xff]  }
 0x43b   :  { %4593 = vmatpush1.bf16.msra.mxu1 %v6487_v20  ;;  %v6522_v20 = vld [vmem:[%s8429_s4 + $0x2c4] ss:$16 sps:$4 sm:$0xff]  }
 0x43c   :  { %4594 = vmatprep.subr.bf16.mxu1 %v6492_v51  ;;  %v6520_v51 = vld [vmem:[%s8429_s4 + $0x2c0] ss:$16 sps:$4 sm:$0xff]  }
 0x43f   :  { %4595 = vmatpush1.bf16.msra.mxu1 %v6490_v18  ;;  %v6525_v18 = vld [vmem:[%s8429_s4 + $0x2e4] ss:$16 sps:$4 sm:$0xff]  }
 0x440   :  { %4596 = vmatprep.subr.bf16.mxu1 %v6495_v28  ;;  %v6523_v28 = vld [vmem:[%s8429_s4 + $0x2e0] ss:$16 sps:$4 sm:$0xff]  }
 0x443   :  { %4597 = vmatpush1.bf16.msra.mxu1 %v6493_v21  ;;  %v6528_v21 = vld [vmem:[%s8429_s4 + $0x304] ss:$16 sps:$4 sm:$0xff]  }
 0x444   :  { %4598 = vmatprep.subr.bf16.mxu1 %v6498_v6  ;;  %v6526_v6 = vld [vmem:[%s8429_s4 + $0x300] ss:$16 sps:$4 sm:$0xff]  }
 0x447   :  { %4599 = vmatpush1.bf16.msra.mxu1 %v6496_v61  ;;  %v6531_v61 = vld [vmem:[%s8429_s4 + $0x324] ss:$16 sps:$4 sm:$0xff]  }
 0x448   :  { %4600 = vmatprep.subr.bf16.mxu1 %v6501_v25  ;;  %v6529_v25 = vld [vmem:[%s8429_s4 + $0x320] ss:$16 sps:$4 sm:$0xff]  }
 0x44b   :  { %4601 = vmatpush1.bf16.msra.mxu1 %v6499_v5  ;;  %v6534_v5 = vld [vmem:[%s8429_s4 + $0x344] ss:$16 sps:$4 sm:$0xff]  }
 0x44c   :  { %4613 = vmatprep.subr.bf16.mxu1 %v6504_v7  ;;  %v6532_v7 = vld [vmem:[%s8429_s4 + $0x340] ss:$16 sps:$4 sm:$0xff]  }
 0x4d9   :  { %v3738_v0 = vpop.f32.mrb[36].mxu1 }
 0x4da   :  { %v3739_v10 = vadd.f32 %v3738_v0, %v3648_v27  ;;  %v3740_v30 = vpop.f32.mrb[37].mxu1  ;;  %v6541_v0 = vld [vmem:[%s8429_s4 + $0x3a0] ss:$16 sps:$4 sm:$0xff]  }
 0x4db   :  { %v3741_v35 = vadd.f32 %v3740_v30, %v3652_v39  ;;  %v3742_v49 = vpop.f32.mrb[38].mxu1  ;;  %v6544_v30 = vld [vmem:[%s8429_s4 + $0x3c0] ss:$16 sps:$4 sm:$0xff]  }
 0x4dc   :  { %v3743_v40 = vadd.f32 %v3742_v49, %v3648_v27  ;;  %v3744_v9 = vpop.f32.mrb[39].mxu1  ;;  %v3790_v13 = vmax.f32 %v3739_v10, 0.0  ;;  %v6538_v27 = vld [vmem:[%s8429_s4 + $0x380] ss:$16 sps:$4 sm:$0xff]   ;;  %v6546_v10 = vld [vmem:[%s8429_s4 + $0x3c4] ss:$16 sps:$4 sm:$0xff]  }
 0x4dd   :  { %v3745_v33 = vadd.f32 %v3744_v9, %v3652_v39  ;;  %v3791_v23 = vmax.f32 %v3741_v35, 0.0  ;;  %v6543_v39 = vld [vmem:[%s8429_s4 + $0x3a4] ss:$16 sps:$4 sm:$0xff]   ;;  %v6548_v49 = vld [vmem:[%s8429_s4 + $0x3e0] ss:$16 sps:$4 sm:$0xff]  }
 0x4de   :  { %v3794_v16 = vmax.f32 %v3743_v40, 0.0  ;;  %v6550_v35 = vld [vmem:[%s8429_s4 + $0x3e4] ss:$16 sps:$4 sm:$0xff]   ;;  %v6552_v40 = vld [vmem:[%s8429_s4 + $0x8] ss:$16 sps:$4 sm:$0xff]  }
 0x4df   :  { %v3795_v43 = vmax.f32 %v3745_v33, 0.0  ;;  %v6557_v9 = vld [vmem:[%s8429_s4 + $0x2c] ss:$16 sps:$4 sm:$0xff]   ;;  %v6651_v33 = vld [vmem:[%s8430_s5 + $0x10] sm:$0xff]  }
 0x4e0   :  { %v8032_v50 = vpack.c.bf16 %v3794_v16, %v3790_v13  ;;  %v6555_v13 = vld [vmem:[%s8429_s4 + $0x28] ss:$16 sps:$4 sm:$0xff]   ;;  %v6560_v16 = vld [vmem:[%s8429_s4 + $0x4c] ss:$16 sps:$4 sm:$0xff]   ;;  %5915 = vmatpush3.bf16.msra.mxu0 %v6651_v33 }
 0x4e1   :  { %v8034_v4 = vpack.c.bf16 %v3795_v43, %v3791_v23  ;;  %v3781_v19 = vpop.f32.mrb[40].mxu1  ;;  %v6563_v23 = vld [vmem:[%s8429_s4 + $0x6c] ss:$16 sps:$4 sm:$0xff]   ;;  %v6561_v43 = vld [vmem:[%s8429_s4 + $0x68] ss:$16 sps:$4 sm:$0xff]  }
 0x4e2   :  { %v3782_v42 = vadd.f32 %v3781_v19, %v3656_v12  ;;  %v3783_v1 = vpop.f32.mrb[41].mxu1  ;;  %v6569_v19 = vld [vmem:[%s8429_s4 + $0xac] ss:$16 sps:$4 sm:$0xff]   ;;  %v6638_v33 = vld [vmem:[%s8429_s4 + $0x388] ss:$16 sps:$4 sm:$0xff]  }
 0x4e3   :  { %v3784_v45 = vadd.f32 %v3783_v1, %v3660_v46  ;;  %v3785_v22 = vpop.f32.mrb[42].mxu1  ;;  %4602 = vmatprep.mubr.bf16.mxu1 %v8034_v4  ;;  %v6570_v1 = vld [vmem:[%s8429_s4 + $0xc8] ss:$16 sps:$4 sm:$0xff]  }
 0x4e4   :  { %v3786_v54 = vadd.f32 %v3785_v22, %v3656_v12  ;;  %v3787_v56 = vpop.f32.mrb[43].mxu1  ;;  %4603 = vmatmul.mubr.bf16.vlgmr.msra.gmra.mrb[44].mxu1 %v8032_v50  ;;  %v3792_v29 = vmax.f32 %v3782_v42, 0.0  ;;  %v6558_v12 = vld [vmem:[%s8429_s4 + $0x48] ss:$16 sps:$4 sm:$0xff]   ;;  %v6572_v42 = vld [vmem:[%s8429_s4 + $0xcc] ss:$16 sps:$4 sm:$0xff]  }
 0x4e5   :  { %v3788_v34 = vadd.f32 %v3787_v56, %v3660_v46  ;;  %4614 = vmatpush1.bf16.msra.mxu1 %v6502_v53  ;;  %v3793_v2 = vmax.f32 %v3784_v45, 0.0  ;;  %v6566_v46 = vld [vmem:[%s8429_s4 + $0x8c] ss:$16 sps:$4 sm:$0xff]   ;;  %v6567_v53 = vld [vmem:[%s8429_s4 + $0xa8] ss:$16 sps:$4 sm:$0xff]  }
 0x4e6   :  { %v3796_v52 = vmax.f32 %v3786_v54, 0.0  ;;  %4615 = vmatprep.subr.bf16.mxu1 %v6507_v55  ;;  %v6575_v55 = vld [vmem:[%s8429_s4 + $0xec] ss:$16 sps:$4 sm:$0xff]   ;;  %v6573_v45 = vld [vmem:[%s8429_s4 + $0xe8] ss:$16 sps:$4 sm:$0xff]  }
 0x4e7   :  { %v3797_v38 = vmax.f32 %v3788_v34, 0.0  ;;  %v6578_v22 = vld [vmem:[%s8429_s4 + $0x10c] ss:$16 sps:$4 sm:$0xff]   ;;  %v6576_v54 = vld [vmem:[%s8429_s4 + $0x108] ss:$16 sps:$4 sm:$0xff]  }
 0x4e8   :  { %v8056_v37 = vpack.c.bf16 %v3796_v52, %v3792_v29  ;;  %v6581_v56 = vld [vmem:[%s8429_s4 + $0x12c] ss:$16 sps:$4 sm:$0xff]   ;;  %v6579_v34 = vld [vmem:[%s8429_s4 + $0x128] ss:$16 sps:$4 sm:$0xff]  }
 0x4e9   :  { %v8058_v48 = vpack.c.bf16 %v3797_v38, %v3793_v2  ;;  %4616 = vmatpush1.bf16.msra.mxu1 %v6505_v58  ;;  %v6584_v58 = vld [vmem:[%s8429_s4 + $0x14c] ss:$16 sps:$4 sm:$0xff]   ;;  %v6585_v52 = vld [vmem:[%s8429_s4 + $0x168] ss:$16 sps:$4 sm:$0xff]  }
 0x4ea   :  { %4617 = vmatprep.subr.bf16.mxu1 %v6510_v32  ;;  %v6587_v29 = vld [vmem:[%s8429_s4 + $0x16c] ss:$16 sps:$4 sm:$0xff]   ;;  %v6591_v38 = vld [vmem:[%s8429_s4 + $0x1a8] ss:$16 sps:$4 sm:$0xff]  }
 0x4eb   :  { %4645 = vmatprep.mubr.bf16.mxu1 %v8058_v48  ;;  %v6590_v32 = vld [vmem:[%s8429_s4 + $0x18c] ss:$16 sps:$4 sm:$0xff]  }
 0x4ec   :  { %v6593_v2 = vld [vmem:[%s8429_s4 + $0x1ac] ss:$16 sps:$4 sm:$0xff]  }
 0x4ed   :  { %4618 = vmatpush1.bf16.msra.mxu1 %v6508_v8  ;;  %v6596_v8 = vld [vmem:[%s8429_s4 + $0x1cc] ss:$16 sps:$4 sm:$0xff]  }
 0x4ee   :  { %4619 = vmatprep.subr.bf16.mxu1 %v6513_v41  ;;  %v6594_v41 = vld [vmem:[%s8429_s4 + $0x1c8] ss:$16 sps:$4 sm:$0xff]  }
 0x4f1   :  { %4620 = vmatpush1.bf16.msra.mxu1 %v6511_v14  ;;  %v6599_v14 = vld [vmem:[%s8429_s4 + $0x1ec] ss:$16 sps:$4 sm:$0xff]  }
 0x4f2   :  { %4621 = vmatprep.subr.bf16.mxu1 %v6516_v62  ;;  %v6597_v62 = vld [vmem:[%s8429_s4 + $0x1e8] ss:$16 sps:$4 sm:$0xff]  }
 0x4f5   :  { %4622 = vmatpush1.bf16.msra.mxu1 %v6514_v15  ;;  %v6602_v15 = vld [vmem:[%s8429_s4 + $0x20c] ss:$16 sps:$4 sm:$0xff]  }
 0x4f6   :  { %4623 = vmatprep.subr.bf16.mxu1 %v6519_v44  ;;  %v6600_v44 = vld [vmem:[%s8429_s4 + $0x208] ss:$16 sps:$4 sm:$0xff]  }
 0x4f9   :  { %4624 = vmatpush1.bf16.msra.mxu1 %v6517_v17  ;;  %v6606_v17 = vld [vmem:[%s8429_s4 + $0x22c] ss:$16 sps:$4 sm:$0xff]  }
 0x4fa   :  { %4625 = vmatprep.subr.bf16.mxu1 %v6522_v20  ;;  %v6604_v20 = vld [vmem:[%s8429_s4 + $0x228] ss:$16 sps:$4 sm:$0xff]  }
 0x4fd   :  { %4626 = vmatpush1.bf16.msra.mxu1 %v6520_v51  ;;  %v6610_v51 = vld [vmem:[%s8429_s4 + $0x24c] ss:$16 sps:$4 sm:$0xff]  }
 0x4fe   :  { %4627 = vmatprep.subr.bf16.mxu1 %v6525_v18  ;;  %v6608_v18 = vld [vmem:[%s8429_s4 + $0x248] ss:$16 sps:$4 sm:$0xff]  }
 0x501   :  { %4628 = vmatpush1.bf16.msra.mxu1 %v6523_v28  ;;  %v6616_v28 = vld [vmem:[%s8429_s4 + $0x28c] ss:$16 sps:$4 sm:$0xff]  }
 0x502   :  { %4629 = vmatprep.subr.bf16.mxu1 %v6528_v21  ;;  %v6614_v21 = vld [vmem:[%s8429_s4 + $0x288] ss:$16 sps:$4 sm:$0xff]  }
 0x505   :  { %4630 = vmatpush1.bf16.msra.mxu1 %v6526_v6  ;;  %v6619_v6 = vld [vmem:[%s8429_s4 + $0x2ac] ss:$16 sps:$4 sm:$0xff]  }
 0x506   :  { %4631 = vmatprep.subr.bf16.mxu1 %v6531_v61  ;;  %v6617_v61 = vld [vmem:[%s8429_s4 + $0x2a8] ss:$16 sps:$4 sm:$0xff]  }
 0x509   :  { %4632 = vmatpush1.bf16.msra.mxu1 %v6529_v25  ;;  %v6622_v25 = vld [vmem:[%s8429_s4 + $0x2cc] ss:$16 sps:$4 sm:$0xff]  }
 0x50a   :  { %4633 = vmatprep.subr.bf16.mxu1 %v6534_v5  ;;  %v6652_v5 = vld [vmem:[%s8430_s5 + $0x58] sm:$0xff]  }
 0x50b   :  { %5916 = vmatprep.subr.bf16.mxu0 %v6652_v5 }
 0x50d   :  { %4634 = vmatpush1.bf16.msra.mxu1 %v6532_v7  ;;  %v6653_v7 = vld [vmem:[%s8430_s5 + $0x18] sm:$0xff]  }
 0x50e   :  { %4635 = vmatprep.subr.bf16.mxu1 %v6537_v26  ;;  %v6620_v26 = vld [vmem:[%s8429_s4 + $0x2c8] ss:$16 sps:$4 sm:$0xff]   ;;  %5917 = vmatpush3.bf16.msra.mxu0 %v6653_v7 }
 0x511   :  { %4636 = vmatpush1.bf16.msra.mxu1 %v6535_v47  ;;  %v6625_v47 = vld [vmem:[%s8429_s4 + $0x2ec] ss:$16 sps:$4 sm:$0xff]  }
 0x512   :  { %4637 = vmatprep.subr.bf16.mxu1 %v6540_v59  ;;  %v6623_v59 = vld [vmem:[%s8429_s4 + $0x2e8] ss:$16 sps:$4 sm:$0xff]  }
 0x515   :  { %4638 = vmatpush1.bf16.msra.mxu1 %v6538_v27  ;;  %v6628_v27 = vld [vmem:[%s8429_s4 + $0x30c] ss:$16 sps:$4 sm:$0xff]  }
 0x516   :  { %4639 = vmatprep.subr.bf16.mxu1 %v6543_v39  ;;  %v6654_v39 = vld [vmem:[%s8430_s5 + $0x60] sm:$0xff]  }
 0x517   :  { %5918 = vmatprep.subr.bf16.mxu0 %v6654_v39 }
 0x519   :  { %4640 = vmatpush1.bf16.msra.mxu1 %v6541_v0  ;;  %v6655_v0 = vld [vmem:[%s8430_s5 + $0x20] sm:$0xff]  }
 0x51a   :  { %4641 = vmatprep.subr.bf16.mxu1 %v6546_v10  ;;  %v6626_v10 = vld [vmem:[%s8429_s4 + $0x308] ss:$16 sps:$4 sm:$0xff]   ;;  %5919 = vmatpush3.bf16.msra.mxu0 %v6655_v0 }
 0x51d   :  { %4642 = vmatpush1.bf16.msra.mxu1 %v6544_v30  ;;  %v6631_v30 = vld [vmem:[%s8429_s4 + $0x32c] ss:$16 sps:$4 sm:$0xff]  }
 0x51e   :  { %4643 = vmatprep.subr.bf16.mxu1 %v6550_v35  ;;  %v6629_v35 = vld [vmem:[%s8429_s4 + $0x328] ss:$16 sps:$4 sm:$0xff]  }
 0x521   :  { %4644 = vmatpush1.bf16.msra.mxu1 %v6548_v49  ;;  %v6634_v49 = vld [vmem:[%s8429_s4 + $0x34c] ss:$16 sps:$4 sm:$0xff]  }
 0x522   :  { %4656 = vmatprep.subr.bf16.mxu1 %v6554_v36  ;;  %v6632_v36 = vld [vmem:[%s8429_s4 + $0x348] ss:$16 sps:$4 sm:$0xff]  }
 0x524   :  { %4646 = vmatmul.mubr.bf16.vlgmr.msra.gmra.mrb[44].mxu1 %v8056_v37 }
 0x525   :  { %4657 = vmatpush1.bf16.msra.mxu1 %v6552_v40  ;;  %4688 = vmatprep.mubr.bf16.mxu1 %v8034_v4  ;;  %v6564_v4 = vld [vmem:[%s8429_s4 + $0x88] ss:$16 sps:$4 sm:$0xff]   ;;  %v6637_v40 = vld [vmem:[%s8429_s4 + $0x36c] ss:$16 sps:$4 sm:$0xff]  }
 0x526   :  { %4658 = vmatprep.subr.bf16.mxu1 %v6557_v9  ;;  %v6635_v9 = vld [vmem:[%s8429_s4 + $0x368] ss:$16 sps:$4 sm:$0xff]  }
 0x529   :  { %4659 = vmatpush1.bf16.msra.mxu1 %v6555_v13  ;;  %v6643_v13 = vld [vmem:[%s8429_s4 + $0x3ac] ss:$16 sps:$4 sm:$0xff]  }
 0x52a   :  { %4660 = vmatprep.subr.bf16.mxu1 %v6560_v16  ;;  %v6641_v16 = vld [vmem:[%s8429_s4 + $0x3a8] ss:$16 sps:$4 sm:$0xff]  }
 0x52d   :  { %4661 = vmatpush1.bf16.msra.mxu1 %v6558_v12  ;;  %v6646_v12 = vld [vmem:[%s8429_s4 + $0x3cc] ss:$16 sps:$4 sm:$0xff]  }
 0x52e   :  { %4662 = vmatprep.subr.bf16.mxu1 %v6563_v23  ;;  %v6644_v23 = vld [vmem:[%s8429_s4 + $0x3c8] ss:$16 sps:$4 sm:$0xff]  }
 0x531   :  { %4663 = vmatpush1.bf16.msra.mxu1 %v6561_v43  ;;  %v6649_v43 = vld [vmem:[%s8429_s4 + $0x3ec] ss:$16 sps:$4 sm:$0xff]  }
 0x532   :  { %4664 = vmatprep.subr.bf16.mxu1 %v6566_v46  ;;  %v6647_v46 = vld [vmem:[%s8429_s4 + $0x3e8] ss:$16 sps:$4 sm:$0xff]  }
 0x535   :  { %4665 = vmatpush1.bf16.msra.mxu1 %v6564_v4 }
 0x536   :  { %4666 = vmatprep.subr.bf16.mxu1 %v6569_v19 }
 0x539   :  { %4667 = vmatpush1.bf16.msra.mxu1 %v6567_v53 }
 0x53a   :  { %4668 = vmatprep.subr.bf16.mxu1 %v6572_v42 }
 0x53d   :  { %4669 = vmatpush1.bf16.msra.mxu1 %v6570_v1 }
 0x53e   :  { %4670 = vmatprep.subr.bf16.mxu1 %v6575_v55 }
 0x541   :  { %4671 = vmatpush1.bf16.msra.mxu1 %v6573_v45  ;;  %v6657_v45 = vld [vmem:[%s8430_s5 + $0x68] sm:$0xff]  }
 0x542   :  { %4672 = vmatprep.subr.bf16.mxu1 %v6578_v22  ;;  %v6658_v22 = vld [vmem:[%s8430_s5 + $0x28] sm:$0xff]   ;;  %5920 = vmatprep.subr.bf16.mxu0 %v6657_v45 }
 0x543   :  { %5921 = vmatpush3.bf16.msra.mxu0 %v6658_v22 }
 0x545   :  { %4673 = vmatpush1.bf16.msra.mxu1 %v6576_v54  ;;  %v6661_v54 = vld [vmem:[%s8430_s5 + $0x30] sm:$0xff]  }
 0x546   :  { %4674 = vmatprep.subr.bf16.mxu1 %v6581_v56  ;;  %v6662_v56 = vld [vmem:[%s8430_s5 + $0x78] sm:$0xff]  }
 0x549   :  { %4675 = vmatpush1.bf16.msra.mxu1 %v6579_v34  ;;  %v6663_v34 = vld [vmem:[%s8430_s5 + $0x38] sm:$0xff]  }
 0x54a   :  { %4676 = vmatprep.subr.bf16.mxu1 %v6584_v58 }
 0x54d   :  { %4677 = vmatpush1.bf16.msra.mxu1 %v6582_v11 }
 0x54e   :  { %4678 = vmatprep.subr.bf16.mxu1 %v6587_v29 }
 0x551   :  { %4679 = vmatpush1.bf16.msra.mxu1 %v6585_v52 }
 0x552   :  { %4680 = vmatprep.subr.bf16.mxu1 %v6590_v32 }
 0x555   :  { %4681 = vmatpush1.bf16.msra.mxu1 %v6588_v63 }
 0x556   :  { %4682 = vmatprep.subr.bf16.mxu1 %v6593_v2  ;;  %v6656_v2 = vld [vmem:[%s8431_s3] sm:$0xff]  }
 0x559   :  { %4683 = vmatpush1.bf16.msra.mxu1 %v6591_v38  ;;  %v6659_v38 = vld [vmem:[%s8431_s3 + $0x8] ss:$0 sps:$4 sm:$0xff]  }
 0x55a   :  { %4684 = vmatprep.subr.bf16.mxu1 %v6596_v8  ;;  %v6664_v8 = vld [vmem:[%s8430_s5 + $0x80] sm:$0xff]  }
 0x55d   :  { %4685 = vmatpush1.bf16.msra.mxu1 %v6594_v41  ;;  %v6665_v41 = vld [vmem:[%s8430_s5 + $0x88] sm:$0xff]  }
 0x55e   :  { %4686 = vmatprep.subr.bf16.mxu1 %v6599_v14  ;;  %v6667_v14 = vld [vmem:[%s8430_s5 + $0x98] sm:$0xff]  }
 0x561   :  { %4687 = vmatpush1.bf16.msra.mxu1 %v6597_v62  ;;  %v4751_v62 = vsub.s32 2, %v6934_v57 }
 0x562   :  { %4699 = vmatprep.subr.bf16.mxu1 %v6602_v15 }
 0x563   :  { %v4752_v15 = vrot.slane %v8022_v24, %v4751_v62 }
 0x564   :  { %4689 = vmatmul.mubr.bf16.vlgmr.msra.gmra.mrb[48].mxu1 %v8032_v50  ;;  %v6613_v50 = vld [vmem:[%s8429_s4 + $0x26c] ss:$16 sps:$4 sm:$0xff]  }
 0x565   :  { %4700 = vmatpush1.bf16.msra.mxu1 %v6600_v44  ;;  %4731 = vmatprep.mubr.bf16.mxu1 %v8058_v48  ;;  %v6611_v48 = vld [vmem:[%s8429_s4 + $0x268] ss:$16 sps:$4 sm:$0xff]   ;;  %v4756_v44 = vrot.slane %v8017_v3, %v4751_v62 }
 0x566   :  { %4701 = vmatprep.subr.bf16.mxu1 %v6606_v17 }
 0x569   :  { %4702 = vmatpush1.bf16.msra.mxu1 %v6604_v20 }
 0x56a   :  { %4703 = vmatprep.subr.bf16.mxu1 %v6610_v51 }
 0x56d   :  { %4704 = vmatpush1.bf16.msra.mxu1 %v6608_v18 }
 0x56e   :  { %4705 = vmatprep.subr.bf16.mxu1 %v6613_v50 }
 0x571   :  { %4706 = vmatpush1.bf16.msra.mxu1 %v6611_v48 }
 0x572   :  { %4707 = vmatprep.subr.bf16.mxu1 %v6616_v28 }
 0x575   :  { %4708 = vmatpush1.bf16.msra.mxu1 %v6614_v21 }
 0x576   :  { %4709 = vmatprep.subr.bf16.mxu1 %v6619_v6 }
 0x579   :  { %4710 = vmatpush1.bf16.msra.mxu1 %v6617_v61 }
 0x57a   :  { %4711 = vmatprep.subr.bf16.mxu1 %v6622_v25 }
 0x57d   :  { %4712 = vmatpush1.bf16.msra.mxu1 %v6620_v26 }
 0x57e   :  { %4713 = vmatprep.subr.bf16.mxu1 %v6625_v47 }
 0x581   :  { %4714 = vmatpush1.bf16.msra.mxu1 %v6623_v59 }
 0x582   :  { %4715 = vmatprep.subr.bf16.mxu1 %v6628_v27 }
 0x585   :  { %4716 = vmatpush1.bf16.msra.mxu1 %v6626_v10 }
 0x586   :  { %4717 = vmatprep.subr.bf16.mxu1 %v6631_v30 }
 0x589   :  { %4718 = vmatpush1.bf16.msra.mxu1 %v6629_v35 }
 0x58a   :  { %4719 = vmatprep.subr.bf16.mxu1 %v6634_v49 }
 0x58d   :  { %4720 = vmatpush1.bf16.msra.mxu1 %v6632_v36  ;;  %v6668_v36 = vld [vmem:[%s8430_s5 + $0xa0] sm:$0xff]  }
 0x58e   :  { %4721 = vmatprep.subr.bf16.mxu1 %v6637_v40  ;;  %v6669_v40 = vld [vmem:[%s8430_s5 + $0xa8] sm:$0xff]  }
 0x591   :  { %4722 = vmatpush1.bf16.msra.mxu1 %v6635_v9  ;;  %v6670_v9 = vld [vmem:[%s8430_s5 + $0xb0] sm:$0xff]  }
 0x592   :  { %4723 = vmatprep.subr.bf16.mxu1 %v6640_v31  ;;  %v6671_v31 = vld [vmem:[%s8430_s5 + $0xb8] sm:$0xff]  }
 0x595   :  { %4724 = vmatpush1.bf16.msra.mxu1 %v6638_v33  ;;  %v4834_v33 = vsub.s32 3, %v6934_v57 }
 0x596   :  { %4725 = vmatprep.subr.bf16.mxu1 %v6643_v13 }
 0x599   :  { %4726 = vmatpush1.bf16.msra.mxu1 %v6641_v16  ;;  %v4835_v16 = vrot.slane %v8022_v24, %v4834_v33 }
 0x59a   :  { %4727 = vmatprep.subr.bf16.mxu1 %v6646_v12 }
 0x59d   :  { %4728 = vmatpush1.bf16.msra.mxu1 %v6644_v23 }
 0x59e   :  { %4729 = vmatprep.subr.bf16.mxu1 %v6649_v43 }
 0x5a1   :  { %4730 = vmatpush1.bf16.msra.mxu1 %v6647_v46 }
 0x5a4   :  { %4732 = vmatmul.mubr.bf16.vlgmr.msra.gmra.mrb[48].mxu1 %v8056_v37  ;;  %v6660_v37 = vld [vmem:[%s8430_s5 + $0x70] sm:$0xff]  }
 0x5a5   :  { %4803 = vmatprep.mubr.bf16.mxu1 %v6673_v60  ;;  %5922 = vmatprep.subr.bf16.mxu0 %v6660_v37 }
 0x5a6   :  { %5923 = vmatpush3.bf16.msra.mxu0 %v6661_v54 }
 0x5a7   :  { %5924 = vmatprep.subr.bf16.mxu0 %v6662_v56 }
 0x5aa   :  { %5925 = vmatpush3.bf16.msra.mxu0 %v6663_v34 }
 0x5f7   :  { %v4647_v4 = vpop.f32.mrb[44].mxu1 }
 0x5f8   :  { %v4649_v19 = vpop.f32.mrb[45].mxu1 }
 0x5f9   :  { %v4651_v53 = vpop.f32.mrb[46].mxu1 }
 0x5fa   :  { %v4742_v42 = vpack.c.bf16 %v4651_v53, %v4647_v4  ;;  %v4653_v1 = vpop.f32.mrb[47].mxu1 }
 0x5fb   :  { %v4743_v55 = vpack.c.bf16 %v4653_v1, %v4649_v19 }
 0x5fd   :  { %4771 = vmatprep.subr.bf16.mxu1 %v4743_v55 }
 0x5fe   :  { %4772 = vmatpush1.bf16.msra.mxu1 %v4742_v42 }
 0x677   :  { %v4733_v58 = vpop.f32.mrb[48].mxu1 }
 0x678   :  { %v4735_v11 = vpop.f32.mrb[49].mxu1 }
 0x679   :  { %v4737_v29 = vpop.f32.mrb[50].mxu1 }
 0x67a   :  { %v4744_v52 = vpack.c.bf16 %v4737_v29, %v4733_v58  ;;  %v4739_v32 = vpop.f32.mrb[51].mxu1  ;;  %v4987_v29 = vsub.s32 4, %v6934_v57 }
 0x67b   :  { %v4745_v63 = vpack.c.bf16 %v4739_v32, %v4735_v11 }
 0x67d   :  { %4773 = vmatprep.subr.bf16.mxu1 %v4745_v63 }
 0x67e   :  { %4774 = vmatpush1.bf16.msra.mxu1 %v4744_v52  ;;  %v4988_v52 = vrot.slane %v8022_v24, %v4987_v29 }
 0x67f   :  { %6240 = vmatprep.subr.bf16.mxu1 %v6664_v8 }
 0x681   :  { %5540 = vmatmul.mubr.msk.bf16.vlgmr.msra.gmra.mrb[52].mxu1 %vm1115_vm0, %v6656_v2 }
 0x682   :  { %4813 = vmatprep.mubr.bf16.mxu1 %v6673_v60  ;;  %6241 = vmatpush3.bf16.msra.mxu1 %v6664_v8  ;;  %v6666_v60 = vld [vmem:[%s8430_s5 + $0x90] sm:$0xff]  }
 0x683   :  { %6242 = vmatprep.subr.bf16.mxu1 %v6665_v41 }
 0x686   :  { %6243 = vmatpush3.bf16.msra.mxu1 %v6665_v41 }
 0x687   :  { %6244 = vmatprep.subr.bf16.mxu1 %v6666_v60 }
 0x689   :  { %5541 = vmatmul.mubr.msk.bf16.gmra.mrb[56].mxu1 %vm1115_vm0, %v6659_v38 }
 0x68a   :  { %6245 = vmatpush3.bf16.msra.mxu1 %v6666_v60 }
 0x68b   :  { %6246 = vmatprep.subr.bf16.mxu1 %v6667_v14 }
 0x68e   :  { %6247 = vmatpush3.bf16.msra.mxu1 %v6667_v14 }
 0x68f   :  { %6248 = vmatprep.subr.bf16.mxu1 %v6668_v36 }
 0x692   :  { %6249 = vmatpush3.bf16.msra.mxu1 %v6668_v36 }
 0x693   :  { %6250 = vmatprep.subr.bf16.mxu1 %v6669_v40 }
 0x696   :  { %6251 = vmatpush3.bf16.msra.mxu1 %v6669_v40 }
 0x697   :  { %6252 = vmatprep.subr.bf16.mxu1 %v6670_v9 }
 0x69a   :  { %6253 = vmatpush3.bf16.msra.mxu1 %v6670_v9 }
 0x69b   :  { %6254 = vmatprep.subr.bf16.mxu1 %v6671_v31 }
 0x69e   :  { %6255 = vmatpush3.bf16.msra.mxu1 %v6671_v31 }
 0x754   :  { %v4805_v17 = vpop.f32.mrb[52].mxu1 }
 0x755   :  { %v4806_v20 = vadd.f32 %v4805_v17, %v4752_v15  ;;  %v4807_v51 = vpop.f32.mrb[53].mxu1 }
 0x756   :  { %v4808_v18 = vadd.f32 %v4807_v51, %v4756_v44  ;;  %v4809_v50 = vpop.f32.mrb[54].mxu1 }
 0x757   :  { %v4810_v48 = vadd.f32 %v4809_v50, %v4752_v15  ;;  %v4811_v28 = vpop.f32.mrb[55].mxu1  ;;  %v4822_v6 = vmax.f32 %v4806_v20, 0.0 }
 0x758   :  { %v4812_v21 = vadd.f32 %v4811_v28, %v4756_v44  ;;  %v4823_v25 = vmax.f32 %v4808_v18, 0.0 }
 0x759   :  { %v4824_v61 = vmax.f32 %v4810_v48, 0.0 }
 0x75a   :  { %v4825_v5 = vmax.f32 %v4812_v21, 0.0 }
 0x75b   :  { %v4828_v7 = vpack.c.bf16 %v4824_v61, %v4822_v6 }
 0x75c   :  { %v4829_v26 = vpack.c.bf16 %v4825_v5, %v4823_v25  ;;  %v4815_v47 = vpop.f32.mrb[56].mxu1 }
 0x75d   :  { %v4816_v59 = vadd.f32 %v4815_v47, %v4752_v15  ;;  %v4817_v27 = vpop.f32.mrb[57].mxu1 }
 0x75e   :  { %v4818_v39 = vadd.f32 %v4817_v27, %v4756_v44  ;;  %v4819_v0 = vpop.f32.mrb[58].mxu1  ;;  %4964 = vmatprep.mubr.bf16.mxu0 %v4829_v26 }
 0x75f   :  { %v4820_v3 = vpop.f32.mrb[59].mxu1  ;;  %4965 = vmatmul.mubr.bf16.vlgmr.msra.gmra.mrb[32].mxu0 %v4828_v7  ;;  %v4826_v30 = vmax.f32 %v4816_v59, 0.0 }
 0x760   :  { %v4827_v10 = vmax.f32 %v4818_v39, 0.0 }
 0x761   :  { %v4830_v49 = vpack.c.bf16 %v4826_v30, %v4826_v30 }
 0x762   :  { %v4831_v35 = vpack.c.bf16 %v4827_v10, %v4827_v10 }
 0x764   :  { %4972 = vmatprep.mubr.bf16.mxu0 %v4831_v35 }
 0x767   :  { %4973 = vmatmul.mubr.bf16.gmra.mrb[36].mxu0 %v4830_v49 }
 0x832   :  { %v5926_v13 = vpop.f32.mrb[32].mxu0 }
 0x833   :  { %v5927_v12 = vpop.f32.mrb[33].mxu0 }
 0x834   :  { %v5928_v23 = vadd.f32 %v5927_v12, %v5926_v13  ;;  %v5929_v43 = vpop.f32.mrb[34].mxu0 }
 0x835   :  { %v5930_v46 = vpop.f32.mrb[35].mxu0 }
 0x836   :  { %v4967_v4 = vadd.f32 %v5928_v23, %v4835_v16  ;;  %v5931_v19 = vadd.f32 %v5930_v46, %v5929_v43 }
 0x838   :  { %v4970_v53 = vadd.f32 %v5931_v19, %v4835_v16  ;;  %v4980_v42 = vmax.f32 %v4967_v4, 0.0 }
 0x83a   :  { %v4981_v1 = vmax.f32 %v4970_v53, 0.0  ;;  %v5932_v55 = vpop.f32.mrb[36].mxu0 }
 0x83b   :  { %v5933_v45 = vpop.f32.mrb[37].mxu0 }
 0x83c   :  { %v5934_v22 = vadd.f32 %v5933_v45, %v5932_v55  ;;  %v5935_v37 = vpop.f32.mrb[38].mxu0  ;;  %v4983_v54 = vpack.c.bf16 %v4981_v1, %v4980_v42 }
 0x83d   :  { %v5936_v56 = vpop.f32.mrb[39].mxu0 }
 0x83e   :  { %v4975_v34 = vadd.f32 %v5934_v22, %v4835_v16  ;;  %6256 = vmatprep.mubr.bf16.mxu1 %v4983_v54 }
 0x840   :  { %v4982_v58 = vmax.f32 %v4975_v34, 0.0 }
 0x842   :  { %v4984_v11 = vpack.c.bf16 %v4982_v58, %v4982_v58 }
 0x844   :  { %6257 = vmatmul.mubr.bf16.vlgmr.msra.gmra.mrb[60].mxu1 %v4984_v11 }
 0x917   :  { %v6258_v32 = vpop.f32.mrb[60].mxu1 }
 0x918   :  { %v5080_v63 = vadd.f32 %v6258_v32, %v4988_v52  ;;  %v5071_v2 = vpop.f32.mrb[61].mxu1 }
 0x919   :  { %v5072_v38 = vadd.f32 %v5071_v2, %v4988_v52  ;;  %v6259_v8 = vpop.f32.mrb[62].mxu1 }
 0x91a   :  { %5087 = vst [vmem:[%s8432_s7 + $0x10] sm:$0xff] %v5080_v63  ;;  %v5074_v41 = vpop.f32.mrb[63].mxu1 }
 0x91b   :  { %5085 = vst [vmem:[%s8432_s7] sm:$0xff] %v5072_v38  ;;  %v5075_v60 = vadd.f32 %v5074_v41, %v4988_v52 }
 0x91d   :  { %5086 = vst [vmem:[%s8432_s7 + $0x8] sm:$0xff] %v5075_v60 }

</bundles_post_ra>
